<compile_context>
chip_gen: v6e
topology: v6e:2x2x1
jax: 0.10.0
libtpu: 0.0.40
codegen_flags: <defaults>
</compile_context>

<pallas_src>
import math
from functools import partial
from itertools import combinations

import jax
import jax.numpy as jnp
from jax.experimental import pallas as pl
from jax.experimental.pallas import tpu as pltpu


# ---------------------------------------------------------------------------
# Pallas kernels
# ---------------------------------------------------------------------------

def _mlp_kernel(x_ref, w1_ref, b1_ref, w2_ref, b2_ref, o_ref):
    """Fused MLP: relu(relu(x@W1+b1)@W2+b2).  Hidden activation stays in VMEM."""
    x = x_ref[...].astype(jnp.bfloat16)
    h = jnp.dot(x, w1_ref[...], preferred_element_type=jnp.float32) + b1_ref[...]
    h = jnp.maximum(h, 0.0).astype(jnp.bfloat16)
    o = jnp.dot(h, w2_ref[...], preferred_element_type=jnp.float32) + b2_ref[...]
    o_ref[...] = jnp.maximum(o, 0.0)


def mlp_fused(p, x2d):
    """x2d: (M, in_dim) f32 -> (M, 256) f32 in a single pallas_call."""
    m = x2d.shape[0]
    n = p["W2"].shape[1]
    return pl.pallas_call(
        _mlp_kernel,
        out_shape=jax.ShapeDtypeStruct((m, n), jnp.float32),
    )(x2d, p["W1"], p["b1"], p["W2"], p["b2"])


def _tct_kernel(q_ref, s_ref, wkv_ref, bkv_ref, g_ref, beta_ref,
                logit_ref, diff_ref, proto_ref, *, out_dim, n_tuples, n_classes):
    """One batch element: fused K|V projection + LayerNorm + all-class cross attention."""
    D, T, C = out_dim, n_tuples, n_classes
    inv_scale = 1.0 / math.sqrt(D)

    wkv = wkv_ref[...]            # (2F, 2D) bf16  (Wk | Wv concatenated, lane-dense)
    bkv = bkv_ref[...]            # (1, 2D)  f32   (bk | bv)
    g = g_ref[...]                # (1, D)   f32   LayerNorm gamma
    bt = beta_ref[...]            # (1, D)   f32   LayerNorm beta

    def project(x_bf16):          # x: (T, 2F) bf16
        kv = jnp.dot(x_bf16, wkv, preferred_element_type=jnp.float32) + bkv   # (T, 2D) f32
        k = kv[:, :D]
        v = kv[:, D:]
        # nn.LayerNorm (norm_k), eps=1e-5, f32 statistics
        mu = jnp.mean(k, axis=-1, keepdims=True)
        kc = k - mu
        var = jnp.mean(kc * kc, axis=-1, keepdims=True)
        k = kc * jax.lax.rsqrt(var + 1e-5) * g + bt
        return k, v

    # Query projection happens once per batch element (not per class).
    qk, qv = project(q_ref[0])                      # (T, D), (T, D)  f32

    dists = []
    for c in range(C):                              # static unroll over selected classes
        sk, sv = project(s_ref[0, c])               # (T, D), (T, D)  f32
        scores = jnp.dot(qk, sk.T, preferred_element_type=jnp.float32) * inv_scale   # (Tq, Tk)
        # torch.nn.Softmax(dim=-2): softmax over the query-tuple axis (rows), f32.
        m = jnp.max(scores, axis=0, keepdims=True)
        e = jnp.exp(scores - m)
        p = e * pl.reciprocal(jnp.sum(e, axis=0, keepdims=True), approx=True)
        proto = jnp.dot(p, sv, preferred_element_type=jnp.float32)                   # (T, D)
        diff = qv - proto                                                            # (T, D)
        diff_ref[0, c] = diff
        proto_ref[0, c] = proto
        sq = jnp.sum(diff * diff, axis=-1, keepdims=True)            # (T, 1)
        dists.append(jnp.sum(sq, axis=0, keepdims=True) * (-1.0 / T))  # (1, 1)
    logit_ref[0] = jnp.concatenate(dists, axis=-1)                   # (1, C) single store


def tct_fused(p, q_tuples, s_sel, out_dim):
    """q_tuples: (B, T, 2F) f32; s_sel: (B, C, T, 2F) f32 (class-selected support)."""
    B, T, F2 = q_tuples.shape
    C = s_sel.shape[1]
    D = out_dim

    grid_spec = pltpu.PrefetchScalarGridSpec(
        num_scalar_prefetch=0,
        grid=(B,),
        in_specs=[
            pl.BlockSpec((1, T, F2), lambda i: (i, 0, 0)),
            pl.BlockSpec((1, C, T, F2), lambda i: (i, 0, 0, 0)),
            pl.BlockSpec((F2, 2 * D), lambda i: (0, 0)),     # weights: constant block index
            pl.BlockSpec((1, 2 * D), lambda i: (0, 0)),       #  -> not re-fetched per step
            pl.BlockSpec((1, D), lambda i: (0, 0)),
            pl.BlockSpec((1, D), lambda i: (0, 0)),
        ],
        out_specs=[
            pl.BlockSpec((1, 1, C), lambda i: (i, 0, 0)),
            pl.BlockSpec((1, C, T, D), lambda i: (i, 0, 0, 0)),
            pl.BlockSpec((1, C, T, D), lambda i: (i, 0, 0, 0)),
        ],
    )
    logits3, diffs, protos = pl.pallas_call(
        partial(_tct_kernel, out_dim=D, n_tuples=T, n_classes=C),
        out_shape=(
            jax.ShapeDtypeStruct((B, 1, C), jnp.float32),
            jax.ShapeDtypeStruct((B, C, T, D), jnp.float32),
            jax.ShapeDtypeStruct((B, C, T, D), jnp.float32),
        ),
        grid_spec=grid_spec,
        compiler_params=pltpu.CompilerParams(
            dimension_semantics=("parallel",)),   # v7x: split the batch over the 2 TCs
    )(q_tuples.astype(jnp.bfloat16), s_sel.astype(jnp.bfloat16),
      p["Wkv"], p["bkv"], p["gamma"], p["beta"])
    return logits3[:, 0, :], diffs, protos


def _disc_kernel(x_ref, w1_ref, b1_ref, w2_ref, b2_ref, w3_ref, b3_ref, o_ref):
    """Fused Discriminator: (dr∘fc1 folded) -> relu -> fc2 -> relu -> fc3 -> sigmoid."""
    h = jnp.dot(x_ref[...], w1_ref[...], preferred_element_type=jnp.float32) + b1_ref[...]
    h = jnp.maximum(h, 0.0).astype(jnp.bfloat16)
    h = jnp.dot(h, w2_ref[...], preferred_element_type=jnp.float32) + b2_ref[...]
    h = jnp.maximum(h, 0.0).astype(jnp.bfloat16)
    y = jnp.dot(h, w3_ref[...], preferred_element_type=jnp.float32) + b3_ref[...]
    o_ref[...] = 1.0 / (1.0 + jnp.exp(-y))          # nn.Sigmoid


def discriminator_fused(p, feat2d):
    """feat2d: (B, T*out_dim) f32 -> (B, 1) f32 in a single pallas_call."""
    b = feat2d.shape[0]
    return pl.pallas_call(
        _disc_kernel,
        out_shape=jax.ShapeDtypeStruct((b, 1), jnp.float32),
    )(feat2d.astype(jnp.bfloat16),
      p["Wf"], p["bf"], p["W2"], p["b2"], p["W3"], p["b3"])


# ---------------------------------------------------------------------------
# Plain-JAX glue reproducing the PyTorch module structure
# ---------------------------------------------------------------------------

def positional_encoding(max_len, d_model, scale=0.1):
    position = jnp.arange(max_len, dtype=jnp.float32)[:, None]
    div_term = jnp.exp(jnp.arange(0, d_model, 2, dtype=jnp.float32)
                       * -(math.log(10000.0) / d_model))
    pe = jnp.zeros((max_len, d_model), jnp.float32)
    pe = pe.at[:, 0::2].set(jnp.sin(position * div_term) * scale)
    pe = pe.at[:, 1::2].set(jnp.cos(position * div_term) * scale)
    return pe


def tct_forward(p, support_set, support_labels, queries, tuples, out_dim):
    """TemporalCrossTransformer.forward (temporal_set_size = tuples.shape[1])."""
    b, n_support, l, d = support_set.shape
    T, ts = tuples.shape

    pe = positional_encoding(int(l * 1.5), d)            # Dropout is eval-mode identity
    support_set = support_set + pe[None, None, :l]
    queries = queries + pe[None, None, :l]

    # frame-tuple gather + flatten (== index_select + reshape + stack) — left to XLA
    s = support_set[:, :, tuples, :].reshape(b, n_support, T, ts * d)
    q = queries[:, :, tuples, :].reshape(b, queries.shape[1], T, ts * d)[:, 0]  # n_queries == 1

    labels = support_labels[0].astype(jnp.int32)          # iterate over support_labels[0]
    s_sel = jnp.take(s, labels, axis=1)                   # index_select over the support axis

    logits, diffs, protos = tct_fused(p, q, s_sel, out_dim)   # (b,C), (b,C,T,D), (b,C,T,D)

    prototypes = [protos[:, c][:, None] for c in range(labels.shape[0])]
    return {"logits": logits, "diffs": diffs, "prototypes": prototypes}


def trxos_forward(params, ss_sk, ss_labels, query_sk, tuples, out_dim):
    b, k, l, in_dim = ss_sk.shape

    # skeleton feature extractor (MLP): query + support rows in ONE fused kernel call
    x_all = jnp.concatenate([query_sk.reshape(b * l, in_dim),
                             ss_sk.reshape(b * k * l, in_dim)], axis=0)
    feats = mlp_fused(params["mlp"], x_all)                          # (b*(1+k)*l, 256)
    feat_dim = feats.shape[-1]
    query_features = feats[:b * l].reshape(b, 1, l, feat_dim)        # unsqueeze(1)
    ss_features = feats[b * l:].reshape(b, k, l, feat_dim)

    out = tct_forward(params["tct"], ss_features, ss_labels, query_features, tuples, out_dim)

    all_logits = out["logits"]                                       # (b, n_classes)
    chosen_index = jnp.argmax(all_logits, axis=1)                    # (b,)
    feature = out["diffs"][jnp.arange(b), chosen_index]              # (b, T, out_dim)
    T = feature.shape[1]
    decision = discriminator_fused(params["disc"], feature.reshape(b, T * out_dim))

    return {"logits": all_logits, "is_true": decision,
            "prototypes": out["prototypes"], "support_features": ss_features}


# ---------------------------------------------------------------------------
# Parameter prep: Wk|Wv concat, dr∘fc1 fold, bf16 weight storage
# ---------------------------------------------------------------------------

def prepare_params(raw, n_tuples, seq_len):
    mlp, tct, disc = raw["mlp"], raw["tct"], raw["disc"]

    p_mlp = {"W1": mlp["W1"].astype(jnp.bfloat16), "b1": mlp["b1"].reshape(1, -1),
             "W2": mlp["W2"].astype(jnp.bfloat16), "b2": mlp["b2"].reshape(1, -1)}

    # Fused K|V projection weights: one lane-dense (2F, 2D) matmul instead of two (2F, D).
    wkv = jnp.concatenate([tct["Wk"], tct["Wv"]], axis=1)
    bkv = jnp.concatenate([tct["bk"], tct["bv"]], axis=0)
    p_tct = {"Wkv": wkv.astype(jnp.bfloat16), "bkv": bkv.reshape(1, -1),
             "gamma": tct["gamma"].reshape(1, -1), "beta": tct["beta"].reshape(1, -1)}

    # Fold dimensionality_reduction into fc1 (exact: fc1 ∘ reshape ∘ dr is one Linear on the
    # flattened (T, dim) feature, since there is no nonlinearity between them).
    dim = disc["Wdr"].shape[0]
    W1r = disc["W1"].reshape(n_tuples, seq_len, disc["W1"].shape[1])        # (T, l, 256)
    Wf = jnp.einsum("dj,tjn->tdn", disc["Wdr"], W1r).reshape(n_tuples * dim, -1)
    bf = disc["b1"] + jnp.einsum("j,tjn->n", disc["bdr"], W1r)
    p_disc = {"Wf": Wf.astype(jnp.bfloat16), "bf": bf.reshape(1, -1),
              "W2": disc["W2"].astype(jnp.bfloat16), "b2": disc["b2"].reshape(1, -1),
              "W3": disc["W3"].astype(jnp.bfloat16), "b3": disc["b3"].reshape(1, -1)}

    return {"mlp": p_mlp, "tct": p_tct, "disc": p_disc}


def _init_linear(key, fan_in, fan_out):
    kw, kb = jax.random.split(key)
    w = jax.random.normal(kw, (fan_in, fan_out), jnp.float32) * (1.0 / math.sqrt(fan_in))
    b = jax.random.normal(kb, (fan_out,), jnp.float32) * 0.01
    return w, b


# ---------------------------------------------------------------------------
# Deterministic parameter init + run
# ---------------------------------------------------------------------------

if __name__ == "__main__":
    # args: seq_len=8, n_joints=5, trans_linear_in_dim=256, trans_linear_out_dim=64,
    #       temp_set=[2], input_type='skeleton', model='DISC', way=K=3
    SEQ_LEN, N_JOINTS = 8, 5
    IN_SK = N_JOINTS * 3            # 15
    HID_SK = IN_SK * 2              # 30
    FEAT = 256                      # trans_linear_in_dim
    TS = 2                          # temporal_set_size
    OUT_DIM = 64                    # trans_linear_out_dim
    B, K = 2, 3

    tuples = jnp.array(list(combinations(range(SEQ_LEN), TS)), dtype=jnp.int32)  # (28, 2)
    T = tuples.shape[0]

    key = jax.random.PRNGKey(0)
    ks = jax.random.split(key, 16)

    mlp_W1, mlp_b1 = _init_linear(ks[0], IN_SK, HID_SK)
    mlp_W2, mlp_b2 = _init_linear(ks[1], HID_SK, FEAT)
    Wk, bk = _init_linear(ks[2], FEAT * TS, OUT_DIM)
    Wv, bv = _init_linear(ks[3], FEAT * TS, OUT_DIM)
    gamma = jnp.ones((OUT_DIM,), jnp.float32)
    beta = jnp.zeros((OUT_DIM,), jnp.float32)
    Wdr, bdr = _init_linear(ks[4], OUT_DIM, SEQ_LEN)
    W1d, b1d = _init_linear(ks[5], T * SEQ_LEN, 256)
    W2d, b2d = _init_linear(ks[6], 256, 64)
    W3d, b3d = _init_linear(ks[7], 64, 1)

    raw_params = {
        "mlp": {"W1": mlp_W1, "b1": mlp_b1, "W2": mlp_W2, "b2": mlp_b2},
        "tct": {"Wk": Wk, "bk": bk, "Wv": Wv, "bv": bv, "gamma": gamma, "beta": beta},
        "disc": {"Wdr": Wdr, "bdr": bdr, "W1": W1d, "b1": b1d,
                 "W2": W2d, "b2": b2d, "W3": W3d, "b3": b3d},
    }
    params = prepare_params(raw_params, T, SEQ_LEN)

    query_sk = jax.random.normal(ks[8], (B, SEQ_LEN, IN_SK), jnp.float32)
    ss_sk = jax.random.normal(ks[9], (B, K, SEQ_LEN, IN_SK), jnp.float32)
    ss_labels = jnp.tile(jnp.arange(K, dtype=jnp.int32)[None, :], (B, 1))

    forward = jax.jit(partial(trxos_forward, out_dim=OUT_DIM))
    out = forward(params, ss_sk, ss_labels, query_sk, tuples)
    jax.block_until_ready((out["logits"], out["is_true"], out["support_features"]))

    assert out["logits"].shape == (B, K)
    assert out["is_true"].shape == (B, 1)
    assert out["support_features"].shape == (B, K, SEQ_LEN, FEAT)
    assert len(out["prototypes"]) == K and out["prototypes"][0].shape == (B, 1, T, OUT_DIM)
    print("KERNEL_OK")
</pallas_src>

<mosaic_0001>
module attributes {stable_mosaic.version = 11 : i64} {
  func.func @_mlp_kernel(%arg0: memref<64x15xf32, #tpu.memory_space<vmem>>, %arg1: memref<15x30xbf16, #tpu.memory_space<vmem>>, %arg2: memref<1x30xf32, #tpu.memory_space<vmem>>, %arg3: memref<30x256xbf16, #tpu.memory_space<vmem>>, %arg4: memref<1x256xf32, #tpu.memory_space<vmem>>, %arg5: memref<64x256xf32, #tpu.memory_space<vmem>>) attributes {dimension_semantics = [], scalar_prefetch = 0 : i64, scratch_operands = 0 : i64, tpu.core_type = #tpu.core_type<tc>} {
    %c0 = arith.constant 0 : index
    %c0_0 = arith.constant 0 : index
    %0 = vector.load %arg0[%c0, %c0_0] : memref<64x15xf32, #tpu.memory_space<vmem>>, vector<64x15xf32>
    %1 = arith.truncf %0 : vector<64x15xf32> to vector<64x15xbf16>
    %c0_1 = arith.constant 0 : index
    %c0_2 = arith.constant 0 : index
    %2 = vector.load %arg1[%c0_1, %c0_2] : memref<15x30xbf16, #tpu.memory_space<vmem>>, vector<15x30xbf16>
    %cst = arith.constant dense<0.000000e+00> : vector<64x30xf32>
    %3 = tpu.matmul %1, %2, %cst {dimension_numbers = #tpu.dot_dimension_numbers<[1], [0], [0], [1], [0, 0, 1, 1], [], []>} : vector<64x15xbf16>, vector<15x30xbf16>, vector<64x30xf32> -> vector<64x30xf32>
    %c0_3 = arith.constant 0 : index
    %c0_4 = arith.constant 0 : index
    %4 = vector.load %arg2[%c0_3, %c0_4] : memref<1x30xf32, #tpu.memory_space<vmem>>, vector<1x30xf32>
    %5 = vector.broadcast %4 : vector<1x30xf32> to vector<64x30xf32>
    %6 = arith.addf %3, %5 : vector<64x30xf32>
    %cst_5 = arith.constant 0.000000e+00 : f32
    %7 = vector.broadcast %cst_5 : f32 to vector<64x30xf32>
    %8 = arith.maximumf %6, %7 : vector<64x30xf32>
    %9 = arith.truncf %8 : vector<64x30xf32> to vector<64x30xbf16>
    %c0_6 = arith.constant 0 : index
    %c0_7 = arith.constant 0 : index
    %10 = vector.load %arg3[%c0_6, %c0_7] : memref<30x256xbf16, #tpu.memory_space<vmem>>, vector<30x256xbf16>
    %cst_8 = arith.constant dense<0.000000e+00> : vector<64x256xf32>
    %11 = tpu.matmul %9, %10, %cst_8 {dimension_numbers = #tpu.dot_dimension_numbers<[1], [0], [0], [1], [0, 0, 1, 1], [], []>} : vector<64x30xbf16>, vector<30x256xbf16>, vector<64x256xf32> -> vector<64x256xf32>
    %c0_9 = arith.constant 0 : index
    %c0_10 = arith.constant 0 : index
    %12 = vector.load %arg4[%c0_9, %c0_10] : memref<1x256xf32, #tpu.memory_space<vmem>>, vector<1x256xf32>
    %13 = vector.broadcast %12 : vector<1x256xf32> to vector<64x256xf32>
    %14 = arith.addf %11, %13 : vector<64x256xf32>
    %cst_11 = arith.constant 0.000000e+00 : f32
    %15 = vector.broadcast %cst_11 : f32 to vector<64x256xf32>
    %16 = arith.maximumf %14, %15 : vector<64x256xf32>
    %c0_12 = arith.constant 0 : index
    %c0_13 = arith.constant 0 : index
    %17 = vector.load %arg5[%c0_12, %c0_13] : memref<64x256xf32, #tpu.memory_space<vmem>>, vector<64x256xf32>
    tpu.vector_store %arg5[%c0_12, %c0_13], %16 {strides = array<i32>} : memref<64x256xf32, #tpu.memory_space<vmem>>, vector<64x256xf32>,
    return
  }
}

module attributes {stable_mosaic.version = 11 : i64} {
  func.func @_tct_kernel(%arg0: i32, %arg1: memref<1x28x512xbf16, #tpu.memory_space<vmem>>, %arg2: memref<1x3x28x512xbf16, #tpu.memory_space<vmem>>, %arg3: memref<512x128xbf16, #tpu.memory_space<vmem>>, %arg4: memref<1x128xf32, #tpu.memory_space<vmem>>, %arg5: memref<1x64xf32, #tpu.memory_space<vmem>>, %arg6: memref<1x64xf32, #tpu.memory_space<vmem>>, %arg7: memref<1x1x3xf32, #tpu.memory_space<vmem>>, %arg8: memref<1x3x28x64xf32, #tpu.memory_space<vmem>>, %arg9: memref<1x3x28x64xf32, #tpu.memory_space<vmem>>) attributes {dimension_semantics = [#tpu.dimension_semantics<parallel>], iteration_bounds = array<i64: 2>, scalar_prefetch = 0 : i64, scratch_operands = 0 : i64, tpu.core_type = #tpu.core_type<tc>, window_params = [{transform_indices = @transform_0, window_bounds = array<i64: 1, 28, 512>}, {transform_indices = @transform_1, window_bounds = array<i64: 1, 3, 28, 512>}, {pipeline_mode = #tpu.pipeline_mode<synchronous>, transform_indices = @transform_2, window_bounds = array<i64: 512, 128>}, {pipeline_mode = #tpu.pipeline_mode<synchronous>, transform_indices = @transform_3, window_bounds = array<i64: 1, 128>}, {pipeline_mode = #tpu.pipeline_mode<synchronous>, transform_indices = @transform_4, window_bounds = array<i64: 1, 64>}, {pipeline_mode = #tpu.pipeline_mode<synchronous>, transform_indices = @transform_5, window_bounds = array<i64: 1, 64>}, {transform_indices = @transform_6, window_bounds = array<i64: 1, 1, 3>}, {transform_indices = @transform_7, window_bounds = array<i64: 1, 3, 28, 64>}, {transform_indices = @transform_8, window_bounds = array<i64: 1, 3, 28, 64>}]} {
    %c0 = arith.constant 0 : index
    %c0_0 = arith.constant 0 : index
    %0 = vector.load %arg3[%c0, %c0_0] : memref<512x128xbf16, #tpu.memory_space<vmem>>, vector<512x128xbf16>
    %c0_1 = arith.constant 0 : index
    %c0_2 = arith.constant 0 : index
    %1 = vector.load %arg4[%c0_1, %c0_2] : memref<1x128xf32, #tpu.memory_space<vmem>>, vector<1x128xf32>
    %c0_3 = arith.constant 0 : index
    %c0_4 = arith.constant 0 : index
    %2 = vector.load %arg5[%c0_3, %c0_4] : memref<1x64xf32, #tpu.memory_space<vmem>>, vector<1x64xf32>
    %c0_5 = arith.constant 0 : index
    %c0_6 = arith.constant 0 : index
    %3 = vector.load %arg6[%c0_5, %c0_6] : memref<1x64xf32, #tpu.memory_space<vmem>>, vector<1x64xf32>
    %c0_7 = arith.constant 0 : index
    %c0_8 = arith.constant 0 : index
    %c0_9 = arith.constant 0 : index
    %4 = vector.load %arg1[%c0_7, %c0_8, %c0_9] : memref<1x28x512xbf16, #tpu.memory_space<vmem>>, vector<1x28x512xbf16>
    %5 = vector.shape_cast %4 : vector<1x28x512xbf16> to vector<28x512xbf16>
    %cst = arith.constant dense<0.000000e+00> : vector<28x128xf32>
    %6 = tpu.matmul %5, %0, %cst {dimension_numbers = #tpu.dot_dimension_numbers<[1], [0], [0], [1], [0, 0, 1, 1], [], []>} : vector<28x512xbf16>, vector<512x128xbf16>, vector<28x128xf32> -> vector<28x128xf32>
    %7 = vector.broadcast %1 : vector<1x128xf32> to vector<28x128xf32>
    %8 = arith.addf %6, %7 : vector<28x128xf32>
    %9 = vector.extract_strided_slice %8 {offsets = [0, 0], sizes = [28, 64], strides = [1, 1]} : vector<28x128xf32> to vector<28x64xf32>
    %10 = vector.extract_strided_slice %8 {offsets = [0, 64], sizes = [28, 64], strides = [1, 1]} : vector<28x128xf32> to vector<28x64xf32>
    %cst_10 = arith.constant dense<0.000000e+00> : vector<28xf32>
    %11 = vector.multi_reduction <add>, %9, %cst_10 [1] : vector<28x64xf32> to vector<28xf32>
    %12 = vector.shape_cast %11 : vector<28xf32> to vector<28x1xf32>
    %cst_11 = arith.constant 6.400000e+01 : f32
    %13 = vector.broadcast %cst_11 : f32 to vector<28x1xf32>
    %14 = arith.divf %12, %13 : vector<28x1xf32>
    %15 = vector.broadcast %14 : vector<28x1xf32> to vector<28x64xf32>
    %16 = arith.subf %9, %15 : vector<28x64xf32>
    %17 = arith.mulf %16, %16 : vector<28x64xf32>
    %cst_12 = arith.constant dense<0.000000e+00> : vector<28xf32>
    %18 = vector.multi_reduction <add>, %17, %cst_12 [1] : vector<28x64xf32> to vector<28xf32>
    %19 = vector.shape_cast %18 : vector<28xf32> to vector<28x1xf32>
    %cst_13 = arith.constant 6.400000e+01 : f32
    %20 = vector.broadcast %cst_13 : f32 to vector<28x1xf32>
    %21 = arith.divf %19, %20 : vector<28x1xf32>
    %cst_14 = arith.constant 9.99999974E-6 : f32
    %22 = vector.broadcast %cst_14 : f32 to vector<28x1xf32>
    %23 = arith.addf %21, %22 : vector<28x1xf32>
    %24 = math.rsqrt %23 : vector<28x1xf32>
    %25 = vector.broadcast %24 : vector<28x1xf32> to vector<28x64xf32>
    %26 = arith.mulf %16, %25 : vector<28x64xf32>
    %27 = vector.broadcast %2 : vector<1x64xf32> to vector<28x64xf32>
    %28 = arith.mulf %26, %27 : vector<28x64xf32>
    %29 = vector.broadcast %3 : vector<1x64xf32> to vector<28x64xf32>
    %30 = arith.addf %28, %29 : vector<28x64xf32>
    %c0_15 = arith.constant 0 : index
    %c0_16 = arith.constant 0 : index
    %c0_17 = arith.constant 0 : index
    %c0_18 = arith.constant 0 : index
    %31 = vector.load %arg2[%c0_15, %c0_16, %c0_17, %c0_18] : memref<1x3x28x512xbf16, #tpu.memory_space<vmem>>, vector<1x1x28x512xbf16>
    %32 = vector.shape_cast %31 : vector<1x1x28x512xbf16> to vector<28x512xbf16>
    %cst_19 = arith.constant dense<0.000000e+00> : vector<28x128xf32>
    %33 = tpu.matmul %32, %0, %cst_19 {dimension_numbers = #tpu.dot_dimension_numbers<[1], [0], [0], [1], [0, 0, 1, 1], [], []>} : vector<28x512xbf16>, vector<512x128xbf16>, vector<28x128xf32> -> vector<28x128xf32>
    %34 = vector.broadcast %1 : vector<1x128xf32> to vector<28x128xf32>
    %35 = arith.addf %33, %34 : vector<28x128xf32>
    %36 = vector.extract_strided_slice %35 {offsets = [0, 0], sizes = [28, 64], strides = [1, 1]} : vector<28x128xf32> to vector<28x64xf32>
    %37 = vector.extract_strided_slice %35 {offsets = [0, 64], sizes = [28, 64], strides = [1, 1]} : vector<28x128xf32> to vector<28x64xf32>
    %cst_20 = arith.constant dense<0.000000e+00> : vector<28xf32>
    %38 = vector.multi_reduction <add>, %36, %cst_20 [1] : vector<28x64xf32> to vector<28xf32>
    %39 = vector.shape_cast %38 : vector<28xf32> to vector<28x1xf32>
    %cst_21 = arith.constant 6.400000e+01 : f32
    %40 = vector.broadcast %cst_21 : f32 to vector<28x1xf32>
    %41 = arith.divf %39, %40 : vector<28x1xf32>
    %42 = vector.broadcast %41 : vector<28x1xf32> to vector<28x64xf32>
    %43 = arith.subf %36, %42 : vector<28x64xf32>
    %44 = arith.mulf %43, %43 : vector<28x64xf32>
    %cst_22 = arith.constant dense<0.000000e+00> : vector<28xf32>
    %45 = vector.multi_reduction <add>, %44, %cst_22 [1] : vector<28x64xf32> to vector<28xf32>
    %46 = vector.shape_cast %45 : vector<28xf32> to vector<28x1xf32>
    %cst_23 = arith.constant 6.400000e+01 : f32
    %47 = vector.broadcast %cst_23 : f32 to vector<28x1xf32>
    %48 = arith.divf %46, %47 : vector<28x1xf32>
    %cst_24 = arith.constant 9.99999974E-6 : f32
    %49 = vector.broadcast %cst_24 : f32 to vector<28x1xf32>
    %50 = arith.addf %48, %49 : vector<28x1xf32>
    %51 = math.rsqrt %50 : vector<28x1xf32>
    %52 = vector.broadcast %51 : vector<28x1xf32> to vector<28x64xf32>
    %53 = arith.mulf %43, %52 : vector<28x64xf32>
    %54 = vector.broadcast %2 : vector<1x64xf32> to vector<28x64xf32>
    %55 = arith.mulf %53, %54 : vector<28x64xf32>
    %56 = vector.broadcast %3 : vector<1x64xf32> to vector<28x64xf32>
    %57 = arith.addf %55, %56 : vector<28x64xf32>
    %58 = tpu.transpose %57, [1, 0] : vector<28x64xf32> -> vector<64x28xf32>
    %cst_25 = arith.constant dense<0.000000e+00> : vector<28x28xf32>
    %59 = tpu.matmul %30, %58, %cst_25 {dimension_numbers = #tpu.dot_dimension_numbers<[1], [0], [0], [1], [0, 0, 1, 1], [], []>} : vector<28x64xf32>, vector<64x28xf32>, vector<28x28xf32> -> vector<28x28xf32>
    %cst_26 = arith.constant 1.250000e-01 : f32
    %60 = vector.broadcast %cst_26 : f32 to vector<28x28xf32>
    %61 = arith.mulf %59, %60 : vector<28x28xf32>
    %cst_27 = arith.constant dense<0xFF800000> : vector<28xf32>
    %62 = vector.multi_reduction <maximumf>, %61, %cst_27 [0] : vector<28x28xf32> to vector<28xf32>
    %63 = vector.shape_cast %62 : vector<28xf32> to vector<1x28xf32>
    %64 = vector.broadcast %63 : vector<1x28xf32> to vector<28x28xf32>
    %65 = arith.subf %61, %64 : vector<28x28xf32>
    %66 = math.exp %65 : vector<28x28xf32>
    %cst_28 = arith.constant dense<0.000000e+00> : vector<28xf32>
    %67 = vector.multi_reduction <add>, %66, %cst_28 [0] : vector<28x28xf32> to vector<28xf32>
    %68 = vector.shape_cast %67 : vector<28xf32> to vector<1x28xf32>
    %69 = tpu.reciprocal %68 {approx = true} : vector<1x28xf32> -> vector<1x28xf32>
    %70 = vector.broadcast %69 : vector<1x28xf32> to vector<28x28xf32>
    %71 = arith.mulf %66, %70 : vector<28x28xf32>
    %cst_29 = arith.constant dense<0.000000e+00> : vector<28x64xf32>
    %72 = tpu.matmul %71, %37, %cst_29 {dimension_numbers = #tpu.dot_dimension_numbers<[1], [0], [0], [1], [0, 0, 1, 1], [], []>} : vector<28x28xf32>, vector<28x64xf32>, vector<28x64xf32> -> vector<28x64xf32>
    %73 = arith.subf %10, %72 : vector<28x64xf32>
    %c0_30 = arith.constant 0 : index
    %c0_31 = arith.constant 0 : index
    %c0_32 = arith.constant 0 : index
    %c0_33 = arith.constant 0 : index
    %74 = vector.load %arg8[%c0_30, %c0_31, %c0_32, %c0_33] : memref<1x3x28x64xf32, #tpu.memory_space<vmem>>, vector<1x1x28x64xf32>
    %75 = vector.shape_cast %74 : vector<1x1x28x64xf32> to vector<28x64xf32>
    %76 = vector.shape_cast %73 : vector<28x64xf32> to vector<1x1x28x64xf32>
    tpu.vector_store %arg8[%c0_30, %c0_31, %c0_32, %c0_33], %76 {strides = array<i32>} : memref<1x3x28x64xf32, #tpu.memory_space<vmem>>, vector<1x1x28x64xf32>,
    %c0_34 = arith.constant 0 : index
    %c0_35 = arith.constant 0 : index
    %c0_36 = arith.constant 0 : index
    %c0_37 = arith.constant 0 : index
    %77 = vector.load %arg9[%c0_34, %c0_35, %c0_36, %c0_37] : memref<1x3x28x64xf32, #tpu.memory_space<vmem>>, vector<1x1x28x64xf32>
    %78 = vector.shape_cast %77 : vector<1x1x28x64xf32> to vector<28x64xf32>
    %79 = vector.shape_cast %72 : vector<28x64xf32> to vector<1x1x28x64xf32>
    tpu.vector_store %arg9[%c0_34, %c0_35, %c0_36, %c0_37], %79 {strides = array<i32>} : memref<1x3x28x64xf32, #tpu.memory_space<vmem>>, vector<1x1x28x64xf32>,
    %80 = arith.mulf %73, %73 : vector<28x64xf32>
    %cst_38 = arith.constant dense<0.000000e+00> : vector<28xf32>
    %81 = vector.multi_reduction <add>, %80, %cst_38 [1] : vector<28x64xf32> to vector<28xf32>
    %82 = vector.shape_cast %81 : vector<28xf32> to vector<28x1xf32>
    %cst_39 = arith.constant dense<0.000000e+00> : vector<1xf32>
    %83 = vector.multi_reduction <add>, %82, %cst_39 [0] : vector<28x1xf32> to vector<1xf32>
    %84 = vector.shape_cast %83 : vector<1xf32> to vector<1x1xf32>
    %cst_40 = arith.constant -0.0357142873 : f32
    %85 = vector.broadcast %cst_40 : f32 to vector<1x1xf32>
    %86 = arith.mulf %84, %85 : vector<1x1xf32>
    %c0_41 = arith.constant 0 : index
    %c1 = arith.constant 1 : index
    %c0_42 = arith.constant 0 : index
    %c0_43 = arith.constant 0 : index
    %87 = vector.load %arg2[%c0_41, %c1, %c0_42, %c0_43] : memref<1x3x28x512xbf16, #tpu.memory_space<vmem>>, vector<1x1x28x512xbf16>
    %88 = vector.shape_cast %87 : vector<1x1x28x512xbf16> to vector<28x512xbf16>
    %cst_44 = arith.constant dense<0.000000e+00> : vector<28x128xf32>
    %89 = tpu.matmul %88, %0, %cst_44 {dimension_numbers = #tpu.dot_dimension_numbers<[1], [0], [0], [1], [0, 0, 1, 1], [], []>} : vector<28x512xbf16>, vector<512x128xbf16>, vector<28x128xf32> -> vector<28x128xf32>
    %90 = vector.broadcast %1 : vector<1x128xf32> to vector<28x128xf32>
    %91 = arith.addf %89, %90 : vector<28x128xf32>
    %92 = vector.extract_strided_slice %91 {offsets = [0, 0], sizes = [28, 64], strides = [1, 1]} : vector<28x128xf32> to vector<28x64xf32>
    %93 = vector.extract_strided_slice %91 {offsets = [0, 64], sizes = [28, 64], strides = [1, 1]} : vector<28x128xf32> to vector<28x64xf32>
    %cst_45 = arith.constant dense<0.000000e+00> : vector<28xf32>
    %94 = vector.multi_reduction <add>, %92, %cst_45 [1] : vector<28x64xf32> to vector<28xf32>
    %95 = vector.shape_cast %94 : vector<28xf32> to vector<28x1xf32>
    %cst_46 = arith.constant 6.400000e+01 : f32
    %96 = vector.broadcast %cst_46 : f32 to vector<28x1xf32>
    %97 = arith.divf %95, %96 : vector<28x1xf32>
    %98 = vector.broadcast %97 : vector<28x1xf32> to vector<28x64xf32>
    %99 = arith.subf %92, %98 : vector<28x64xf32>
    %100 = arith.mulf %99, %99 : vector<28x64xf32>
    %cst_47 = arith.constant dense<0.000000e+00> : vector<28xf32>
    %101 = vector.multi_reduction <add>, %100, %cst_47 [1] : vector<28x64xf32> to vector<28xf32>
    %102 = vector.shape_cast %101 : vector<28xf32> to vector<28x1xf32>
    %cst_48 = arith.constant 6.400000e+01 : f32
    %103 = vector.broadcast %cst_48 : f32 to vector<28x1xf32>
    %104 = arith.divf %102, %103 : vector<28x1xf32>
    %cst_49 = arith.constant 9.99999974E-6 : f32
    %105 = vector.broadcast %cst_49 : f32 to vector<28x1xf32>
    %106 = arith.addf %104, %105 : vector<28x1xf32>
    %107 = math.rsqrt %106 : vector<28x1xf32>
    %108 = vector.broadcast %107 : vector<28x1xf32> to vector<28x64xf32>
    %109 = arith.mulf %99, %108 : vector<28x64xf32>
    %110 = vector.broadcast %2 : vector<1x64xf32> to vector<28x64xf32>
    %111 = arith.mulf %109, %110 : vector<28x64xf32>
    %112 = vector.broadcast %3 : vector<1x64xf32> to vector<28x64xf32>
    %113 = arith.addf %111, %112 : vector<28x64xf32>
    %114 = tpu.transpose %113, [1, 0] : vector<28x64xf32> -> vector<64x28xf32>
    %cst_50 = arith.constant dense<0.000000e+00> : vector<28x28xf32>
    %115 = tpu.matmul %30, %114, %cst_50 {dimension_numbers = #tpu.dot_dimension_numbers<[1], [0], [0], [1], [0, 0, 1, 1], [], []>} : vector<28x64xf32>, vector<64x28xf32>, vector<28x28xf32> -> vector<28x28xf32>
    %cst_51 = arith.constant 1.250000e-01 : f32
    %116 = vector.broadcast %cst_51 : f32 to vector<28x28xf32>
    %117 = arith.mulf %115, %116 : vector<28x28xf32>
    %cst_52 = arith.constant dense<0xFF800000> : vector<28xf32>
    %118 = vector.multi_reduction <maximumf>, %117, %cst_52 [0] : vector<28x28xf32> to vector<28xf32>
    %119 = vector.shape_cast %118 : vector<28xf32> to vector<1x28xf32>
    %120 = vector.broadcast %119 : vector<1x28xf32> to vector<28x28xf32>
    %121 = arith.subf %117, %120 : vector<28x28xf32>
    %122 = math.exp %121 : vector<28x28xf32>
    %cst_53 = arith.constant dense<0.000000e+00> : vector<28xf32>
    %123 = vector.multi_reduction <add>, %122, %cst_53 [0] : vector<28x28xf32> to vector<28xf32>
    %124 = vector.shape_cast %123 : vector<28xf32> to vector<1x28xf32>
    %125 = tpu.reciprocal %124 {approx = true} : vector<1x28xf32> -> vector<1x28xf32>
    %126 = vector.broadcast %125 : vector<1x28xf32> to vector<28x28xf32>
    %127 = arith.mulf %122, %126 : vector<28x28xf32>
    %cst_54 = arith.constant dense<0.000000e+00> : vector<28x64xf32>
    %128 = tpu.matmul %127, %93, %cst_54 {dimension_numbers = #tpu.dot_dimension_numbers<[1], [0], [0], [1], [0, 0, 1, 1], [], []>} : vector<28x28xf32>, vector<28x64xf32>, vector<28x64xf32> -> vector<28x64xf32>
    %129 = arith.subf %10, %128 : vector<28x64xf32>
    %c0_55 = arith.constant 0 : index
    %c1_56 = arith.constant 1 : index
    %c0_57 = arith.constant 0 : index
    %c0_58 = arith.constant 0 : index
    %130 = vector.load %arg8[%c0_55, %c1_56, %c0_57, %c0_58] : memref<1x3x28x64xf32, #tpu.memory_space<vmem>>, vector<1x1x28x64xf32>
    %131 = vector.shape_cast %130 : vector<1x1x28x64xf32> to vector<28x64xf32>
    %132 = vector.shape_cast %129 : vector<28x64xf32> to vector<1x1x28x64xf32>
    tpu.vector_store %arg8[%c0_55, %c1_56, %c0_57, %c0_58], %132 {strides = array<i32>} : memref<1x3x28x64xf32, #tpu.memory_space<vmem>>, vector<1x1x28x64xf32>,
    %c0_59 = arith.constant 0 : index
    %c1_60 = arith.constant 1 : index
    %c0_61 = arith.constant 0 : index
    %c0_62 = arith.constant 0 : index
    %133 = vector.load %arg9[%c0_59, %c1_60, %c0_61, %c0_62] : memref<1x3x28x64xf32, #tpu.memory_space<vmem>>, vector<1x1x28x64xf32>
    %134 = vector.shape_cast %133 : vector<1x1x28x64xf32> to vector<28x64xf32>
    %135 = vector.shape_cast %128 : vector<28x64xf32> to vector<1x1x28x64xf32>
    tpu.vector_store %arg9[%c0_59, %c1_60, %c0_61, %c0_62], %135 {strides = array<i32>} : memref<1x3x28x64xf32, #tpu.memory_space<vmem>>, vector<1x1x28x64xf32>,
    %136 = arith.mulf %129, %129 : vector<28x64xf32>
    %cst_63 = arith.constant dense<0.000000e+00> : vector<28xf32>
    %137 = vector.multi_reduction <add>, %136, %cst_63 [1] : vector<28x64xf32> to vector<28xf32>
    %138 = vector.shape_cast %137 : vector<28xf32> to vector<28x1xf32>
    %cst_64 = arith.constant dense<0.000000e+00> : vector<1xf32>
    %139 = vector.multi_reduction <add>, %138, %cst_64 [0] : vector<28x1xf32> to vector<1xf32>
    %140 = vector.shape_cast %139 : vector<1xf32> to vector<1x1xf32>
    %cst_65 = arith.constant -0.0357142873 : f32
    %141 = vector.broadcast %cst_65 : f32 to vector<1x1xf32>
    %142 = arith.mulf %140, %141 : vector<1x1xf32>
    %c0_66 = arith.constant 0 : index
    %c2 = arith.constant 2 : index
    %c0_67 = arith.constant 0 : index
    %c0_68 = arith.constant 0 : index
    %143 = vector.load %arg2[%c0_66, %c2, %c0_67, %c0_68] : memref<1x3x28x512xbf16, #tpu.memory_space<vmem>>, vector<1x1x28x512xbf16>
    %144 = vector.shape_cast %143 : vector<1x1x28x512xbf16> to vector<28x512xbf16>
    %cst_69 = arith.constant dense<0.000000e+00> : vector<28x128xf32>
    %145 = tpu.matmul %144, %0, %cst_69 {dimension_numbers = #tpu.dot_dimension_numbers<[1], [0], [0], [1], [0, 0, 1, 1], [], []>} : vector<28x512xbf16>, vector<512x128xbf16>, vector<28x128xf32> -> vector<28x128xf32>
    %146 = vector.broadcast %1 : vector<1x128xf32> to vector<28x128xf32>
    %147 = arith.addf %145, %146 : vector<28x128xf32>
    %148 = vector.extract_strided_slice %147 {offsets = [0, 0], sizes = [28, 64], strides = [1, 1]} : vector<28x128xf32> to vector<28x64xf32>
    %149 = vector.extract_strided_slice %147 {offsets = [0, 64], sizes = [28, 64], strides = [1, 1]} : vector<28x128xf32> to vector<28x64xf32>
    %cst_70 = arith.constant dense<0.000000e+00> : vector<28xf32>
    %150 = vector.multi_reduction <add>, %148, %cst_70 [1] : vector<28x64xf32> to vector<28xf32>
    %151 = vector.shape_cast %150 : vector<28xf32> to vector<28x1xf32>
    %cst_71 = arith.constant 6.400000e+01 : f32
    %152 = vector.broadcast %cst_71 : f32 to vector<28x1xf32>
    %153 = arith.divf %151, %152 : vector<28x1xf32>
    %154 = vector.broadcast %153 : vector<28x1xf32> to vector<28x64xf32>
    %155 = arith.subf %148, %154 : vector<28x64xf32>
    %156 = arith.mulf %155, %155 : vector<28x64xf32>
    %cst_72 = arith.constant dense<0.000000e+00> : vector<28xf32>
    %157 = vector.multi_reduction <add>, %156, %cst_72 [1] : vector<28x64xf32> to vector<28xf32>
    %158 = vector.shape_cast %157 : vector<28xf32> to vector<28x1xf32>
    %cst_73 = arith.constant 6.400000e+01 : f32
    %159 = vector.broadcast %cst_73 : f32 to vector<28x1xf32>
    %160 = arith.divf %158, %159 : vector<28x1xf32>
    %cst_74 = arith.constant 9.99999974E-6 : f32
    %161 = vector.broadcast %cst_74 : f32 to vector<28x1xf32>
    %162 = arith.addf %160, %161 : vector<28x1xf32>
    %163 = math.rsqrt %162 : vector<28x1xf32>
    %164 = vector.broadcast %163 : vector<28x1xf32> to vector<28x64xf32>
    %165 = arith.mulf %155, %164 : vector<28x64xf32>
    %166 = vector.broadcast %2 : vector<1x64xf32> to vector<28x64xf32>
    %167 = arith.mulf %165, %166 : vector<28x64xf32>
    %168 = vector.broadcast %3 : vector<1x64xf32> to vector<28x64xf32>
    %169 = arith.addf %167, %168 : vector<28x64xf32>
    %170 = tpu.transpose %169, [1, 0] : vector<28x64xf32> -> vector<64x28xf32>
    %cst_75 = arith.constant dense<0.000000e+00> : vector<28x28xf32>
    %171 = tpu.matmul %30, %170, %cst_75 {dimension_numbers = #tpu.dot_dimension_numbers<[1], [0], [0], [1], [0, 0, 1, 1], [], []>} : vector<28x64xf32>, vector<64x28xf32>, vector<28x28xf32> -> vector<28x28xf32>
    %cst_76 = arith.constant 1.250000e-01 : f32
    %172 = vector.broadcast %cst_76 : f32 to vector<28x28xf32>
    %173 = arith.mulf %171, %172 : vector<28x28xf32>
    %cst_77 = arith.constant dense<0xFF800000> : vector<28xf32>
    %174 = vector.multi_reduction <maximumf>, %173, %cst_77 [0] : vector<28x28xf32> to vector<28xf32>
    %175 = vector.shape_cast %174 : vector<28xf32> to vector<1x28xf32>
    %176 = vector.broadcast %175 : vector<1x28xf32> to vector<28x28xf32>
    %177 = arith.subf %173, %176 : vector<28x28xf32>
    %178 = math.exp %177 : vector<28x28xf32>
    %cst_78 = arith.constant dense<0.000000e+00> : vector<28xf32>
    %179 = vector.multi_reduction <add>, %178, %cst_78 [0] : vector<28x28xf32> to vector<28xf32>
    %180 = vector.shape_cast %179 : vector<28xf32> to vector<1x28xf32>
    %181 = tpu.reciprocal %180 {approx = true} : vector<1x28xf32> -> vector<1x28xf32>
    %182 = vector.broadcast %181 : vector<1x28xf32> to vector<28x28xf32>
    %183 = arith.mulf %178, %182 : vector<28x28xf32>
    %cst_79 = arith.constant dense<0.000000e+00> : vector<28x64xf32>
    %184 = tpu.matmul %183, %149, %cst_79 {dimension_numbers = #tpu.dot_dimension_numbers<[1], [0], [0], [1], [0, 0, 1, 1], [], []>} : vector<28x28xf32>, vector<28x64xf32>, vector<28x64xf32> -> vector<28x64xf32>
    %185 = arith.subf %10, %184 : vector<28x64xf32>
    %c0_80 = arith.constant 0 : index
    %c2_81 = arith.constant 2 : index
    %c0_82 = arith.constant 0 : index
    %c0_83 = arith.constant 0 : index
    %186 = vector.load %arg8[%c0_80, %c2_81, %c0_82, %c0_83] : memref<1x3x28x64xf32, #tpu.memory_space<vmem>>, vector<1x1x28x64xf32>
    %187 = vector.shape_cast %186 : vector<1x1x28x64xf32> to vector<28x64xf32>
    %188 = vector.shape_cast %185 : vector<28x64xf32> to vector<1x1x28x64xf32>
    tpu.vector_store %arg8[%c0_80, %c2_81, %c0_82, %c0_83], %188 {strides = array<i32>} : memref<1x3x28x64xf32, #tpu.memory_space<vmem>>, vector<1x1x28x64xf32>,
    %c0_84 = arith.constant 0 : index
    %c2_85 = arith.constant 2 : index
    %c0_86 = arith.constant 0 : index
    %c0_87 = arith.constant 0 : index
    %189 = vector.load %arg9[%c0_84, %c2_85, %c0_86, %c0_87] : memref<1x3x28x64xf32, #tpu.memory_space<vmem>>, vector<1x1x28x64xf32>
    %190 = vector.shape_cast %189 : vector<1x1x28x64xf32> to vector<28x64xf32>
    %191 = vector.shape_cast %184 : vector<28x64xf32> to vector<1x1x28x64xf32>
    tpu.vector_store %arg9[%c0_84, %c2_85, %c0_86, %c0_87], %191 {strides = array<i32>} : memref<1x3x28x64xf32, #tpu.memory_space<vmem>>, vector<1x1x28x64xf32>,
    %192 = arith.mulf %185, %185 : vector<28x64xf32>
    %cst_88 = arith.constant dense<0.000000e+00> : vector<28xf32>
    %193 = vector.multi_reduction <add>, %192, %cst_88 [1] : vector<28x64xf32> to vector<28xf32>
    %194 = vector.shape_cast %193 : vector<28xf32> to vector<28x1xf32>
    %cst_89 = arith.constant dense<0.000000e+00> : vector<1xf32>
    %195 = vector.multi_reduction <add>, %194, %cst_89 [0] : vector<28x1xf32> to vector<1xf32>
    %196 = vector.shape_cast %195 : vector<1xf32> to vector<1x1xf32>
    %cst_90 = arith.constant -0.0357142873 : f32
    %197 = vector.broadcast %cst_90 : f32 to vector<1x1xf32>
    %198 = arith.mulf %196, %197 : vector<1x1xf32>
    %199 = tpu.concatenate %86, %142, %198 in 1 : vector<1x1xf32>, vector<1x1xf32>, vector<1x1xf32> -> vector<1x3xf32>
    %c0_91 = arith.constant 0 : index
    %c0_92 = arith.constant 0 : index
    %c0_93 = arith.constant 0 : index
    %200 = vector.load %arg7[%c0_91, %c0_92, %c0_93] : memref<1x1x3xf32, #tpu.memory_space<vmem>>, vector<1x1x3xf32>
    %201 = vector.shape_cast %200 : vector<1x1x3xf32> to vector<1x3xf32>
    %202 = vector.shape_cast %199 : vector<1x3xf32> to vector<1x1x3xf32>
    tpu.vector_store %arg7[%c0_91, %c0_92, %c0_93], %202 {strides = array<i32>} : memref<1x1x3xf32, #tpu.memory_space<vmem>>, vector<1x1x3xf32>,
    return
  }
  func.func @transform_0(%arg0: i32) -> (i32, i32, i32) {
    %c0_i32 = arith.constant 0 : i32
    %c0_i32_0 = arith.constant 0 : i32
    %c0_i32_1 = arith.constant 0 : i32
    return %arg0, %c0_i32, %c0_i32_0 : i32, i32, i32
  }
  func.func @transform_1(%arg0: i32) -> (i32, i32, i32, i32) {
    %c0_i32 = arith.constant 0 : i32
    %c0_i32_0 = arith.constant 0 : i32
    %c0_i32_1 = arith.constant 0 : i32
    %c0_i32_2 = arith.constant 0 : i32
    return %arg0, %c0_i32, %c0_i32_0, %c0_i32_1 : i32, i32, i32, i32
  }
  func.func @transform_2(%arg0: i32) -> (i32, i32) {
    %c0_i32 = arith.constant 0 : i32
    %c0_i32_0 = arith.constant 0 : i32
    %c0_i32_1 = arith.constant 0 : i32
    return %c0_i32, %c0_i32_0 : i32, i32
  }
  func.func @transform_3(%arg0: i32) -> (i32, i32) {
    %c0_i32 = arith.constant 0 : i32
    %c0_i32_0 = arith.constant 0 : i32
    %c0_i32_1 = arith.constant 0 : i32
    return %c0_i32, %c0_i32_0 : i32, i32
  }
  func.func @transform_4(%arg0: i32) -> (i32, i32) {
    %c0_i32 = arith.constant 0 : i32
    %c0_i32_0 = arith.constant 0 : i32
    %c0_i32_1 = arith.constant 0 : i32
    return %c0_i32, %c0_i32_0 : i32, i32
  }
  func.func @transform_5(%arg0: i32) -> (i32, i32) {
    %c0_i32 = arith.constant 0 : i32
    %c0_i32_0 = arith.constant 0 : i32
    %c0_i32_1 = arith.constant 0 : i32
    return %c0_i32, %c0_i32_0 : i32, i32
  }
  func.func @transform_6(%arg0: i32) -> (i32, i32, i32) {
    %c0_i32 = arith.constant 0 : i32
    %c0_i32_0 = arith.constant 0 : i32
    %c0_i32_1 = arith.constant 0 : i32
    return %arg0, %c0_i32, %c0_i32_0 : i32, i32, i32
  }
  func.func @transform_7(%arg0: i32) -> (i32, i32, i32, i32) {
    %c0_i32 = arith.constant 0 : i32
    %c0_i32_0 = arith.constant 0 : i32
    %c0_i32_1 = arith.constant 0 : i32
    %c0_i32_2 = arith.constant 0 : i32
    return %arg0, %c0_i32, %c0_i32_0, %c0_i32_1 : i32, i32, i32, i32
  }
  func.func @transform_8(%arg0: i32) -> (i32, i32, i32, i32) {
    %c0_i32 = arith.constant 0 : i32
    %c0_i32_0 = arith.constant 0 : i32
    %c0_i32_1 = arith.constant 0 : i32
    %c0_i32_2 = arith.constant 0 : i32
    return %arg0, %c0_i32, %c0_i32_0, %c0_i32_1 : i32, i32, i32, i32
  }
}

module attributes {stable_mosaic.version = 11 : i64} {
  func.func @_disc_kernel(%arg0: memref<2x1792xbf16, #tpu.memory_space<vmem>>, %arg1: memref<1792x256xbf16, #tpu.memory_space<vmem>>, %arg2: memref<1x256xf32, #tpu.memory_space<vmem>>, %arg3: memref<256x64xbf16, #tpu.memory_space<vmem>>, %arg4: memref<1x64xf32, #tpu.memory_space<vmem>>, %arg5: memref<64x1xbf16, #tpu.memory_space<vmem>>, %arg6: memref<1x1xf32, #tpu.memory_space<vmem>>, %arg7: memref<2x1xf32, #tpu.memory_space<vmem>>) attributes {dimension_semantics = [], scalar_prefetch = 0 : i64, scratch_operands = 0 : i64, tpu.core_type = #tpu.core_type<tc>} {
    %c0 = arith.constant 0 : index
    %c0_0 = arith.constant 0 : index
    %0 = vector.load %arg0[%c0, %c0_0] : memref<2x1792xbf16, #tpu.memory_space<vmem>>, vector<2x1792xbf16>
    %c0_1 = arith.constant 0 : index
    %c0_2 = arith.constant 0 : index
    %1 = vector.load %arg1[%c0_1, %c0_2] : memref<1792x256xbf16, #tpu.memory_space<vmem>>, vector<1792x256xbf16>
    %cst = arith.constant dense<0.000000e+00> : vector<2x256xf32>
    %2 = tpu.matmul %0, %1, %cst {dimension_numbers = #tpu.dot_dimension_numbers<[1], [0], [0], [1], [0, 0, 1, 1], [], []>} : vector<2x1792xbf16>, vector<1792x256xbf16>, vector<2x256xf32> -> vector<2x256xf32>
    %c0_3 = arith.constant 0 : index
    %c0_4 = arith.constant 0 : index
    %3 = vector.load %arg2[%c0_3, %c0_4] : memref<1x256xf32, #tpu.memory_space<vmem>>, vector<1x256xf32>
    %4 = vector.broadcast %3 : vector<1x256xf32> to vector<2x256xf32>
    %5 = arith.addf %2, %4 : vector<2x256xf32>
    %cst_5 = arith.constant 0.000000e+00 : f32
    %6 = vector.broadcast %cst_5 : f32 to vector<2x256xf32>
    %7 = arith.maximumf %5, %6 : vector<2x256xf32>
    %8 = arith.truncf %7 : vector<2x256xf32> to vector<2x256xbf16>
    %c0_6 = arith.constant 0 : index
    %c0_7 = arith.constant 0 : index
    %9 = vector.load %arg3[%c0_6, %c0_7] : memref<256x64xbf16, #tpu.memory_space<vmem>>, vector<256x64xbf16>
    %cst_8 = arith.constant dense<0.000000e+00> : vector<2x64xf32>
    %10 = tpu.matmul %8, %9, %cst_8 {dimension_numbers = #tpu.dot_dimension_numbers<[1], [0], [0], [1], [0, 0, 1, 1], [], []>} : vector<2x256xbf16>, vector<256x64xbf16>, vector<2x64xf32> -> vector<2x64xf32>
    %c0_9 = arith.constant 0 : index
    %c0_10 = arith.constant 0 : index
    %11 = vector.load %arg4[%c0_9, %c0_10] : memref<1x64xf32, #tpu.memory_space<vmem>>, vector<1x64xf32>
    %12 = vector.broadcast %11 : vector<1x64xf32> to vector<2x64xf32>
    %13 = arith.addf %10, %12 : vector<2x64xf32>
    %cst_11 = arith.constant 0.000000e+00 : f32
    %14 = vector.broadcast %cst_11 : f32 to vector<2x64xf32>
    %15 = arith.maximumf %13, %14 : vector<2x64xf32>
    %16 = arith.truncf %15 : vector<2x64xf32> to vector<2x64xbf16>
    %c0_12 = arith.constant 0 : index
    %c0_13 = arith.constant 0 : index
    %17 = vector.load %arg5[%c0_12, %c0_13] : memref<64x1xbf16, #tpu.memory_space<vmem>>, vector<64x1xbf16>
    %cst_14 = arith.constant dense<0.000000e+00> : vector<2x1xf32>
    %18 = tpu.matmul %16, %17, %cst_14 {dimension_numbers = #tpu.dot_dimension_numbers<[1], [0], [0], [1], [0, 0, 1, 1], [], []>} : vector<2x64xbf16>, vector<64x1xbf16>, vector<2x1xf32> -> vector<2x1xf32>
    %c0_15 = arith.constant 0 : index
    %c0_16 = arith.constant 0 : index
    %19 = vector.load %arg6[%c0_15, %c0_16] : memref<1x1xf32, #tpu.memory_space<vmem>>, vector<1x1xf32>
    %20 = vector.broadcast %19 : vector<1x1xf32> to vector<2x1xf32>
    %21 = arith.addf %18, %20 : vector<2x1xf32>
    %cst_17 = arith.constant 0.000000e+00 : f32
    %22 = vector.broadcast %cst_17 : f32 to vector<2x1xf32>
    %23 = arith.subf %22, %21 : vector<2x1xf32>
    %24 = math.exp %23 : vector<2x1xf32>
    %cst_18 = arith.constant 1.000000e+00 : f32
    %25 = vector.broadcast %cst_18 : f32 to vector<2x1xf32>
    %26 = arith.addf %25, %24 : vector<2x1xf32>
    %cst_19 = arith.constant 1.000000e+00 : f32
    %27 = vector.broadcast %cst_19 : f32 to vector<2x1xf32>
    %28 = arith.divf %27, %26 : vector<2x1xf32>
    %c0_20 = arith.constant 0 : index
    %c0_21 = arith.constant 0 : index
    %29 = vector.load %arg7[%c0_20, %c0_21] : memref<2x1xf32, #tpu.memory_space<vmem>>, vector<2x1xf32>
    tpu.vector_store %arg7[%c0_20, %c0_21], %28 {strides = array<i32>} : memref<2x1xf32, #tpu.memory_space<vmem>>, vector<2x1xf32>,
    return
  }
}

</mosaic_0001>

<bundles_post_ra>
// kernel: trxos_forward.3
= control target key start
LH: loop header
LB: loop body
LE: loop exit
PB: predicated region body
PF: predicated region fallthrough
CT: control target
= control target key end

     0   :  { %vm60_vm0 = vcmask 1046528   ;;  %vm61_vm1 = vcmask 1047552   ;;  %v349_v1 = vmov 65535   ;;  %vm47_vm2 = vcmask 121856   ;;  %s486_s1 = inlined_call_operand.vmem [shape: bf16[15,30], index: 1, kind: input, shape index: {}]   ;;  %s487_s0 = inlined_call_operand.vmem [shape: f32[64,15], index: 0, kind: input, shape index: {}]   ;;  %s488_s3 = inlined_call_operand.vmem [shape: bf16[30,256], index: 3, kind: input, shape index: {}]   ;;  %s489_s2 = inlined_call_operand.vmem [shape: f32[1,30], index: 2, kind: input, shape index: {}]   ;;  %s490_s4 = inlined_call_operand.vmem [shape: f32[1,256], index: 4, kind: input, shape index: {}]   ;;  %s491_s5 = inlined_call_operand.vmem [shape: f32[64,256], index: 5, kind: output, shape index: {}]  }
   0x1   :  { %v342_v0 = vld [vmem:[%s486_s1] sm:$0xff]   ;;  %v62_v2 = vsel %vm60_vm0, 4294967295, %v349_v1  ;;  %v22_v5 = vld [vmem:[%s487_s0 + $0x8] sm:$0xff]  ;;  %v23_v6 = vld [vmem:[%s487_s0 + $0x10] sm:$0xff]  ;;  %v350_v22 = vmov 0   ;;  %vm178_vm3 = vcmask 244736   ;;  %v150_v52 = vlaneseq }
   0x2   :  { %v63_v3 = vsel %vm61_vm1, %v62_v2, 0  ;;  %v21_v4 = vld [vmem:[%s487_s0] sm:$0xff]  ;;  %v24_v9 = vld [vmem:[%s487_s0 + $0x18] sm:$0xff]  ;;  %v26_v11 = vld [vmem:[%s487_s0 + $0x28] sm:$0xff]  ;;  %239 = vmatprep.mubr.bf16.mxu1 %v350_v22 }
   0x3   :  { %v65_v7 = vand.u32 %v342_v0, %v63_v3  ;;  %v29_v8 = vpack.c.bf16 %v22_v5, %v21_v4  ;;  %v25_v10 = vld [vmem:[%s487_s0 + $0x20] sm:$0xff]  ;;  %v30_v12 = vpack.c.bf16 %v24_v9, %v23_v6  ;;  %v27_v14 = vld [vmem:[%s487_s0 + $0x30] sm:$0xff]  ;;  %v28_v15 = vld [vmem:[%s487_s0 + $0x38] sm:$0xff]  ;;  %v151_v53 = vshrl.u32 %v150_v52, 7 }
   0x4   :  { %v31_v13 = vpack.c.bf16 %v26_v11, %v25_v10  ;;  %v32_v16 = vpack.c.bf16 %v28_v15, %v27_v14  ;;  %v343_v17 = vld [vmem:[%s488_s3 + $0x14] ss:$8 sps:$4 sm:$0x7f]   ;;  %v345_v18 = vld [vmem:[%s488_s3 + $0x10] ss:$8 sps:$4 sm:$0x7f]  }
   0x5   :  { %326 = vmatprep.subr.bf16.mxu0 %v65_v7  ;;  %328 = vmatprep.mubr.msk.bf16.mxu0 %vm47_vm2, %v29_v8  ;;  %v192_v19 = vsel %vm60_vm0, %v345_v18, 0  ;;  %v346_v20 = vld [vmem:[%s488_s3 + $0x4] ss:$8 sps:$4 sm:$0xff]   ;;  %v348_v21 = vld [vmem:[%s488_s3] ss:$8 sps:$4 sm:$0xff]   ;;  %v152_v54 = vsub.s32 0, %v151_v53 }
   0x6   :  { %327 = vmatpush3.bf16.msra.mxu0 %v65_v7  ;;  %336 = vmatprep.subr.msk.bf16.mxu1 %vm60_vm0, %v343_v17  ;;  %v306_v24 = vld [vmem:[%s489_s2] ss:$0 sm:$0xff]  ;;  %v156_v56 = vsub.s32 1, %v151_v53 }
   0x7   :  { %316 = vmatprep.subr.msk.bf16.mxu0 %vm60_vm0, %v343_v17  ;;  %338 = vmatpush1.bf16.msra.mxu1 %v192_v19  ;;  %v148_v55 = vld [vmem:[%s490_s4] sm:$0x3] }
   0x8   :  { %337 = vmatprep.subr.bf16.mxu1 %v346_v20  ;;  %v153_v57 = vrot.slane %v148_v55, %v152_v54  ;;  %v157_v58 = vrot.slane %v148_v55, %v156_v56 }
   0x9   :  { %329 = vmatmul.mubr.msk.bf16.vlgmr.msra.gmra.mxu0 %vm47_vm2, %v30_v12 }
   0xa   :  { %332 = vmatprep.mubr.msk.bf16.mxu0 %vm47_vm2, %v31_v13  ;;  %210 = vmatpush1.bf16.msra.mxu0 %v192_v19 }
   0xb   :  { %211 = vmatprep.subr.bf16.mxu0 %v346_v20  ;;  %339 = vmatpush1.bf16.msra.mxu1 %v348_v21 }
   0xe   :  { %212 = vmatpush1.bf16.msra.mxu0 %v348_v21 }
  0x11   :  { %333 = vmatmul.mubr.msk.bf16.gmra.mxu0 %vm47_vm2, %v32_v16 }
  0x12   :  { %229 = vmatprep.mubr.bf16.mxu0 %v350_v22 }
  0xc9   :  { %v330_v23 = vpop.f32.mrf.mxu0 }
  0xca   :  { %v110_v26 = vadd.f32 %v330_v23, %v306_v24 }
  0xcb   :  { %v101_v25 = vpop.f32.mrf.mxu0 }
  0xcc   :  { %v102_v28 = vadd.f32 %v306_v24, %v101_v25  ;;  %v134_v31 = vmax.f32 %v110_v26, 0.0 }
  0xcd   :  { %v331_v27 = vpop.f32.mrf.mxu0 }
  0xce   :  { %v113_v29 = vadd.f32 %v331_v27, %v306_v24  ;;  %v132_v35 = vmax.f32 %v102_v28, 0.0 }
  0xcf   :  { %v104_v30 = vpop.f32.mrf.mxu0 }
  0xd0   :  { %v135_v32 = vmax.f32 %v113_v29, 0.0  ;;  %v105_v33 = vadd.f32 %v306_v24, %v104_v30 }
  0xd1   :  { %v334_v34 = vpop.f32.mrf.mxu0 }
  0xd2   :  { %v141_v36 = vpack.c.bf16 %v135_v32, %v134_v31  ;;  %v133_v37 = vmax.f32 %v105_v33, 0.0  ;;  %v126_v48 = vadd.f32 %v334_v34, %v306_v24 }
  0xd3   :  { %v117_v38 = vpop.f32.mrf.mxu0 }
  0xd4   :  { %v140_v39 = vpack.c.bf16 %v133_v37, %v132_v35  ;;  %318 = vmatmul.mubr.msk.bf16.vlgmr.msra.gmra.mxu1 %vm178_vm3, %v141_v36  ;;  %v118_v41 = vadd.f32 %v306_v24, %v117_v38  ;;  %v138_v50 = vmax.f32 %v126_v48, 0.0 }
  0xd5   :  { %v335_v40 = vpop.f32.mrf.mxu0  ;;  %249 = vmatprep.mubr.bf16.mxu1 %v350_v22 }
  0xd6   :  { %317 = vmatmul.mubr.msk.bf16.vlgmr.msra.gmra.mxu0 %vm178_vm3, %v140_v39  ;;  %v136_v44 = vmax.f32 %v118_v41, 0.0  ;;  %v129_v46 = vadd.f32 %v335_v40, %v306_v24 }
  0xd7   :  { %v120_v42 = vpop.f32.mrf.mxu0 }
  0xd8   :  { %v121_v43 = vadd.f32 %v306_v24, %v120_v42  ;;  %v139_v49 = vmax.f32 %v129_v46, 0.0 }
  0xda   :  { %v137_v45 = vmax.f32 %v121_v43, 0.0  ;;  %v143_v51 = vpack.c.bf16 %v139_v49, %v138_v50 }
  0xdc   :  { %v142_v47 = vpack.c.bf16 %v137_v45, %v136_v44 }
  0xde   :  { %319 = vmatmul.mubr.msk.bf16.gmra.mxu1 %vm178_vm3, %v142_v47 }
  0xdf   :  { %259 = vmatprep.mubr.bf16.mxu1 %v350_v22 }
  0xe6   :  { %320 = vmatmul.mubr.msk.bf16.gmra.mxu1 %vm178_vm3, %v143_v51 }
 0x194   :  { %v241_v59 = vpop.f32.mrf.mxu1 }
 0x195   :  { %v242_v60 = vadd.f32 %v241_v59, %v153_v57 }
 0x196   :  { %v231_v61 = vpop.f32.mrf.mxu0  ;;  %v243_v62 = vpop.f32.mrf.mxu1 }
 0x197   :  { %v274_v63 = vmax.f32 %v242_v60, 0.0  ;;  %v232_v0 = vadd.f32 %v231_v61, %v153_v57  ;;  %v244_v1 = vadd.f32 %v243_v62, %v157_v58 }
 0x198   :  { %v233_v2 = vpop.f32.mrf.mxu0  ;;  %v245_v3 = vpop.f32.mrf.mxu1 }
 0x199   :  { %290 = vst [vmem:[%s491_s5 + $0x20] sm:$0xff] %v274_v63  ;;  %v270_v4 = vmax.f32 %v232_v0, 0.0  ;;  %v275_v5 = vmax.f32 %v244_v1, 0.0  ;;  %v234_v6 = vadd.f32 %v233_v2, %v157_v58  ;;  %v246_v7 = vadd.f32 %v245_v3, %v153_v57 }
 0x19a   :  { %v235_v8 = vpop.f32.mrf.mxu0  ;;  %v247_v9 = vpop.f32.mrf.mxu1 }
 0x19b   :  { %286 = vst [vmem:[%s491_s5] sm:$0xff] %v270_v4  ;;  %291 = vst [vmem:[%s491_s5 + $0x28] sm:$0xff] %v275_v5  ;;  %v271_v10 = vmax.f32 %v234_v6, 0.0  ;;  %v276_v11 = vmax.f32 %v246_v7, 0.0  ;;  %v236_v12 = vadd.f32 %v235_v8, %v153_v57  ;;  %v248_v13 = vadd.f32 %v247_v9, %v157_v58 }
 0x19c   :  { %v237_v14 = vpop.f32.mrf.mxu0 }
 0x19d   :  { %287 = vst [vmem:[%s491_s5 + $0x8] sm:$0xff] %v271_v10  ;;  %292 = vst [vmem:[%s491_s5 + $0x30] sm:$0xff] %v276_v11  ;;  %v272_v15 = vmax.f32 %v236_v12, 0.0  ;;  %v277_v16 = vmax.f32 %v248_v13, 0.0  ;;  %v238_v17 = vadd.f32 %v237_v14, %v157_v58 }
 0x19e   :  { %v251_v18 = vpop.f32.mrf.mxu1 }
 0x19f   :  { %288 = vst [vmem:[%s491_s5 + $0x10] sm:$0xff] %v272_v15  ;;  %293 = vst [vmem:[%s491_s5 + $0x38] sm:$0xff] %v277_v16  ;;  %v273_v19 = vmax.f32 %v238_v17, 0.0  ;;  %v252_v20 = vadd.f32 %v251_v18, %v153_v57 }
 0x1a0   :  { %v253_v21 = vpop.f32.mrf.mxu1 }
 0x1a1   :  { %289 = vst [vmem:[%s491_s5 + $0x18] sm:$0xff] %v273_v19  ;;  %v278_v22 = vmax.f32 %v252_v20, 0.0  ;;  %v254_v23 = vadd.f32 %v253_v21, %v157_v58 }
 0x1a2   :  { %v255_v24 = vpop.f32.mrf.mxu1 }
 0x1a3   :  { %294 = vst [vmem:[%s491_s5 + $0x40] sm:$0xff] %v278_v22  ;;  %v279_v25 = vmax.f32 %v254_v23, 0.0  ;;  %v256_v26 = vadd.f32 %v255_v24, %v153_v57 }
 0x1a4   :  { %v257_v27 = vpop.f32.mrf.mxu1 }
 0x1a5   :  { %295 = vst [vmem:[%s491_s5 + $0x48] sm:$0xff] %v279_v25  ;;  %v280_v28 = vmax.f32 %v256_v26, 0.0  ;;  %v258_v29 = vadd.f32 %v257_v27, %v157_v58 }
 0x1a6   :  { %v261_v30 = vpop.f32.mrf.mxu1 }
 0x1a7   :  { %296 = vst [vmem:[%s491_s5 + $0x50] sm:$0xff] %v280_v28  ;;  %v281_v31 = vmax.f32 %v258_v29, 0.0  ;;  %v262_v32 = vadd.f32 %v261_v30, %v153_v57 }
 0x1a8   :  { %v263_v33 = vpop.f32.mrf.mxu1 }
 0x1a9   :  { %297 = vst [vmem:[%s491_s5 + $0x58] sm:$0xff] %v281_v31  ;;  %v282_v34 = vmax.f32 %v262_v32, 0.0  ;;  %v264_v35 = vadd.f32 %v263_v33, %v157_v58 }
 0x1aa   :  { %v265_v36 = vpop.f32.mrf.mxu1 }
 0x1ab   :  { %298 = vst [vmem:[%s491_s5 + $0x60] sm:$0xff] %v282_v34  ;;  %v283_v37 = vmax.f32 %v264_v35, 0.0  ;;  %v266_v38 = vadd.f32 %v265_v36, %v153_v57 }
 0x1ac   :  { %v267_v39 = vpop.f32.mrf.mxu1 }
 0x1ad   :  { %299 = vst [vmem:[%s491_s5 + $0x68] sm:$0xff] %v283_v37  ;;  %v284_v40 = vmax.f32 %v266_v38, 0.0  ;;  %v268_v41 = vadd.f32 %v267_v39, %v157_v58 }
 0x1af   :  { %300 = vst [vmem:[%s491_s5 + $0x70] sm:$0xff] %v284_v40  ;;  %v285_v42 = vmax.f32 %v268_v41, 0.0 }
 0x1b1   :  { %301 = vst [vmem:[%s491_s5 + $0x78] sm:$0xff] %v285_v42 }

// kernel: trxos_forward.4
= control target key start
LH: loop header
LB: loop body
LE: loop exit
PB: predicated region body
PF: predicated region fallthrough
CT: control target
= control target key end

     0   :  { %s3388_s27 = smov 0   ;;  %s4301_s0 = inlined_call_operand.vmem [shape: bf16[2,28,512], index: 0, kind: input, shape index: {}]   ;;  %s4302_s1 = inlined_call_operand.vmem [shape: bf16[2,3,28,512], index: 1, kind: input, shape index: {}]   ;;  %s4303_s2 = inlined_call_operand.vmem [shape: bf16[512,128], index: 2, kind: input, shape index: {}]   ;;  %s4304_s3 = inlined_call_operand.vmem [shape: f32[1,128], index: 3, kind: input, shape index: {}]   ;;  %s4305_s4 = inlined_call_operand.vmem [shape: f32[1,64], index: 4, kind: input, shape index: {}]   ;;  %s4306_s5 = inlined_call_operand.vmem [shape: f32[1,64], index: 5, kind: input, shape index: {}]   ;;  %s4307_s6 = inlined_call_operand.vmem [shape: f32[2,1,3], index: 6, kind: output, shape index: {0}]   ;;  %s4308_s7 = inlined_call_operand.vmem [shape: f32[2,3,28,64], index: 7, kind: output, shape index: {1}]   ;;  %s4309_s8 = inlined_call_operand.vmem [shape: f32[2,3,28,64], index: 8, kind: output, shape index: {2}]  }
   0x1 LB: > { %s2639_s28 = sadd.s32 4294967295, %s3340_s27   ;;  %p2643_p0 = scmp.ge.s32.totalorder %s3340_s27, 1  ;;  %s3340_s27 = sphi %s3388_s27, %s19_s27  }
   0x2   : > { %p277_p1 = scmp.lt.s32.totalorder %s3340_s27, 3 }
   0x4   : > { %p278_p2 = pnand %p2643_p0, %p277_p1 }
   0x6   : > { %281 = sbr.rel (%p278_p2) target bundleno = 3159 (0xc57), region = 44 }
   0xb   : > { %v3399_v0 = vld [vmem:[%s4303_s2 + $0x78] sm:$0xff]   ;;  %v3422_v4 = vld [vmem:[%s4303_s2 + $0x70] sm:$0xff]   ;;  %v3446_v8 = vld [vmem:[%s4303_s2 + $0x68] sm:$0xff]   ;;  %p324_p3 = scmp.lt.s32.totalorder %s2639_s28, 1  ;;  %vm759_vm0 = vcmask 523264   ;;  %vm769_vm1 = vcmask 519168  }
   0xc   : > { %v3404_v1 = vld [vmem:[%s4303_s2 + $0xf8] sm:$0xff]   ;;  %2790 = vmatprep.subr.bf16.mxu0 %v3399_v0  ;;  %v3428_v5 = vld [vmem:[%s4303_s2 + $0xf0] sm:$0xff]   ;;  %v3452_v9 = vld [vmem:[%s4303_s2 + $0xe8] sm:$0xff]   ;;  %vm1225_vm2 = vcmask 1043456   ;;  %vm1153_vm3 = vcmask 228352   ;;  %vm1157_vm4 = vcmask 224256  }
   0xd   : > { %v3410_v2 = vld [vmem:[%s4303_s2 + $0x38] sm:$0xff]   ;;  %2818 = vmatprep.subr.bf16.mxu1 %v3404_v1  ;;  %v3434_v6 = vld [vmem:[%s4303_s2 + $0x30] sm:$0xff]   ;;  %v3458_v10 = vld [vmem:[%s4303_s2 + $0x28] sm:$0xff]   ;;  %s4314_s28 = smov (!%p324_p3, %s2639_s28), 1  ;;  %vm2508_vm5 = vcmask 7168   ;;  %vm2510_vm6 = vcmask 15360  }
   0xe   : > { %v3416_v3 = vld [vmem:[%s4303_s2 + $0xb8] sm:$0xff]   ;;  %2791 = vmatpush3.bf16.msra.mxu0 %v3410_v2  ;;  %v3440_v7 = vld [vmem:[%s4303_s2 + $0xb0] sm:$0xff]   ;;  %v3464_v11 = vld [vmem:[%s4303_s2 + $0xa8] sm:$0xff]   ;;  %s2789_s21 = sshll.u32 %s4314_s28, 6  ;;  %s3146_s15 = smul.u32 192, %s4314_s28  ;;  %vm2512_vm7 = vcmask 16384  }
   0xf   : > { %2819 = vmatpush3.bf16.msra.mxu1 %v3416_v3  ;;  %2792 = vmatprep.subr.bf16.mxu0 %v3422_v4  ;;  %v3470_v12 = vld [vmem:[%s4303_s2 + $0x60] sm:$0xff]   ;;  %v3494_v16 = vld [vmem:[%s4303_s2 + $0x58] sm:$0xff]   ;;  %v3520_v20 = vld [vmem:[%s4303_s2 + $0x50] sm:$0xff]   ;;  %s328_s10 = scalar_lea.vmem %s4301_s0, %s2789_s21  ;;  %s3342_s21 = smov 64  }
  0x10   : > { %2820 = vmatprep.subr.bf16.mxu1 %v3428_v5  ;;  %v3476_v13 = vld [vmem:[%s4303_s2 + $0xe0] sm:$0xff]   ;;  %v3500_v17 = vld [vmem:[%s4303_s2 + $0xd8] sm:$0xff]   ;;  %v3526_v21 = vld [vmem:[%s4303_s2 + $0xd0] sm:$0xff]   ;;  %s3604_s18 = scalar_lea.vmem %s4302_s1, %s3146_s15  ;;  %s3147_s14 = smul.u32 96, %s4314_s28 }
  0x11   : > { %v3482_v14 = vld [vmem:[%s4303_s2 + $0x20] sm:$0xff]   ;;  %v3506_v18 = vld [vmem:[%s4303_s2 + $0x18] sm:$0xff]   ;;  %v3532_v22 = vld [vmem:[%s4303_s2 + $0x10] sm:$0xff]   ;;  %s336_s16 = scalar_lea.vmem %s4307_s6, %s4314_s28 }
  0x12   : > { %2793 = vmatpush3.bf16.msra.mxu0 %v3434_v6  ;;  %v3488_v15 = vld [vmem:[%s4303_s2 + $0xa0] sm:$0xff]   ;;  %v3514_v19 = vld [vmem:[%s4303_s2 + $0x98] sm:$0xff]   ;;  %v3542_v23 = vld [vmem:[%s4303_s2 + $0x90] sm:$0xff]   ;;  %s3888_s17 = scalar_lea.vmem %s4309_s8, %s3147_s14  ;;  %s4266_s15 = scalar_lea.vmem %s4308_s7, %s3147_s14 }
  0x13   : > { %2821 = vmatpush3.bf16.msra.mxu1 %v3440_v7  ;;  %2794 = vmatprep.subr.bf16.mxu0 %v3446_v8  ;;  %v3548_v24 = vld [vmem:[%s4303_s2 + $0x48] sm:$0xff]   ;;  %v3573_v28 = vld [vmem:[%s4303_s2 + $0x40] sm:$0xff]  }
  0x14   : > { %2822 = vmatprep.subr.bf16.mxu1 %v3452_v9  ;;  %v3554_v25 = vld [vmem:[%s4303_s2 + $0xc8] sm:$0xff]   ;;  %v3579_v29 = vld [vmem:[%s4303_s2 + $0xc0] sm:$0xff]  }
  0x15   : > { %v3560_v26 = vld [vmem:[%s4303_s2 + $0x8] sm:$0xff]   ;;  %v3588_v30 = vld [vmem:[%s4303_s2] sm:$0xff]  }
  0x16   : > { %2795 = vmatpush3.bf16.msra.mxu0 %v3458_v10  ;;  %v3567_v27 = vld [vmem:[%s4303_s2 + $0x88] sm:$0xff]   ;;  %v3594_v31 = vld [vmem:[%s4303_s2 + $0x80] sm:$0xff]  }
  0x17   : > { %2823 = vmatpush3.bf16.msra.mxu1 %v3464_v11  ;;  %2796 = vmatprep.subr.bf16.mxu0 %v3470_v12  ;;  %4311 = vst [vmem:[#allocation2_spill] sm:$0xff] %v3594_v31  ;;  %v3189_v32 = vld [vmem:[%s328_s10] ss:$16 sps:$4 sm:$0xff]   ;;  %v3191_v33 = vld [vmem:[%s328_s10 + $0x4] ss:$16 sps:$4 sm:$0xff]  }
  0x18   : > { %2824 = vmatprep.subr.bf16.mxu1 %v3476_v13  ;;  %v3192_v34 = vld [vmem:[%s328_s10 + $0x8] ss:$16 sps:$4 sm:$0xff]   ;;  %v3194_v35 = vld [vmem:[%s328_s10 + $0xc] ss:$16 sps:$4 sm:$0xff]   ;;  %693 = vmatprep.mubr.bf16.mxu0 %v3191_v33  ;;  %v3203_v40 = vld [vmem:[%s3604_s18 + $0x4] ss:$16 sps:$4 sm:$0xff]  }
  0x19   : > { %v3195_v36 = vld [vmem:[%s328_s10 + $0x24] ss:$16 sps:$4 sm:$0x3f]   ;;  %742 = vmatprep.mubr.bf16.mxu1 %v3194_v35  ;;  %v3198_v37 = vld [vmem:[%s328_s10 + $0x2c] ss:$16 sps:$4 sm:$0x3f]  }
  0x1a   : > { %2797 = vmatpush3.bf16.msra.mxu0 %v3482_v14  ;;  %v3197_v38 = vld [vmem:[%s328_s10 + $0x20] ss:$16 sps:$4 sm:$0x3f]   ;;  %v3200_v39 = vld [vmem:[%s328_s10 + $0x28] ss:$16 sps:$4 sm:$0x3f]  }
  0x1b   : > { %2825 = vmatpush3.bf16.msra.mxu1 %v3488_v15  ;;  %2798 = vmatprep.subr.bf16.mxu0 %v3494_v16  ;;  %v3206_v41 = vld [vmem:[%s3604_s18 + $0xc] ss:$16 sps:$4 sm:$0xff]   ;;  %v3201_v42 = vld [vmem:[%s3604_s18] ss:$16 sps:$4 sm:$0xff]   ;;  %v3204_v43 = vld [vmem:[%s3604_s18 + $0x8] ss:$16 sps:$4 sm:$0xff]  }
  0x1c   : > { %2826 = vmatprep.subr.bf16.mxu1 %v3500_v17  ;;  %v3207_v44 = vld [vmem:[%s3604_s18 + $0x24] ss:$16 sps:$4 sm:$0x3f]   ;;  %v3209_v45 = vld [vmem:[%s3604_s18 + $0x2c] ss:$16 sps:$4 sm:$0x3f]  }
  0x1d   : > { %v3211_v46 = vld [vmem:[%s3604_s18 + $0x20] ss:$16 sps:$4 sm:$0x3f]   ;;  %v3212_v47 = vld [vmem:[%s3604_s18 + $0x28] ss:$16 sps:$4 sm:$0x3f]  }
  0x1e   : > { %2799 = vmatpush3.bf16.msra.mxu0 %v3506_v18 }
  0x1f   : > { %2827 = vmatpush3.bf16.msra.mxu1 %v3514_v19  ;;  %2800 = vmatprep.subr.bf16.mxu0 %v3520_v20 }
  0x20   : > { %2828 = vmatprep.subr.bf16.mxu1 %v3526_v21 }
  0x22   : > { %2801 = vmatpush3.bf16.msra.mxu0 %v3532_v22 }
  0x23   : > { %2829 = vmatpush3.bf16.msra.mxu1 %v3542_v23  ;;  %2802 = vmatprep.subr.bf16.mxu0 %v3548_v24 }
  0x24   : > { %2830 = vmatprep.subr.bf16.mxu1 %v3554_v25 }
  0x26   : > { %2803 = vmatpush3.bf16.msra.mxu0 %v3560_v26 }
  0x27   : > { %2831 = vmatpush3.bf16.msra.mxu1 %v3567_v27  ;;  %2804 = vmatprep.subr.bf16.mxu0 %v3573_v28 }
  0x28   : > { %2832 = vmatprep.subr.bf16.mxu1 %v3579_v29 }
  0x2a   : > { %2805 = vmatpush3.bf16.msra.mxu0 %v3588_v30 }
  0x2b   : > { %2833 = vmatpush3.bf16.msra.mxu1 %v3594_v31  ;;  %2846 = vmatprep.subr.bf16.mxu0 %v3399_v0 }
  0x2c   : > { %2874 = vmatprep.subr.bf16.mxu1 %v3404_v1 }
  0x2d   : > { %694 = vmatmul.mubr.bf16.vlgmr.msra.gmra.mxu0 %v3189_v32 }
  0x2e   : > { %743 = vmatmul.mubr.bf16.vlgmr.msra.gmra.mxu1 %v3192_v34  ;;  %2847 = vmatpush3.bf16.msra.mxu0 %v3410_v2 }
  0x2f   : > { %2875 = vmatpush3.bf16.msra.mxu1 %v3416_v3  ;;  %2848 = vmatprep.subr.bf16.mxu0 %v3422_v4 }
  0x30   : > { %2876 = vmatprep.subr.bf16.mxu1 %v3428_v5  ;;  %701 = vmatprep.mubr.bf16.mxu0 %v3195_v36 }
  0x31   : > { %750 = vmatprep.mubr.bf16.mxu1 %v3198_v37 }
  0x32   : > { %2849 = vmatpush3.bf16.msra.mxu0 %v3434_v6 }
  0x33   : > { %2877 = vmatpush3.bf16.msra.mxu1 %v3440_v7  ;;  %2850 = vmatprep.subr.bf16.mxu0 %v3446_v8 }
  0x34   : > { %2878 = vmatprep.subr.bf16.mxu1 %v3452_v9 }
  0x35   : > { %702 = vmatmul.mubr.bf16.gmra.mxu0 %v3197_v38  ;;  %v3649_v38 = vld [vmem:[%s4304_s3] ss:$0 sm:$0xff] }
  0x36   : > { %2851 = vmatpush3.bf16.msra.mxu0 %v3458_v10  ;;  %751 = vmatmul.mubr.bf16.gmra.mxu1 %v3200_v39 }
  0x37   : > { %2879 = vmatpush3.bf16.msra.mxu1 %v3464_v11  ;;  %2852 = vmatprep.subr.bf16.mxu0 %v3470_v12 }
  0x38   : > { %2880 = vmatprep.subr.bf16.mxu1 %v3476_v13  ;;  %914 = vmatprep.mubr.bf16.mxu0 %v3203_v40 }
  0x39   : > { %963 = vmatprep.mubr.bf16.mxu1 %v3206_v41 }
  0x3a   : > { %2853 = vmatpush3.bf16.msra.mxu0 %v3482_v14 }
  0x3b   : > { %2881 = vmatpush3.bf16.msra.mxu1 %v3488_v15  ;;  %2854 = vmatprep.subr.bf16.mxu0 %v3494_v16 }
  0x3c   : > { %2882 = vmatprep.subr.bf16.mxu1 %v3500_v17 }
  0x3e   : > { %2855 = vmatpush3.bf16.msra.mxu0 %v3506_v18 }
  0x3f   : > { %2883 = vmatpush3.bf16.msra.mxu1 %v3514_v19  ;;  %2856 = vmatprep.subr.bf16.mxu0 %v3520_v20 }
  0x40   : > { %2884 = vmatprep.subr.bf16.mxu1 %v3526_v21 }
  0x42   : > { %2857 = vmatpush3.bf16.msra.mxu0 %v3532_v22 }
  0x43   : > { %2885 = vmatpush3.bf16.msra.mxu1 %v3542_v23  ;;  %2858 = vmatprep.subr.bf16.mxu0 %v3548_v24 }
  0x44   : > { %2886 = vmatprep.subr.bf16.mxu1 %v3554_v25 }
  0x46   : > { %2859 = vmatpush3.bf16.msra.mxu0 %v3560_v26 }
  0x47   : > { %2887 = vmatpush3.bf16.msra.mxu1 %v3567_v27  ;;  %2860 = vmatprep.subr.bf16.mxu0 %v3573_v28 }
  0x48   : > { %2888 = vmatprep.subr.bf16.mxu1 %v3579_v29 }
  0x4a   : > { %2861 = vmatpush3.bf16.msra.mxu0 %v3588_v30 }
  0x4b   : > { %2889 = vmatpush3.bf16.msra.mxu1 %v3594_v31 }
  0x4d   : > { %915 = vmatmul.mubr.bf16.vlgmr.msra.gmra.mxu0 %v3201_v42 }
  0x4e   : > { %964 = vmatmul.mubr.bf16.vlgmr.msra.gmra.mxu1 %v3204_v43  ;;  %922 = vmatprep.mubr.bf16.mxu0 %v3207_v44 }
  0x4f   : > { %971 = vmatprep.mubr.bf16.mxu1 %v3209_v45 }
  0x55   : > { %923 = vmatmul.mubr.bf16.gmra.mxu0 %v3211_v46 }
  0x56   : > { %972 = vmatmul.mubr.bf16.gmra.mxu1 %v3212_v47 }
  0xed   : > { %v2806_v48 = vpop.f32.mrf.mxu0 }
  0xee   : > { %v2834_v49 = vpop.f32.mrf.mxu1 }
  0xef   : > { %v2807_v50 = vpop.f32.mrf.mxu0 }
  0xf0   : > { %v2835_v51 = vpop.f32.mrf.mxu1 }
  0xf1   : > { %v2809_v52 = vpop.f32.mrf.mxu0 }
  0xf2   : > { %v2837_v53 = vpop.f32.mrf.mxu1 }
  0xf3   : > { %v2810_v54 = vpop.f32.mrf.mxu0 }
  0xf4   : > { %v2838_v55 = vpop.f32.mrf.mxu1  ;;  %v2811_v39 = vadd.f32 %v2810_v54, %v2809_v52 }
  0xf5   : > { %v2812_v56 = vpop.f32.mrf.mxu0 }
  0xf6   : > { %v3644_v57 = vpop.f32.mrf.mxu1 }
  0xf7   : > { %v2813_v58 = vpop.f32.mrf.mxu0 }
  0xf8   : > { %v2841_v59 = vpop.f32.mrf.mxu1 }
  0xf9   : > { %v2815_v60 = vpop.f32.mrf.mxu0 }
  0xfa   : > { %v2843_v61 = vpop.f32.mrf.mxu1 }
  0xfb   : > { %v2816_v62 = vpop.f32.mrf.mxu0 }
  0xfc   : > { %v2844_v63 = vpop.f32.mrf.mxu1 }
 0x10d   : > { %v2862_v3 = vpop.f32.mrf.mxu0 }
 0x10e   : > { %v2890_v5 = vpop.f32.mrf.mxu1 }
 0x10f   : > { %v2863_v7 = vpop.f32.mrf.mxu0 }
 0x110   : > { %v2891_v9 = vpop.f32.mrf.mxu1  ;;  %v2864_v33 = vadd.f32 %v2863_v7, %v2862_v3  ;;  %v699_v7 = vadd.f32 %v2811_v39, %v3649_v38 }
 0x111   : > { %v2865_v32 = vpop.f32.mrf.mxu0  ;;  %v2892_v46 = vadd.f32 %v2891_v9, %v2890_v5  ;;  %v2808_v9 = vadd.f32 %v2807_v50, %v2806_v48  ;;  %v2836_v48 = vadd.f32 %v2835_v51, %v2834_v49  ;;  %v2814_v50 = vadd.f32 %v2813_v58, %v2812_v56 }
 0x112   : > { %v2893_v34 = vpop.f32.mrf.mxu1  ;;  %v917_v41 = vadd.f32 %v2864_v33, %v3649_v38  ;;  %v2842_v49 = vadd.f32 %v2841_v59, %v3644_v57 }
 0x113   : > { %v2866_v35 = vpop.f32.mrf.mxu0 }
 0x114   : > { %v2867_v36 = vadd.f32 %v2866_v35, %v2865_v32  ;;  %v2894_v37 = vpop.f32.mrf.mxu1  ;;  %v2817_v32 = vadd.f32 %v2816_v62, %v2815_v60  ;;  %v3656_v31 = vadd.f32 %v2892_v46, %v917_v41  ;;  %v2845_v60 = vadd.f32 %v2844_v63, %v2843_v61 }
 0x115   : > { %v2868_v40 = vpop.f32.mrf.mxu0  ;;  %v2895_v43 = vadd.f32 %v2894_v37, %v2893_v34 }
 0x116   : > { %v920_v42 = vadd.f32 %v2867_v36, %v3649_v38  ;;  %v2896_v44 = vpop.f32.mrf.mxu1  ;;  %v2839_v36 = vadd.f32 %v2838_v55, %v2837_v53  ;;  %v707_v39 = vadd.f32 %v2817_v32, %v3649_v38 }
 0x117   : > { %v2869_v45 = vpop.f32.mrf.mxu0 }
 0x118   : > { %v3653_v47 = vadd.f32 %v2895_v43, %v920_v42  ;;  %v2897_v3 = vpop.f32.mrf.mxu1  ;;  %v2870_v52 = vadd.f32 %v2869_v45, %v2868_v40  ;;  %v3660_v42 = vadd.f32 %v2839_v36, %v699_v7  ;;  %v980_v43 = vsel %vm759_vm0, %v3656_v31, 0.0 }
 0x119   : > { %v2871_v35 = vpop.f32.mrf.mxu0  ;;  %v2898_v53 = vadd.f32 %v2897_v3, %v2896_v44  ;;  %v696_v45 = vadd.f32 %v2808_v9, %v3649_v38  ;;  %v3670_v46 = vadd.f32 %v2845_v60, %v707_v39  ;;  %v704_v3 = vadd.f32 %v2814_v50, %v3649_v38 }
 0x11a   : > { %v2899_v54 = vpop.f32.mrf.mxu1  ;;  %v983_v33 = vsel %vm759_vm0, %v3653_v47, 0.0  ;;  %v925_v62 = vadd.f32 %v2870_v52, %v3649_v38  ;;  %v763_v7 = vsel %vm759_vm0, %v3660_v42, 0.0 }
 0x11b   : > { %v2872_v34 = vpop.f32.mrf.mxu0  ;;  %984 = vadd.xlane.f32.xlu1 %v983_v33  ;;  %v3678_v44 = vadd.f32 %v2836_v48, %v696_v45  ;;  %v770_v56 = vsel %vm769_vm1, %v3670_v46, 0.0  ;;  %v3686_v58 = vadd.f32 %v2842_v49, %v704_v3 }
 0x11c   : > { %v2873_v37 = vadd.f32 %v2872_v34, %v2871_v35  ;;  %v2900_v5 = vpop.f32.mrf.mxu1  ;;  %v3672_v61 = vadd.f32 %v2898_v53, %v925_v62 }
 0x11d   : > { %v2901_v40 = vadd.f32 %v2900_v5, %v2899_v54  ;;  %v760_v32 = vsel %vm759_vm0, %v3678_v44, 0.0  ;;  %v766_v35 = vsel %vm759_vm0, %v3686_v58, 0.0 }
 0x11e   : > { %v928_v41 = vadd.f32 %v2873_v37, %v3649_v38  ;;  %v986_v51 = vsel %vm759_vm0, %v3672_v61, 0.0 }
 0x11f   : > { %981 = vadd.xlane.f32.xlu1 %v980_v43 }
 0x120   : > { %v3667_v55 = vadd.f32 %v2901_v40, %v928_v41 }
 0x122   : > { %v989_v63 = vsel %vm769_vm1, %v3667_v55, 0.0 }
 0x123   : > { %990 = vadd.xlane.f32.xlu0 %v989_v63  ;;  %764 = vadd.xlane.f32.xlu1 %v763_v7 }
 0x127   : > { %987 = vadd.xlane.f32.xlu0 %v986_v51  ;;  %771 = vadd.xlane.f32.xlu1 %v770_v56 }
 0x12b   : > { %761 = vadd.xlane.f32.xlu0 %v760_v32 }
 0x12f   : > { %767 = vadd.xlane.f32.xlu0 %v766_v35 }
 0x1a4   : > { %v985_v52 = vpop.xlane.xlu1 %984 }
 0x1a5   : > { %v993_v59 = vmul.f32 0.015625, %v985_v52 }
 0x1a7   : > { %v3693_v36 = vsub.f32 %v3653_v47, %v993_v59 }
 0x1a8   : > { %v982_v57 = vpop.xlane.xlu1 %981 }
 0x1a9   : > { %v992_v34 = vmul.f32 0.015625, %v982_v57  ;;  %v1001_v41 = vmul.f32 %v3693_v36, %v3693_v36 }
 0x1ab   : > { %v3701_v62 = vsub.f32 %v3656_v31, %v992_v34  ;;  %v1007_v7 = vsel %vm759_vm0, %v1001_v41, 0.0 }
 0x1ac   : > { %v991_v54 = vpop.xlane.xlu0 %990  ;;  %v765_v37 = vpop.xlane.xlu1 %764 }
 0x1ad   : > { %v995_v33 = vmul.f32 0.015625, %v991_v54  ;;  %v775_v40 = vmul.f32 0.015625, %v765_v37  ;;  %v1000_v3 = vmul.f32 %v3701_v62, %v3701_v62 }
 0x1af   : > { %v3696_v5 = vsub.f32 %v3667_v55, %v995_v33  ;;  %v3715_v49 = vsub.f32 %v3660_v42, %v775_v40  ;;  %v1004_v59 = vsel %vm759_vm0, %v1000_v3, 0.0 }
 0x1b0   : > { %v988_v9 = vpop.xlane.xlu0 %987  ;;  %v772_v45 = vpop.xlane.xlu1 %771 }
 0x1b1   : > { %v994_v39 = vmul.f32 0.015625, %v988_v9  ;;  %v1003_v60 = vmul.f32 %v3696_v5, %v3696_v5  ;;  %v777_v51 = vmul.f32 0.015625, %v772_v45  ;;  %v783_v37 = vmul.f32 %v3715_v49, %v3715_v49 }
 0x1b3   : > { %v3706_v43 = vsub.f32 %v3672_v61, %v994_v39  ;;  %v1013_v53 = vsel %vm769_vm1, %v1003_v60, 0.0  ;;  %v3725_v54 = vsub.f32 %v3670_v46, %v777_v51  ;;  %v789_v39 = vsel %vm759_vm0, %v783_v37, 0.0 }
 0x1b4   : > { %1014 = vadd.xlane.f32.xlu0 %v1013_v53  ;;  %v762_v48 = vpop.xlane.xlu0 %761 }
 0x1b5   : > { %v774_v50 = vmul.f32 0.015625, %v762_v48  ;;  %v1002_v63 = vmul.f32 %v3706_v43, %v3706_v43  ;;  %v785_v41 = vmul.f32 %v3725_v54, %v3725_v54 }
 0x1b7   : > { %v3718_v56 = vsub.f32 %v3678_v44, %v774_v50  ;;  %v1010_v32 = vsel %vm759_vm0, %v1002_v63, 0.0  ;;  %v795_v40 = vsel %vm769_vm1, %v785_v41, 0.0 }
 0x1b8   : > { %1011 = vadd.xlane.f32.xlu1 %v1010_v32  ;;  %1008 = vadd.xlane.f32.xlu0 %v1007_v7  ;;  %v768_v35 = vpop.xlane.xlu0 %767 }
 0x1b9   : > { %v776_v52 = vmul.f32 0.015625, %v768_v35  ;;  %v782_v57 = vmul.f32 %v3718_v56, %v3718_v56 }
 0x1bb   : > { %v3728_v33 = vsub.f32 %v3686_v58, %v776_v52  ;;  %v786_v34 = vsel %vm759_vm0, %v782_v57, 0.0 }
 0x1bc   : > { %1005 = vadd.xlane.f32.xlu1 %v1004_v59  ;;  %787 = vadd.xlane.f32.xlu0 %v786_v34 }
 0x1bd   : > { %v784_v9 = vmul.f32 %v3728_v33, %v3728_v33 }
 0x1bf   : > { %v792_v60 = vsel %vm759_vm0, %v784_v9, 0.0 }
 0x1c0   : > { %790 = vadd.xlane.f32.xlu1 %v789_v39  ;;  %793 = vadd.xlane.f32.xlu0 %v792_v60 }
 0x1c4   : > { %796 = vadd.xlane.f32.xlu1 %v795_v40 }
 0x1d5   : > { %1206 = vrot.lane.b32.xlu1 %v3672_v61, %s3342_s21 }
 0x1d6   : > { %1208 = vrot.lane.b32.xlu0 %v3667_v55, %s3342_s21 }
 0x1d9   : > { %1204 = vrot.lane.b32.xlu1 %v3653_v47, %s3342_s21 }
 0x1dd   : > { %1202 = vrot.lane.b32.xlu1 %v3656_v31, %s3342_s21 }
 0x23d   : > { %v1015_v53 = vpop.xlane.xlu0 %1014 }
 0x23e   : > { %v1019_v45 = vmul.f32 0.015625, %v1015_v53 }
 0x240   : > { %v1023_v48 = vadd.f32 1e-05, %v1019_v45  ;;  %v3752_v45 = vld [vmem:[%s4305_s4] ss:$0 sm:$0xff] }
 0x241   : > { %v1012_v50 = vpop.xlane.xlu1 %1011  ;;  %v1009_v63 = vpop.xlane.xlu0 %1008 }
 0x242   : > { %3237 = vrsqrt.f32 %v1023_v48  ;;  %v1018_v7 = vmul.f32 0.015625, %v1012_v50  ;;  %v1017_v3 = vmul.f32 0.015625, %v1009_v63 }
 0x244   : > { %v1022_v51 = vadd.f32 1e-05, %v1018_v7  ;;  %v1021_v32 = vadd.f32 1e-05, %v1017_v3  ;;  %v3759_v7 = vld [vmem:[%s4306_s5] ss:$0 sm:$0xff] }
 0x245   : > { %v1006_v61 = vpop.xlane.xlu1 %1005  ;;  %v788_v35 = vpop.xlane.xlu0 %787 }
 0x246   : > { %3239 = vrsqrt.f32 %v1022_v51  ;;  %v1016_v55 = vmul.f32 0.015625, %v1006_v61  ;;  %v798_v52 = vmul.f32 0.015625, %v788_v35 }
 0x247   : > { %3241 = vrsqrt.f32 %v1021_v32 }
 0x248   : > { %v1020_v47 = vadd.f32 1e-05, %v1016_v55  ;;  %v802_v57 = vadd.f32 1e-05, %v798_v52 }
 0x249   : > { %v791_v59 = vpop.xlane.xlu1 %790  ;;  %v794_v31 = vpop.xlane.xlu0 %793 }
 0x24a   : > { %3243 = vrsqrt.f32 %v1020_v47  ;;  %v799_v34 = vmul.f32 0.015625, %v791_v59  ;;  %v800_v37 = vmul.f32 0.015625, %v794_v31 }
 0x24b   : > { %3245 = vrsqrt.f32 %v802_v57 }
 0x24c   : > { %v803_v9 = vadd.f32 1e-05, %v799_v34  ;;  %v804_v39 = vadd.f32 1e-05, %v800_v37 }
 0x24d   : > { %v797_v60 = vpop.xlane.xlu1 %796  ;;  %v1209_v41 = vpop.permute.xlu0 %1208 }
 0x24e   : > { %3247 = vrsqrt.f32 %v803_v9  ;;  %v801_v40 = vmul.f32 0.015625, %v797_v60  ;;  %3076 = vmatprep.subr.msk.mxu1 %vm1225_vm2, %v1209_v41 }
 0x24f   : > { %v3238_v53 = vpop.eup %3237  ;;  %3249 = vrsqrt.f32 %v804_v39  ;;  %3077 = vmatpush3.msk.msra.mxu1 %vm1225_vm2, %v1209_v41 }
 0x250   : > { %v805_v48 = vadd.f32 1e-05, %v801_v40  ;;  %v1031_v50 = vmul.f32 %v3238_v53, %v3696_v5 }
 0x251   : > { %v1207_v63 = vpop.permute.xlu1 %1206 }
 0x252   : > { %3251 = vrsqrt.f32 %v805_v48  ;;  %3078 = vmatprep.subr.mxu1 %v1207_v63  ;;  %v1035_v3 = vmul.f32 %v3752_v45, %v1031_v50 }
 0x253   : > { %v3240_v51 = vpop.eup %3239  ;;  %3079 = vmatpush3.msra.mxu1 %v1207_v63 }
 0x254   : > { %v3242_v32 = vpop.eup %3241  ;;  %v1039_v61 = vadd.f32 %v3759_v7, %v1035_v3  ;;  %v1030_v35 = vmul.f32 %v3240_v51, %v3706_v43 }
 0x255   : > { %v1205_v55 = vpop.permute.xlu1 %1204  ;;  %v1029_v5 = vmul.f32 %v3242_v32, %v3693_v36 }
 0x256   : > { %3062 = vmatprep.subr.msk.mxu0 %vm759_vm0, %v1039_v61  ;;  %3080 = vmatprep.subr.mxu1 %v1205_v55  ;;  %v1034_v52 = vmul.f32 %v3752_v45, %v1030_v35 }
 0x257   : > { %v3244_v47 = vpop.eup %3243  ;;  %3063 = vmatpush3.xpose.msk.msra.mxu0 %vm759_vm0, %v1039_v61  ;;  %3081 = vmatpush3.msra.mxu1 %v1205_v55  ;;  %v1033_v57 = vmul.f32 %v3752_v45, %v1029_v5 }
 0x258   : > { %v3246_v59 = vpop.eup %3245  ;;  %v1038_v31 = vadd.f32 %v3759_v7, %v1034_v52  ;;  %v1028_v34 = vmul.f32 %v3244_v47, %v3701_v62 }
 0x259   : > { %v1203_v43 = vpop.permute.xlu1 %1202  ;;  %v810_v37 = vmul.f32 %v3246_v59, %v3718_v56  ;;  %v1037_v36 = vadd.f32 %v3759_v7, %v1033_v57 }
 0x25a   : > { %3064 = vmatprep.subr.msk.mxu0 %vm759_vm0, %v1038_v31  ;;  %3082 = vmatprep.subr.mxu1 %v1203_v43  ;;  %v1032_v9 = vmul.f32 %v3752_v45, %v1028_v34 }
 0x25b   : > { %v3248_v39 = vpop.eup %3247  ;;  %3065 = vmatpush3.xpose.msk.msra.mxu0 %vm759_vm0, %v1038_v31  ;;  %3083 = vmatpush3.msra.mxu1 %v1203_v43  ;;  %v820_v60 = vmul.f32 %v3752_v45, %v810_v37 }
 0x25c   : > { %v3250_v41 = vpop.eup %3249  ;;  %v811_v40 = vmul.f32 %v3248_v39, %v3715_v49  ;;  %3066 = vmatprep.subr.msk.mxu0 %vm759_vm0, %v1037_v36  ;;  %2946 = vmatprep.subr.bf16.mxu1 %v3404_v1  ;;  %v1036_v53 = vadd.f32 %v3759_v7, %v1032_v9 }
 0x25d   : > { %v3781_v62 = vadd.f32 %v3759_v7, %v820_v60  ;;  %v812_v56 = vmul.f32 %v3250_v41, %v3728_v33 }
 0x25e   : > { %v821_v49 = vmul.f32 %v3752_v45, %v811_v40 }
 0x25f   : > { %v3252_v48 = vpop.eup %3251  ;;  %3070 = vmatprep.mubr.msk.f32.mxu0 %vm759_vm0, %v3781_v62  ;;  %3067 = vmatpush3.xpose.msk.msra.mxu0 %vm759_vm0, %v1037_v36  ;;  %v822_v50 = vmul.f32 %v3752_v45, %v812_v56 }
 0x260   : > { %3068 = vmatprep.subr.msk.mxu0 %vm759_vm0, %v1036_v53  ;;  %v813_v1 = vmul.f32 %v3252_v48, %v3725_v54  ;;  %v3794_v33 = vadd.f32 %v3759_v7, %v821_v49  ;;  %v3215_v54 = vld [vmem:[%s3604_s18 + $0x44] ss:$16 sps:$4 sm:$0xff]  }
 0x261   : > { %v3799_v3 = vadd.f32 %v3759_v7, %v822_v50 }
 0x262   : > { %v823_v63 = vmul.f32 %v3752_v45, %v813_v1 }
 0x263   : > { %3069 = vmatpush3.xpose.msk.msra.mxu0 %vm759_vm0, %v1036_v53 }
 0x264   : > { %2918 = vmatprep.subr.bf16.mxu0 %v3399_v0  ;;  %v3808_v51 = vadd.f32 %v3759_v7, %v823_v63  ;;  %v3213_v0 = vld [vmem:[%s3604_s18 + $0x40] ss:$16 sps:$4 sm:$0xff]  }
 0x266   : > { %3071 = vmatmul.mubr.msk.f32.vlgmr.msra.gmra.mxu0 %vm759_vm0, %v3794_v33 }
 0x267   : > { %3073 = vmatprep.mubr.msk.f32.mxu0 %vm759_vm0, %v3799_v3  ;;  %2919 = vmatpush3.bf16.msra.mxu0 %v3410_v2  ;;  %v3216_v2 = vld [vmem:[%s3604_s18 + $0x64] ss:$16 sps:$4 sm:$0x3f]  }
 0x268   : > { %2920 = vmatprep.subr.bf16.mxu0 %v3422_v4  ;;  %v3218_v4 = vld [vmem:[%s3604_s18 + $0x60] ss:$16 sps:$4 sm:$0x3f]  }
 0x26a   : > { %3074 = vmatmul.mubr.msk.f32.gmra.mxu0 %vm759_vm0, %v3808_v51 }
 0x26b   : > { %2921 = vmatpush3.bf16.msra.mxu0 %v3434_v6  ;;  %1481 = vmatprep.mubr.bf16.mxu0 %v3215_v54 }
 0x26c   : > { %2922 = vmatprep.subr.bf16.mxu0 %v3446_v8 }
 0x26f   : > { %2923 = vmatpush3.bf16.msra.mxu0 %v3458_v10 }
 0x270   : > { %2924 = vmatprep.subr.bf16.mxu0 %v3470_v12 }
 0x273   : > { %2925 = vmatpush3.bf16.msra.mxu0 %v3482_v14 }
 0x274   : > { %2926 = vmatprep.subr.bf16.mxu0 %v3494_v16 }
 0x277   : > { %2927 = vmatpush3.bf16.msra.mxu0 %v3506_v18 }
 0x278   : > { %2928 = vmatprep.subr.bf16.mxu0 %v3520_v20 }
 0x27b   : > { %2929 = vmatpush3.bf16.msra.mxu0 %v3532_v22 }
 0x27c   : > { %2930 = vmatprep.subr.bf16.mxu0 %v3548_v24 }
 0x27f   : > { %2931 = vmatpush3.bf16.msra.mxu0 %v3560_v26 }
 0x280   : > { %2932 = vmatprep.subr.bf16.mxu0 %v3573_v28 }
 0x283   : > { %2933 = vmatpush3.bf16.msra.mxu0 %v3588_v30 }
 0x286   : > { %1482 = vmatmul.mubr.bf16.vlgmr.msra.gmra.mxu0 %v3213_v0 }
 0x287   : > { %1489 = vmatprep.mubr.bf16.mxu0 %v3216_v2 }
 0x28e   : > { %1490 = vmatmul.mubr.bf16.gmra.mxu0 %v3218_v4 }
 0x28f   : > { %3098 = vmatprep.mubr.msk.f32.mxu0 %vm759_vm0, %v3781_v62 }
 0x326   : > { %v3072_v6 = vpop.f32.mrf.mxu0 }
 0x327   : > { %v1150_v14 = vmul.f32 0.125, %v3072_v6 }
 0x328   : > { %v1130_v8 = vpop.f32.mrf.mxu0 }
 0x329   : > { %v1149_v10 = vmul.f32 0.125, %v1130_v8  ;;  %v1155_v24 = vsel %vm1153_vm3, %v1150_v14, -inf }
 0x32a   : > { %v3075_v12 = vpop.f32.mrf.mxu0 }
 0x32b   : > { %v1152_v16 = vmul.f32 0.125, %v3075_v12  ;;  %v1154_v20 = vsel %vm1153_vm3, %v1149_v10, -inf }
 0x32c   : > { %v1140_v18 = vpop.f32.mrf.mxu0  ;;  %v1159_v30 = vmax.f32 %v1154_v20, %v1155_v24  ;;  %v3844_v20 = vld [vmem:[%s4303_s2 + $0xb8] sm:$0xff]   ;;  %v3852_v24 = vld [vmem:[%s4303_s2 + $0xf0] sm:$0xff]  }
 0x32d   : > { %v1151_v22 = vmul.f32 0.125, %v1140_v18  ;;  %v1158_v26 = vsel %vm1157_vm4, %v1152_v16, -inf }
 0x32f   : > { %v1156_v28 = vsel %vm1153_vm3, %v1151_v22, -inf }
 0x330   : > { %v1160_v32 = vmax.f32 %v1156_v28, %v1158_v26  ;;  %v3859_v28 = vld [vmem:[%s4303_s2 + $0xb0] sm:$0xff]  }
 0x332   : > { %v1161_v61 = vmax.f32 %v1159_v30, %v1160_v32  ;;  %v3865_v30 = vld [vmem:[%s4303_s2 + $0xe8] sm:$0xff]  }
 0x333   : > { %v3222_v32 = vld [vmem:[%s3604_s18 + $0x6c] ss:$16 sps:$4 sm:$0x3f]  }
 0x334   : > { %v1162_v35 = vrot.slane %v1161_v61, 4 }
 0x336   : > { %v1163_v55 = vmax.f32 %v1161_v61, %v1162_v35 }
 0x338   : > { %v1164_v5 = vrot.slane %v1163_v55, 2 }
 0x33a   : > { %v1165_v52 = vmax.f32 %v1163_v55, %v1164_v5 }
 0x33c   : > { %v1166_v47 = vrot.slane %v1165_v52, 1 }
 0x33e   : > { %v1167_v57 = vmax.f32 %v1165_v52, %v1166_v47 }
 0x340   : > { %v1168_v59 = vsub.f32 %v1149_v10, %v1167_v57  ;;  %v1169_v31 = vsub.f32 %v1150_v14, %v1167_v57  ;;  %v1170_v34 = vsub.f32 %v1151_v22, %v1167_v57  ;;  %v1171_v43 = vsub.f32 %v1152_v16, %v1167_v57  ;;  %v3221_v22 = vld [vmem:[%s3604_s18 + $0x4c] ss:$16 sps:$4 sm:$0xff]  }
 0x342   : > { %v1172_v37 = vmul.f32 1.442695, %v1168_v59  ;;  %v1174_v36 = vmul.f32 1.442695, %v1169_v31  ;;  %v1176_v9 = vmul.f32 1.442695, %v1170_v34 }
 0x343   : > { %v1178_v39 = vmul.f32 1.442695, %v1171_v43 }
 0x344   : > { %3253 = vpow2.f32 %v1172_v37 }
 0x345   : > { %3255 = vpow2.f32 %v1174_v36 }
 0x346   : > { %3257 = vpow2.f32 %v1176_v9 }
 0x347   : > { %3259 = vpow2.f32 %v1178_v39 }
 0x351   : > { %v3254_v60 = vpop.eup %3253 }
 0x352   : > { %v3256_v41 = vpop.eup %3255  ;;  %v1180_v40 = vsel %vm1153_vm3, %v3254_v60, 0.0 }
 0x353   : > { %v3258_v56 = vpop.eup %3257  ;;  %v1181_v53 = vsel %vm1153_vm3, %v3256_v41, 0.0 }
 0x354   : > { %v3260_v48 = vpop.eup %3259  ;;  %v1182_v49 = vadd.f32 %v1181_v53, %v1180_v40  ;;  %v1183_v1 = vsel %vm1153_vm3, %v3258_v56, 0.0 }
 0x355   : > { %v1185_v63 = vsel %vm1157_vm4, %v3260_v48, 0.0 }
 0x356   : > { %v1184_v50 = vadd.f32 %v1183_v1, %v1182_v49 }
 0x358   : > { %v1186_v54 = vadd.f32 %v1185_v63, %v1184_v50 }
 0x35a   : > { %v1187_v0 = vrot.slane %v1186_v54, 4 }
 0x35c   : > { %v1188_v2 = vadd.f32 %v1187_v0, %v1186_v54 }
 0x35e   : > { %v1189_v4 = vrot.slane %v1188_v2, 2 }
 0x360   : > { %v1190_v6 = vadd.f32 %v1189_v4, %v1188_v2 }
 0x362   : > { %v1191_v8 = vrot.slane %v1190_v6, 1 }
 0x364   : > { %v1192_v10 = vadd.f32 %v1191_v8, %v1190_v6 }
 0x366   : > { %3261 = vrcp.f32 %v1192_v10 }
 0x373   : > { %v3262_v12 = vpop.eup %3261 }
 0x374   : > { %v1194_v14 = vmul.f32 %v3262_v12, %v3254_v60  ;;  %v1195_v16 = vmul.f32 %v3262_v12, %v3256_v41  ;;  %v1196_v18 = vmul.f32 %v3262_v12, %v3258_v56  ;;  %v1197_v26 = vmul.f32 %v3262_v12, %v3260_v48 }
 0x376   : > { %3084 = vmatprep.mubr.msk.f32.mxu1 %vm1153_vm3, %v1194_v14 }
 0x377   : > { %3085 = vmatmul.mubr.msk.f32.vlgmr.msra.gmra.mxu1 %vm1153_vm3, %v1195_v16 }
 0x378   : > { %2947 = vmatpush3.bf16.msra.mxu1 %v3844_v20  ;;  %3087 = vmatprep.mubr.msk.f32.mxu1 %vm1153_vm3, %v1196_v18 }
 0x379   : > { %2948 = vmatprep.subr.bf16.mxu1 %v3852_v24 }
 0x37b   : > { %3088 = vmatmul.mubr.msk.f32.gmra.mxu1 %vm1153_vm3, %v1197_v26 }
 0x37c   : > { %2949 = vmatpush3.bf16.msra.mxu1 %v3859_v28  ;;  %1530 = vmatprep.mubr.bf16.mxu1 %v3221_v22 }
 0x37d   : > { %2950 = vmatprep.subr.bf16.mxu1 %v3865_v30 }
 0x380   : > { %2951 = vmatpush3.bf16.msra.mxu1 %v3464_v11  ;;  %v3219_v11 = vld [vmem:[%s3604_s18 + $0x48] ss:$16 sps:$4 sm:$0xff]  }
 0x381   : > { %2952 = vmatprep.subr.bf16.mxu1 %v3476_v13  ;;  %v4312_v13 = vld [vmem:[#allocation2_spill] sm:$0xff] }
 0x384   : > { %2953 = vmatpush3.bf16.msra.mxu1 %v3488_v15  ;;  %v3224_v15 = vld [vmem:[%s3604_s18 + $0x68] ss:$16 sps:$4 sm:$0x3f]  }
 0x385   : > { %2954 = vmatprep.subr.bf16.mxu1 %v3500_v17 }
 0x388   : > { %2955 = vmatpush3.bf16.msra.mxu1 %v3514_v19 }
 0x389   : > { %2956 = vmatprep.subr.bf16.mxu1 %v3526_v21 }
 0x38c   : > { %2957 = vmatpush3.bf16.msra.mxu1 %v3542_v23 }
 0x38d   : > { %2958 = vmatprep.subr.bf16.mxu1 %v3554_v25  ;;  %v2934_v25 = vpop.f32.mrf.mxu0 }
 0x390   : > { %2959 = vmatpush3.bf16.msra.mxu1 %v3567_v27  ;;  %v2935_v27 = vpop.f32.mrf.mxu0 }
 0x391   : > { %2960 = vmatprep.subr.bf16.mxu1 %v3579_v29  ;;  %v2936_v50 = vadd.f32 %v2935_v27, %v2934_v25 }
 0x392   : > { %v2937_v29 = vpop.f32.mrf.mxu0 }
 0x393   : > { %v1484_v6 = vadd.f32 %v2936_v50, %v3649_v38 }
 0x394   : > { %2961 = vmatpush3.bf16.msra.mxu1 %v4312_v13  ;;  %v2938_v61 = vpop.f32.mrf.mxu0 }
 0x395   : > { %v2939_v41 = vadd.f32 %v2938_v61, %v2937_v29 }
 0x396   : > { %v2940_v35 = vpop.f32.mrf.mxu0 }
 0x397   : > { %1531 = vmatmul.mubr.bf16.vlgmr.msra.gmra.mxu1 %v3219_v11  ;;  %v1487_v63 = vadd.f32 %v2939_v41, %v3649_v38 }
 0x398   : > { %1538 = vmatprep.mubr.bf16.mxu1 %v3222_v32  ;;  %v2941_v5 = vpop.f32.mrf.mxu0 }
 0x399   : > { %v2942_v31 = vadd.f32 %v2941_v5, %v2940_v35 }
 0x39a   : > { %v2943_v47 = vpop.f32.mrf.mxu0 }
 0x39b   : > { %v1492_v36 = vadd.f32 %v2942_v31, %v3649_v38 }
 0x39c   : > { %v2944_v34 = vpop.f32.mrf.mxu0 }
 0x39d   : > { %v2945_v9 = vadd.f32 %v2944_v34, %v2943_v47 }
 0x39f   : > { %1539 = vmatmul.mubr.bf16.gmra.mxu1 %v3224_v15  ;;  %v1495_v53 = vadd.f32 %v2945_v9, %v3649_v38 }
 0x437   : > { %v3890_v17 = vpop.f32.mrf.mxu1 }
 0x438   : > { %1354 = vst.msk [vmem:[%s3888_s17 + $0x8] sm:$0xff] %vm759_vm0, %v3890_v17 }
 0x439   : > { %v3895_v19 = vpop.f32.mrf.mxu1 }
 0x43a   : > { %1353 = vst.msk [vmem:[%s3888_s17] sm:$0xff] %vm759_vm0, %v3895_v19 }
 0x43b   : > { %v3900_v21 = vpop.f32.mrf.mxu1 }
 0x43c   : > { %1356 = vst.msk [vmem:[%s3888_s17 + $0x18] sm:$0xf] %vm769_vm1, %v3900_v21 }
 0x43d   : > { %v3905_v23 = vpop.f32.mrf.mxu1 }
 0x43e   : > { %1355 = vst.msk [vmem:[%s3888_s17 + $0x10] sm:$0xff] %vm759_vm0, %v3905_v23 }
 0x457   : > { %v2962_v55 = vpop.f32.mrf.mxu1 }
 0x459   : > { %v2963_v52 = vpop.f32.mrf.mxu1 }
 0x45a   : > { %v2964_v0 = vadd.f32 %v2963_v52, %v2962_v55 }
 0x45b   : > { %v2965_v57 = vpop.f32.mrf.mxu1 }
 0x45c   : > { %v1533_v8 = vadd.f32 %v2964_v0, %v1484_v6 }
 0x45d   : > { %v2966_v59 = vpop.f32.mrf.mxu1 }
 0x45e   : > { %v2967_v48 = vadd.f32 %v2966_v59, %v2965_v57  ;;  %v1547_v12 = vsel %vm759_vm0, %v1533_v8, 0.0 }
 0x45f   : > { %v2968_v43 = vpop.f32.mrf.mxu1 }
 0x460   : > { %v1536_v2 = vadd.f32 %v2967_v48, %v1487_v63 }
 0x461   : > { %v2969_v37 = vpop.f32.mrf.mxu1 }
 0x462   : > { %v2970_v39 = vadd.f32 %v2969_v37, %v2968_v43  ;;  %v1550_v10 = vsel %vm759_vm0, %v1536_v2, 0.0 }
 0x463   : > { %v2971_v60 = vpop.f32.mrf.mxu1 }
 0x464   : > { %v1541_v40 = vadd.f32 %v2970_v39, %v1492_v36 }
 0x465   : > { %v2972_v56 = vpop.f32.mrf.mxu1 }
 0x466   : > { %v2973_v49 = vadd.f32 %v2972_v56, %v2971_v60  ;;  %v1553_v1 = vsel %vm759_vm0, %v1541_v40, 0.0 }
 0x467   : > { %1554 = vadd.xlane.f32.xlu1 %v1553_v1 }
 0x468   : > { %v1544_v54 = vadd.f32 %v2973_v49, %v1495_v53 }
 0x46a   : > { %v1556_v4 = vsel %vm769_vm1, %v1544_v54, 0.0 }
 0x46b   : > { %1557 = vadd.xlane.f32.xlu0 %v1556_v4 }
 0x46f   : > { %1551 = vadd.xlane.f32.xlu0 %v1550_v10 }
 0x473   : > { %1548 = vadd.xlane.f32.xlu0 %v1547_v12  ;;  %v3303_v12 = vld [vmem:[%s4303_s2 + $0xf8] sm:$0xff]  }
 0x4f0   : > { %v1555_v14 = vpop.xlane.xlu1 %1554 }
 0x4f1   : > { %v1561_v16 = vmul.f32 0.015625, %v1555_v14 }
 0x4f3   : > { %v1565_v18 = vsub.f32 %v1541_v40, %v1561_v16 }
 0x4f4   : > { %v1558_v22 = vpop.xlane.xlu0 %1557 }
 0x4f5   : > { %v1562_v26 = vmul.f32 0.015625, %v1558_v22  ;;  %v1569_v11 = vmul.f32 %v1565_v18, %v1565_v18 }
 0x4f7   : > { %v1566_v13 = vsub.f32 %v1544_v54, %v1562_v26  ;;  %v1577_v32 = vsel %vm759_vm0, %v1569_v11, 0.0 }
 0x4f8   : > { %1578 = vadd.xlane.f32.xlu1 %v1577_v32  ;;  %v1552_v15 = vpop.xlane.xlu0 %1551  ;;  %v3304_v32 = vld [vmem:[%s4303_s2 + $0x78] sm:$0xff]  }
 0x4f9   : > { %v1560_v25 = vmul.f32 0.015625, %v1552_v15  ;;  %v1570_v38 = vmul.f32 %v1566_v13, %v1566_v13  ;;  %v3306_v15 = vld [vmem:[%s4303_s2 + $0x70] sm:$0xff]  }
 0x4fb   : > { %v1564_v27 = vsub.f32 %v1536_v2, %v1560_v25  ;;  %v1580_v29 = vsel %vm769_vm1, %v1570_v38, 0.0  ;;  %v3307_v25 = vld [vmem:[%s4303_s2 + $0x30] sm:$0xff]   ;;  %v3308_v38 = vld [vmem:[%s4303_s2 + $0x68] sm:$0xff]  }
 0x4fc   : > { %1581 = vadd.xlane.f32.xlu0 %v1580_v29  ;;  %v1549_v61 = vpop.xlane.xlu0 %1548  ;;  %v3310_v29 = vld [vmem:[%s4303_s2 + $0x60] sm:$0xff]  }
 0x4fd   : > { %v1559_v35 = vmul.f32 0.015625, %v1549_v61  ;;  %v1568_v55 = vmul.f32 %v1564_v27, %v1564_v27  ;;  %v3311_v61 = vld [vmem:[%s4303_s2 + $0x20] sm:$0xff]  }
 0x4ff   : > { %v1563_v5 = vsub.f32 %v1533_v8, %v1559_v35  ;;  %v1574_v52 = vsel %vm759_vm0, %v1568_v55, 0.0  ;;  %v3312_v35 = vld [vmem:[%s4303_s2 + $0x58] sm:$0xff]  }
 0x500   : > { %1575 = vadd.xlane.f32.xlu0 %v1574_v52  ;;  %v3313_v55 = vld [vmem:[%s4303_s2 + $0x18] sm:$0xff]   ;;  %v3315_v52 = vld [vmem:[%s4303_s2 + $0x10] sm:$0xff]  }
 0x501   : > { %v1567_v47 = vmul.f32 %v1563_v5, %v1563_v5 }
 0x503   : > { %v1571_v57 = vsel %vm759_vm0, %v1567_v47, 0.0  ;;  %v3316_v47 = vld [vmem:[%s4303_s2 + $0x48] sm:$0xff]  }
 0x504   : > { %1572 = vadd.xlane.f32.xlu1 %v1571_v57  ;;  %v3317_v57 = vld [vmem:[%s4303_s2 + $0x8] sm:$0xff]  }
 0x515   : > { %1759 = vrot.lane.b32.xlu1 %v1541_v40, %s3342_s21 }
 0x516   : > { %1761 = vrot.lane.b32.xlu0 %v1544_v54, %s3342_s21 }
 0x519   : > { %1757 = vrot.lane.b32.xlu1 %v1536_v2, %s3342_s21 }
 0x51d   : > { %1755 = vrot.lane.b32.xlu1 %v1533_v8, %s3342_s21 }
 0x581   : > { %v1579_v59 = vpop.xlane.xlu1 %1578 }
 0x582   : > { %v1585_v31 = vmul.f32 0.015625, %v1579_v59  ;;  %v3318_v59 = vld [vmem:[%s4303_s2 + $0x40] sm:$0xff]  }
 0x584   : > { %v1589_v34 = vadd.f32 1e-05, %v1585_v31  ;;  %v3225_v31 = vld [vmem:[%s3604_s18 + $0x80] ss:$16 sps:$4 sm:$0xff]  }
 0x585   : > { %v1582_v43 = vpop.xlane.xlu0 %1581 }
 0x586   : > { %3263 = vrsqrt.f32 %v1589_v34  ;;  %v1586_v37 = vmul.f32 0.015625, %v1582_v43  ;;  %v3319_v34 = vld [vmem:[%s4303_s2] sm:$0xff]  }
 0x587   : > { %v3228_v43 = vld [vmem:[%s3604_s18 + $0xa4] ss:$16 sps:$4 sm:$0x3f]  }
 0x588   : > { %v1590_v36 = vadd.f32 1e-05, %v1586_v37  ;;  %v3230_v37 = vld [vmem:[%s3604_s18 + $0xa0] ss:$16 sps:$4 sm:$0x3f]  }
 0x589   : > { %v1576_v9 = vpop.xlane.xlu0 %1575 }
 0x58a   : > { %3265 = vrsqrt.f32 %v1590_v36  ;;  %v1584_v39 = vmul.f32 0.015625, %v1576_v9 }
 0x58c   : > { %v1588_v60 = vadd.f32 1e-05, %v1584_v39 }
 0x58d   : > { %v1573_v41 = vpop.xlane.xlu1 %1572  ;;  %v1762_v56 = vpop.permute.xlu0 %1761 }
 0x58e   : > { %3267 = vrsqrt.f32 %v1588_v60  ;;  %v1583_v40 = vmul.f32 0.015625, %v1573_v41  ;;  %3104 = vmatprep.subr.msk.mxu1 %vm1225_vm2, %v1762_v56 }
 0x58f   : > { %3105 = vmatpush3.msk.msra.mxu1 %vm1225_vm2, %v1762_v56 }
 0x590   : > { %v1587_v53 = vadd.f32 1e-05, %v1583_v40 }
 0x591   : > { %v1760_v48 = vpop.permute.xlu1 %1759 }
 0x592   : > { %3269 = vrsqrt.f32 %v1587_v53  ;;  %3106 = vmatprep.subr.mxu1 %v1760_v48 }
 0x593   : > { %v3264_v49 = vpop.eup %3263  ;;  %3107 = vmatpush3.msra.mxu1 %v1760_v48 }
 0x594   : > { %v1597_v50 = vmul.f32 %v3264_v49, %v1565_v18 }
 0x595   : > { %v1758_v1 = vpop.permute.xlu1 %1757 }
 0x596   : > { %3108 = vmatprep.subr.mxu1 %v1758_v1  ;;  %v1601_v4 = vmul.f32 %v3752_v45, %v1597_v50 }
 0x597   : > { %v3266_v63 = vpop.eup %3265  ;;  %3109 = vmatpush3.msra.mxu1 %v1758_v1 }
 0x598   : > { %v1598_v54 = vmul.f32 %v3266_v63, %v1566_v13  ;;  %v1605_v14 = vadd.f32 %v3759_v7, %v1601_v4 }
 0x599   : > { %v1756_v0 = vpop.permute.xlu1 %1755 }
 0x59a   : > { %3110 = vmatprep.subr.mxu1 %v1756_v0  ;;  %v1602_v2 = vmul.f32 %v3752_v45, %v1598_v54 }
 0x59b   : > { %v3268_v6 = vpop.eup %3267  ;;  %3111 = vmatpush3.msra.mxu1 %v1756_v0 }
 0x59c   : > { %v1606_v8 = vadd.f32 %v3759_v7, %v1602_v2  ;;  %v1596_v10 = vmul.f32 %v3268_v6, %v1564_v27  ;;  %3018 = vmatprep.subr.bf16.mxu1 %v3303_v12  ;;  %v3309_v27 = vld [vmem:[%s4303_s2 + $0x28] sm:$0xff]  }
 0x59e   : > { %3090 = vmatprep.subr.msk.mxu0 %vm759_vm0, %v1606_v8  ;;  %v1600_v16 = vmul.f32 %v3752_v45, %v1596_v10 }
 0x59f   : > { %v3270_v18 = vpop.eup %3269  ;;  %3091 = vmatpush3.xpose.msk.msra.mxu0 %vm759_vm0, %v1606_v8 }
 0x5a0   : > { %3092 = vmatprep.subr.msk.mxu0 %vm759_vm0, %v1605_v14  ;;  %v1595_v22 = vmul.f32 %v3270_v18, %v1563_v5  ;;  %v1604_v26 = vadd.f32 %v3759_v7, %v1600_v16  ;;  %v3314_v5 = vld [vmem:[%s4303_s2 + $0x50] sm:$0xff]  }
 0x5a2   : > { %v1599_v11 = vmul.f32 %v3752_v45, %v1595_v22  ;;  %v3305_v45 = vld [vmem:[%s4303_s2 + $0x38] sm:$0xff]  }
 0x5a3   : > { %3093 = vmatpush3.xpose.msk.msra.mxu0 %vm759_vm0, %v1605_v14 }
 0x5a4   : > { %3094 = vmatprep.subr.msk.mxu0 %vm759_vm0, %v1604_v26  ;;  %v1603_v13 = vadd.f32 %v3759_v7, %v1599_v11  ;;  %v3227_v7 = vld [vmem:[%s3604_s18 + $0x84] ss:$16 sps:$4 sm:$0xff]  }
 0x5a7   : > { %3095 = vmatpush3.xpose.msk.msra.mxu0 %vm759_vm0, %v1604_v26 }
 0x5a8   : > { %3096 = vmatprep.subr.msk.mxu0 %vm759_vm0, %v1603_v13 }
 0x5ab   : > { %3097 = vmatpush3.xpose.msk.msra.mxu0 %vm759_vm0, %v1603_v13 }
 0x5ac   : > { %2990 = vmatprep.subr.bf16.mxu0 %v3304_v32 }
 0x5ae   : > { %3099 = vmatmul.mubr.msk.f32.vlgmr.msra.gmra.mxu0 %vm759_vm0, %v3794_v33 }
 0x5af   : > { %3101 = vmatprep.mubr.msk.f32.mxu0 %vm759_vm0, %v3799_v3  ;;  %2991 = vmatpush3.bf16.msra.mxu0 %v3305_v45 }
 0x5b0   : > { %2992 = vmatprep.subr.bf16.mxu0 %v3306_v15 }
 0x5b2   : > { %3102 = vmatmul.mubr.msk.f32.gmra.mxu0 %vm759_vm0, %v3808_v51 }
 0x5b3   : > { %2993 = vmatpush3.bf16.msra.mxu0 %v3307_v25  ;;  %2035 = vmatprep.mubr.bf16.mxu0 %v3227_v7 }
 0x5b4   : > { %2994 = vmatprep.subr.bf16.mxu0 %v3308_v38 }
 0x5b7   : > { %2995 = vmatpush3.bf16.msra.mxu0 %v3309_v27 }
 0x5b8   : > { %2996 = vmatprep.subr.bf16.mxu0 %v3310_v29 }
 0x5bb   : > { %2997 = vmatpush3.bf16.msra.mxu0 %v3311_v61 }
 0x5bc   : > { %2998 = vmatprep.subr.bf16.mxu0 %v3312_v35 }
 0x5bf   : > { %2999 = vmatpush3.bf16.msra.mxu0 %v3313_v55 }
 0x5c0   : > { %3000 = vmatprep.subr.bf16.mxu0 %v3314_v5 }
 0x5c3   : > { %3001 = vmatpush3.bf16.msra.mxu0 %v3315_v52 }
 0x5c4   : > { %3002 = vmatprep.subr.bf16.mxu0 %v3316_v47 }
 0x5c7   : > { %3003 = vmatpush3.bf16.msra.mxu0 %v3317_v57 }
 0x5c8   : > { %3004 = vmatprep.subr.bf16.mxu0 %v3318_v59 }
 0x5cb   : > { %3005 = vmatpush3.bf16.msra.mxu0 %v3319_v34 }
 0x5ce   : > { %2036 = vmatmul.mubr.bf16.vlgmr.msra.gmra.mxu0 %v3225_v31 }
 0x5cf   : > { %2043 = vmatprep.mubr.bf16.mxu0 %v3228_v43 }
 0x5d6   : > { %2044 = vmatmul.mubr.bf16.gmra.mxu0 %v3230_v37 }
 0x5d7   : > { %3126 = vmatprep.mubr.msk.f32.mxu0 %vm759_vm0, %v3781_v62 }
 0x66e   : > { %v3100_v36 = vpop.f32.mrf.mxu0 }
 0x66f   : > { %v1705_v41 = vmul.f32 0.125, %v3100_v36 }
 0x670   : > { %v1685_v9 = vpop.f32.mrf.mxu0 }
 0x671   : > { %v1704_v39 = vmul.f32 0.125, %v1685_v9  ;;  %v1709_v49 = vsel %vm1153_vm3, %v1705_v41, -inf  ;;  %v3233_v9 = vld [vmem:[%s3604_s18 + $0x8c] ss:$16 sps:$4 sm:$0xff]  }
 0x672   : > { %v3103_v60 = vpop.f32.mrf.mxu0 }
 0x673   : > { %v1707_v56 = vmul.f32 0.125, %v3103_v60  ;;  %v1708_v53 = vsel %vm1153_vm3, %v1704_v39, -inf  ;;  %v3320_v60 = vld [vmem:[%s4303_s2 + $0xa8] sm:$0xff]  }
 0x674   : > { %v1695_v40 = vpop.f32.mrf.mxu0  ;;  %v1712_v63 = vmax.f32 %v1708_v53, %v1709_v49  ;;  %v3328_v53 = vld [vmem:[%s4303_s2 + $0x88] sm:$0xff]  }
 0x675   : > { %v1706_v48 = vmul.f32 0.125, %v1695_v40  ;;  %v1711_v1 = vsel %vm1157_vm4, %v1707_v56, -inf  ;;  %v3327_v40 = vld [vmem:[%s4303_s2 + $0xc8] sm:$0xff]  }
 0x676   : > { %v3231_v49 = vld [vmem:[%s3604_s18 + $0x88] ss:$16 sps:$4 sm:$0xff]  }
 0x677   : > { %v1710_v50 = vsel %vm1153_vm3, %v1706_v48, -inf }
 0x678   : > { %v1713_v54 = vmax.f32 %v1710_v50, %v1711_v1  ;;  %v3330_v1 = vld [vmem:[%s4303_s2 + $0x80] sm:$0xff]   ;;  %v3234_v50 = vld [vmem:[%s3604_s18 + $0xac] ss:$16 sps:$4 sm:$0x3f]  }
 0x67a   : > { %v1714_v0 = vmax.f32 %v1712_v63, %v1713_v54  ;;  %v3236_v63 = vld [vmem:[%s3604_s18 + $0xa8] ss:$16 sps:$4 sm:$0x3f]  }
 0x67c   : > { %v1715_v62 = vrot.slane %v1714_v0, 4 }
 0x67e   : > { %v1716_v2 = vmax.f32 %v1714_v0, %v1715_v62 }
 0x680   : > { %v1717_v4 = vrot.slane %v1716_v2, 2 }
 0x682   : > { %v1718_v6 = vmax.f32 %v1716_v2, %v1717_v4 }
 0x684   : > { %v1719_v8 = vrot.slane %v1718_v6, 1 }
 0x686   : > { %v1720_v10 = vmax.f32 %v1718_v6, %v1719_v8 }
 0x688   : > { %v1721_v12 = vsub.f32 %v1704_v39, %v1720_v10  ;;  %v1722_v14 = vsub.f32 %v1705_v41, %v1720_v10  ;;  %v1723_v16 = vsub.f32 %v1706_v48, %v1720_v10  ;;  %v1724_v18 = vsub.f32 %v1707_v56, %v1720_v10  ;;  %v3325_v41 = vld [vmem:[%s4303_s2 + $0xd0] sm:$0xff]   ;;  %v3329_v48 = vld [vmem:[%s4303_s2 + $0xc0] sm:$0xff]  }
 0x689   : > { %v3326_v56 = vld [vmem:[%s4303_s2 + $0x90] sm:$0xff]  }
 0x68a   : > { %v1725_v22 = vmul.f32 1.442695, %v1721_v12  ;;  %v1727_v26 = vmul.f32 1.442695, %v1722_v14  ;;  %v1729_v11 = vmul.f32 1.442695, %v1723_v16 }
 0x68b   : > { %v1731_v13 = vmul.f32 1.442695, %v1724_v18 }
 0x68c   : > { %3271 = vpow2.f32 %v1725_v22 }
 0x68d   : > { %3273 = vpow2.f32 %v1727_v26 }
 0x68e   : > { %3275 = vpow2.f32 %v1729_v11  ;;  %v3006_v4 = vpop.f32.mrf.mxu0 }
 0x68f   : > { %3277 = vpow2.f32 %v1731_v13 }
 0x690   : > { %v3007_v6 = vpop.f32.mrf.mxu0 }
 0x692   : > { %v3009_v8 = vpop.f32.mrf.mxu0 }
 0x694   : > { %v3010_v10 = vpop.f32.mrf.mxu0 }
 0x696   : > { %v3012_v12 = vpop.f32.mrf.mxu0 }
 0x698   : > { %v3013_v16 = vpop.f32.mrf.mxu0 }
 0x699   : > { %v3272_v32 = vpop.eup %3271  ;;  %v3014_v13 = vadd.f32 %v3013_v16, %v3012_v12 }
 0x69a   : > { %v3274_v45 = vpop.eup %3273  ;;  %v1733_v7 = vsel %vm1153_vm3, %v3272_v32, 0.0  ;;  %v3015_v22 = vpop.f32.mrf.mxu0 }
 0x69b   : > { %v3276_v15 = vpop.eup %3275  ;;  %v1734_v25 = vsel %vm1153_vm3, %v3274_v45, 0.0 }
 0x69c   : > { %v3278_v38 = vpop.eup %3277  ;;  %v1735_v27 = vadd.f32 %v1734_v25, %v1733_v7  ;;  %v1736_v29 = vsel %vm1153_vm3, %v3276_v15, 0.0 }
 0x69d   : > { %v1738_v35 = vsel %vm1157_vm4, %v3278_v38, 0.0 }
 0x69e   : > { %v1737_v61 = vadd.f32 %v1736_v29, %v1735_v27 }
 0x6a0   : > { %v1739_v55 = vadd.f32 %v1738_v35, %v1737_v61  ;;  %v3011_v61 = vadd.f32 %v3010_v10, %v3009_v8 }
 0x6a2   : > { %v1740_v5 = vrot.slane %v1739_v55, 4 }
 0x6a4   : > { %v1741_v52 = vadd.f32 %v1740_v5, %v1739_v55 }
 0x6a6   : > { %v1742_v47 = vrot.slane %v1741_v52, 2 }
 0x6a8   : > { %v1743_v57 = vadd.f32 %v1742_v47, %v1741_v52 }
 0x6aa   : > { %v1744_v59 = vrot.slane %v1743_v57, 1 }
 0x6ac   : > { %v1745_v31 = vadd.f32 %v1744_v59, %v1743_v57  ;;  %v3008_v59 = vadd.f32 %v3007_v6, %v3006_v4 }
 0x6ae   : > { %3279 = vrcp.f32 %v1745_v31 }
 0x6bb   : > { %v3280_v34 = vpop.eup %3279 }
 0x6bc   : > { %v1747_v43 = vmul.f32 %v3280_v34, %v3272_v32  ;;  %v1748_v37 = vmul.f32 %v3280_v34, %v3274_v45  ;;  %v1749_v36 = vmul.f32 %v3280_v34, %v3276_v15  ;;  %v1750_v39 = vmul.f32 %v3280_v34, %v3278_v38  ;;  %v3016_v32 = vpop.f32.mrf.mxu0  ;;  %v3331_v15 = vld [vmem:[%s4304_s3] ss:$0 sm:$0xff] }
 0x6bd   : > { %v2046_v25 = vadd.f32 %v3331_v15, %v3014_v13  ;;  %v3017_v38 = vadd.f32 %v3016_v32, %v3015_v22  ;;  %v2041_v31 = vadd.f32 %v3331_v15, %v3011_v61 }
 0x6be   : > { %3112 = vmatprep.mubr.msk.f32.mxu1 %vm1153_vm3, %v1747_v43 }
 0x6bf   : > { %3113 = vmatmul.mubr.msk.f32.vlgmr.msra.gmra.mxu1 %vm1153_vm3, %v1748_v37  ;;  %v2049_v5 = vadd.f32 %v3331_v15, %v3017_v38 }
 0x6c0   : > { %3019 = vmatpush3.bf16.msra.mxu1 %v3844_v20  ;;  %3115 = vmatprep.mubr.msk.f32.mxu1 %vm1153_vm3, %v1749_v36  ;;  %v3321_v20 = vld [vmem:[%s4303_s2 + $0xe0] sm:$0xff]  }
 0x6c1   : > { %3020 = vmatprep.subr.bf16.mxu1 %v3852_v24  ;;  %v3322_v24 = vld [vmem:[%s4303_s2 + $0xa0] sm:$0xff]  }
 0x6c3   : > { %3116 = vmatmul.mubr.msk.f32.gmra.mxu1 %vm1153_vm3, %v1750_v39 }
 0x6c4   : > { %3021 = vmatpush3.bf16.msra.mxu1 %v3859_v28  ;;  %2084 = vmatprep.mubr.bf16.mxu1 %v3233_v9  ;;  %v3323_v28 = vld [vmem:[%s4303_s2 + $0xd8] sm:$0xff]   ;;  %v2038_v9 = vadd.f32 %v3331_v15, %v3008_v59  ;;  %v3332_v59 = vld [vmem:[%s4305_s4] ss:$0 sm:$0xff] }
 0x6c5   : > { %3022 = vmatprep.subr.bf16.mxu1 %v3865_v30  ;;  %v3324_v30 = vld [vmem:[%s4303_s2 + $0x98] sm:$0xff]  }
 0x6c8   : > { %3023 = vmatpush3.bf16.msra.mxu1 %v3320_v60 }
 0x6c9   : > { %3024 = vmatprep.subr.bf16.mxu1 %v3321_v20 }
 0x6cc   : > { %3025 = vmatpush3.bf16.msra.mxu1 %v3322_v24 }
 0x6cd   : > { %3026 = vmatprep.subr.bf16.mxu1 %v3323_v28 }
 0x6d0   : > { %3027 = vmatpush3.bf16.msra.mxu1 %v3324_v30 }
 0x6d1   : > { %3028 = vmatprep.subr.bf16.mxu1 %v3325_v41 }
 0x6d4   : > { %3029 = vmatpush3.bf16.msra.mxu1 %v3326_v56 }
 0x6d5   : > { %3030 = vmatprep.subr.bf16.mxu1 %v3327_v40 }
 0x6d8   : > { %3031 = vmatpush3.bf16.msra.mxu1 %v3328_v53 }
 0x6d9   : > { %3032 = vmatprep.subr.bf16.mxu1 %v3329_v48 }
 0x6dc   : > { %3033 = vmatpush3.bf16.msra.mxu1 %v3330_v1 }
 0x6df   : > { %2085 = vmatmul.mubr.bf16.vlgmr.msra.gmra.mxu1 %v3231_v49 }
 0x6e0   : > { %2092 = vmatprep.mubr.bf16.mxu1 %v3234_v50 }
 0x6e7   : > { %2093 = vmatmul.mubr.bf16.gmra.mxu1 %v3236_v63 }
 0x77f   : > { %v4060_v54 = vpop.f32.mrf.mxu1 }
 0x780   : > { %2747 = vst.msk [vmem:[%s3888_s17 + $0x28] sm:$0xff] %vm759_vm0, %v4060_v54 }
 0x781   : > { %v4065_v0 = vpop.f32.mrf.mxu1 }
 0x782   : > { %2746 = vst.msk [vmem:[%s3888_s17 + $0x20] sm:$0xff] %vm759_vm0, %v4065_v0 }
 0x783   : > { %v4070_v62 = vpop.f32.mrf.mxu1 }
 0x784   : > { %2749 = vst.msk [vmem:[%s3888_s17 + $0x38] sm:$0xf] %vm769_vm1, %v4070_v62 }
 0x785   : > { %v4075_v2 = vpop.f32.mrf.mxu1 }
 0x786   : > { %2748 = vst.msk [vmem:[%s3888_s17 + $0x30] sm:$0xff] %vm759_vm0, %v4075_v2 }
 0x79f   : > { %v3034_v14 = vpop.f32.mrf.mxu1 }
 0x7a1   : > { %v3035_v18 = vpop.f32.mrf.mxu1 }
 0x7a2   : > { %v3036_v43 = vadd.f32 %v3035_v18, %v3034_v14 }
 0x7a3   : > { %v3037_v26 = vpop.f32.mrf.mxu1 }
 0x7a4   : > { %v2087_v39 = vadd.f32 %v3036_v43, %v2038_v9  ;;  %v3333_v9 = vld [vmem:[%s4306_s5] ss:$0 sm:$0xff] }
 0x7a5   : > { %v3038_v11 = vpop.f32.mrf.mxu1 }
 0x7a6   : > { %v3039_v52 = vadd.f32 %v3038_v11, %v3037_v26  ;;  %v2101_v20 = vsel %vm759_vm0, %v2087_v39, 0.0 }
 0x7a7   : > { %v3040_v45 = vpop.f32.mrf.mxu1 }
 0x7a8   : > { %v2090_v37 = vadd.f32 %v3039_v52, %v2041_v31 }
 0x7a9   : > { %v3041_v7 = vpop.f32.mrf.mxu1 }
 0x7aa   : > { %v3042_v27 = vadd.f32 %v3041_v7, %v3040_v45  ;;  %v2104_v60 = vsel %vm759_vm0, %v2090_v37, 0.0 }
 0x7ab   : > { %v3043_v29 = vpop.f32.mrf.mxu1 }
 0x7ac   : > { %v2095_v35 = vadd.f32 %v3042_v27, %v2046_v25 }
 0x7ad   : > { %v3044_v55 = vpop.f32.mrf.mxu1 }
 0x7ae   : > { %v3045_v47 = vadd.f32 %v3044_v55, %v3043_v29  ;;  %v2107_v57 = vsel %vm759_vm0, %v2095_v35, 0.0 }
 0x7af   : > { %2108 = vadd.xlane.f32.xlu1 %v2107_v57 }
 0x7b0   : > { %v2098_v34 = vadd.f32 %v3045_v47, %v2049_v5 }
 0x7b2   : > { %v2110_v36 = vsel %vm769_vm1, %v2098_v34, 0.0 }
 0x7b3   : > { %2111 = vadd.xlane.f32.xlu0 %v2110_v36 }
 0x7b7   : > { %2105 = vadd.xlane.f32.xlu0 %v2104_v60 }
 0x7bb   : > { %2102 = vadd.xlane.f32.xlu0 %v2101_v20 }
 0x838   : > { %v2109_v24 = vpop.xlane.xlu1 %2108 }
 0x839   : > { %v2115_v28 = vmul.f32 0.015625, %v2109_v24 }
 0x83b   : > { %v2119_v30 = vsub.f32 %v2095_v35, %v2115_v28 }
 0x83c   : > { %v2112_v41 = vpop.xlane.xlu0 %2111 }
 0x83d   : > { %v2116_v56 = vmul.f32 0.015625, %v2112_v41  ;;  %v2123_v40 = vmul.f32 %v2119_v30, %v2119_v30 }
 0x83f   : > { %v4087_v53 = vsub.f32 %v2098_v34, %v2116_v56  ;;  %v2131_v48 = vsel %vm759_vm0, %v2123_v40, 0.0 }
 0x840   : > { %2132 = vadd.xlane.f32.xlu1 %v2131_v48  ;;  %v2106_v49 = vpop.xlane.xlu0 %2105 }
 0x841   : > { %v2114_v1 = vmul.f32 0.015625, %v2106_v49  ;;  %v2124_v50 = vmul.f32 %v4087_v53, %v4087_v53 }
 0x843   : > { %v4092_v63 = vsub.f32 %v2090_v37, %v2114_v1  ;;  %v2134_v4 = vsel %vm769_vm1, %v2124_v50, 0.0 }
 0x844   : > { %2135 = vadd.xlane.f32.xlu0 %v2134_v4  ;;  %v2103_v6 = vpop.xlane.xlu0 %2102 }
 0x845   : > { %v2113_v8 = vmul.f32 0.015625, %v2103_v6  ;;  %v2122_v10 = vmul.f32 %v4092_v63, %v4092_v63 }
 0x847   : > { %v4097_v12 = vsub.f32 %v2087_v39, %v2113_v8  ;;  %v2128_v14 = vsel %vm759_vm0, %v2122_v10, 0.0 }
 0x848   : > { %2129 = vadd.xlane.f32.xlu0 %v2128_v14 }
 0x849   : > { %v2121_v16 = vmul.f32 %v4097_v12, %v4097_v12 }
 0x84b   : > { %v2125_v18 = vsel %vm759_vm0, %v2121_v16, 0.0 }
 0x84c   : > { %2126 = vadd.xlane.f32.xlu1 %v2125_v18 }
 0x85d   : > { %2313 = vrot.lane.b32.xlu1 %v2095_v35, %s3342_s21 }
 0x85e   : > { %2315 = vrot.lane.b32.xlu0 %v2098_v34, %s3342_s21 }
 0x861   : > { %2311 = vrot.lane.b32.xlu1 %v2090_v37, %s3342_s21 }
 0x862   : > { %1317 = vrot.lane.b32.xlu0 %v3895_v19, %s3342_s21 }
 0x865   : > { %2309 = vrot.lane.b32.xlu1 %v2087_v39, %s3342_s21 }
 0x866   : > { %1869 = vrot.lane.b32.xlu0 %v4065_v0, %s3342_s21 }
 0x869   : > { %1319 = vrot.lane.b32.xlu1 %v3890_v17, %s3342_s21 }
 0x86a   : > { %1321 = vrot.lane.b32.xlu0 %v3905_v23, %s3342_s21 }
 0x86d   : > { %1871 = vrot.lane.b32.xlu1 %v4060_v54, %s3342_s21 }
 0x86e   : > { %1323 = vrot.lane.b32.xlu0 %v3900_v21, %s3342_s21 }
 0x871   : > { %1873 = vrot.lane.b32.xlu1 %v4075_v2, %s3342_s21 }
 0x875   : > { %1875 = vrot.lane.b32.xlu1 %v4070_v62, %s3342_s21 }
 0x8c9   : > { %v2133_v19 = vpop.xlane.xlu1 %2132 }
 0x8ca   : > { %v2139_v0 = vmul.f32 0.015625, %v2133_v19 }
 0x8cc   : > { %v2143_v22 = vadd.f32 1e-05, %v2139_v0 }
 0x8cd   : > { %v2136_v26 = vpop.xlane.xlu0 %2135 }
 0x8ce   : > { %3281 = vrsqrt.f32 %v2143_v22  ;;  %v2140_v17 = vmul.f32 0.015625, %v2136_v26 }
 0x8d0   : > { %v2144_v11 = vadd.f32 1e-05, %v2140_v17 }
 0x8d1   : > { %v2130_v23 = vpop.xlane.xlu0 %2129 }
 0x8d2   : > { %3283 = vrsqrt.f32 %v2144_v11  ;;  %v2138_v13 = vmul.f32 0.015625, %v2130_v23 }
 0x8d4   : > { %v2142_v54 = vadd.f32 1e-05, %v2138_v13 }
 0x8d5   : > { %v2127_v32 = vpop.xlane.xlu1 %2126  ;;  %v2316_v45 = vpop.permute.xlu0 %2315 }
 0x8d6   : > { %3285 = vrsqrt.f32 %v2142_v54  ;;  %v2137_v21 = vmul.f32 0.015625, %v2127_v32  ;;  %3132 = vmatprep.subr.msk.mxu1 %vm1225_vm2, %v2316_v45 }
 0x8d7   : > { %3133 = vmatpush3.msk.msra.mxu1 %vm1225_vm2, %v2316_v45 }
 0x8d8   : > { %v2141_v62 = vadd.f32 1e-05, %v2137_v21 }
 0x8d9   : > { %v2314_v2 = vpop.permute.xlu1 %2313  ;;  %v1318_v7 = vpop.permute.xlu0 %1317 }
 0x8da   : > { %3287 = vrsqrt.f32 %v2141_v62  ;;  %v4126_v15 = vsub.f32 %v3678_v44, %v1318_v7  ;;  %3134 = vmatprep.subr.mxu1 %v2314_v2 }
 0x8db   : > { %v3282_v25 = vpop.eup %3281  ;;  %3135 = vmatpush3.msra.mxu1 %v2314_v2 }
 0x8dc   : > { %v1357_v38 = vmul.f32 %v4126_v15, %v4126_v15  ;;  %v2151_v61 = vmul.f32 %v3282_v25, %v2119_v30 }
 0x8dd   : > { %v2312_v27 = vpop.permute.xlu1 %2311  ;;  %v1870_v29 = vpop.permute.xlu0 %1869 }
 0x8de   : > { %v4131_v35 = vsub.f32 %v3678_v44, %v1870_v29  ;;  %3136 = vmatprep.subr.mxu1 %v2312_v27  ;;  %1365 = vrot.lane.b32.xlu0 %v1357_v38, %s3342_s21  ;;  %v2155_v31 = vmul.f32 %v3332_v59, %v2151_v61 }
 0x8df   : > { %v3284_v55 = vpop.eup %3283  ;;  %3137 = vmatpush3.msra.mxu1 %v2312_v27 }
 0x8e0   : > { %v1911_v5 = vmul.f32 %v4131_v35, %v4131_v35  ;;  %v2152_v52 = vmul.f32 %v3284_v55, %v4087_v53  ;;  %v2159_v28 = vadd.f32 %v3333_v9, %v2155_v31 }
 0x8e1   : > { %v2310_v47 = vpop.permute.xlu1 %2309  ;;  %v1322_v57 = vpop.permute.xlu0 %1321 }
 0x8e2   : > { %v4141_v34 = vsub.f32 %v3686_v58, %v1322_v57  ;;  %3138 = vmatprep.subr.mxu1 %v2310_v47  ;;  %1919 = vrot.lane.b32.xlu0 %v1911_v5, %s3342_s21  ;;  %v2156_v43 = vmul.f32 %v3332_v59, %v2152_v52 }
 0x8e3   : > { %v3286_v37 = vpop.eup %3285  ;;  %3139 = vmatpush3.msra.mxu1 %v2310_v47 }
 0x8e4   : > { %v1359_v36 = vmul.f32 %v4141_v34, %v4141_v34  ;;  %v2160_v39 = vadd.f32 %v3333_v9, %v2156_v43  ;;  %v2150_v60 = vmul.f32 %v3286_v37, %v4092_v63 }
 0x8e5   : > { %v1320_v20 = vpop.permute.xlu1 %1319  ;;  %v1324_v24 = vpop.permute.xlu0 %1323 }
 0x8e6   : > { %v4151_v30 = vsub.f32 %v3660_v42, %v1320_v20  ;;  %v4154_v41 = vsub.f32 %v3670_v46, %v1324_v24  ;;  %3118 = vmatprep.subr.msk.mxu0 %vm759_vm0, %v2160_v39  ;;  %1369 = vrot.lane.b32.xlu0 %v1359_v36, %s3342_s21  ;;  %v2154_v56 = vmul.f32 %v3332_v59, %v2150_v60 }
 0x8e7   : > { %v3288_v40 = vpop.eup %3287  ;;  %3119 = vmatpush3.xpose.msk.msra.mxu0 %vm759_vm0, %v2160_v39 }
 0x8e8   : > { %v1358_v53 = vmul.f32 %v4151_v30, %v4151_v30  ;;  %v1360_v48 = vmul.f32 %v4154_v41, %v4154_v41  ;;  %3120 = vmatprep.subr.msk.mxu0 %vm759_vm0, %v2159_v28  ;;  %v2149_v49 = vmul.f32 %v3288_v40, %v4097_v12  ;;  %v2158_v63 = vadd.f32 %v3333_v9, %v2154_v56 }
 0x8e9   : > { %v1872_v1 = vpop.permute.xlu1 %1871 }
 0x8ea   : > { %v4166_v50 = vsub.f32 %v3660_v42, %v1872_v1  ;;  %1367 = vrot.lane.b32.xlu1 %v1358_v53, %s3342_s21  ;;  %1371 = vrot.lane.b32.xlu0 %v1360_v48, %s3342_s21  ;;  %v2153_v4 = vmul.f32 %v3332_v59, %v2149_v49 }
 0x8eb   : > { %3121 = vmatpush3.xpose.msk.msra.mxu0 %vm759_vm0, %v2159_v28 }
 0x8ec   : > { %v1912_v6 = vmul.f32 %v4166_v50, %v4166_v50  ;;  %3122 = vmatprep.subr.msk.mxu0 %vm759_vm0, %v2158_v63  ;;  %v2157_v12 = vadd.f32 %v3333_v9, %v2153_v4 }
 0x8ed   : > { %v1874_v8 = vpop.permute.xlu1 %1873 }
 0x8ee   : > { %v4175_v10 = vsub.f32 %v3686_v58, %v1874_v8  ;;  %1921 = vrot.lane.b32.xlu1 %v1912_v6, %s3342_s21 }
 0x8ef   : > { %3123 = vmatpush3.xpose.msk.msra.mxu0 %vm759_vm0, %v2158_v63 }
 0x8f0   : > { %v1913_v14 = vmul.f32 %v4175_v10, %v4175_v10  ;;  %3124 = vmatprep.subr.msk.mxu0 %vm759_vm0, %v2157_v12 }
 0x8f1   : > { %v1876_v16 = vpop.permute.xlu1 %1875 }
 0x8f2   : > { %v4183_v18 = vsub.f32 %v3670_v46, %v1876_v16  ;;  %1923 = vrot.lane.b32.xlu1 %v1913_v14, %s3342_s21 }
 0x8f3   : > { %3125 = vmatpush3.xpose.msk.msra.mxu0 %vm759_vm0, %v2157_v12 }
 0x8f4   : > { %v1914_v19 = vmul.f32 %v4183_v18, %v4183_v18 }
 0x8f6   : > { %1925 = vrot.lane.b32.xlu1 %v1914_v19, %s3342_s21  ;;  %3127 = vmatmul.mubr.msk.f32.vlgmr.msra.gmra.mxu0 %vm759_vm0, %v3794_v33 }
 0x8f7   : > { %3129 = vmatprep.mubr.msk.f32.mxu0 %vm759_vm0, %v3799_v3 }
 0x8fa   : > { %3130 = vmatmul.mubr.msk.f32.gmra.mxu0 %vm759_vm0, %v3808_v51 }
 0x950   : > { %v1366_v0 = vpop.permute.xlu0 %1365 }
 0x951   : > { %v1377_v22 = vsel %vm759_vm0, %v1366_v0, 0.0 }
 0x952   : > { %1378 = vadd.xlane.f32.xlu0 %v1377_v22 }
 0x954   : > { %v1920_v13 = vpop.permute.xlu0 %1919 }
 0x955   : > { %v1931_v33 = vsel %vm759_vm0, %v1920_v13, 0.0 }
 0x95c   : > { %v1368_v26 = vpop.permute.xlu1 %1367 }
 0x95d   : > { %v1380_v17 = vsel %vm759_vm0, %v1368_v26, 0.0 }
 0x95e   : > { %1381 = vadd.xlane.f32.xlu1 %v1380_v17 }
 0x960   : > { %v1922_v11 = vpop.permute.xlu1 %1921 }
 0x961   : > { %v1934_v23 = vsel %vm759_vm0, %v1922_v11, 0.0 }
 0x962   : > { %1935 = vadd.xlane.f32.xlu0 %v1934_v23 }
 0x966   : > { %1932 = vadd.xlane.f32.xlu0 %v1931_v33 }
 0x9b6   : > { %v3128_v3 = vpop.f32.mrf.mxu0 }
 0x9b7   : > { %v2259_v45 = vmul.f32 0.125, %v3128_v3 }
 0x9b8   : > { %v2239_v54 = vpop.f32.mrf.mxu0 }
 0x9b9   : > { %v2258_v32 = vmul.f32 0.125, %v2239_v54  ;;  %v2263_v25 = vsel %vm1153_vm3, %v2259_v45, -inf }
 0x9ba   : > { %v3131_v51 = vpop.f32.mrf.mxu0 }
 0x9bb   : > { %v2261_v21 = vmul.f32 0.125, %v3131_v51  ;;  %v2262_v2 = vsel %vm1153_vm3, %v2258_v32, -inf  ;;  %v1370_v51 = vpop.permute.xlu0 %1369 }
 0x9bc   : > { %v2249_v62 = vpop.f32.mrf.mxu0  ;;  %v2266_v29 = vmax.f32 %v2262_v2, %v2263_v25 }
 0x9bd   : > { %v2260_v7 = vmul.f32 0.125, %v2249_v62  ;;  %v2265_v38 = vsel %vm1157_vm4, %v2261_v21, -inf }
 0x9bf   : > { %v2264_v27 = vsel %vm1153_vm3, %v2260_v7, -inf  ;;  %v1372_v2 = vpop.permute.xlu0 %1371 }
 0x9c0   : > { %v2267_v61 = vmax.f32 %v2264_v27, %v2265_v38 }
 0x9c2   : > { %v2268_v55 = vmax.f32 %v2266_v29, %v2267_v61 }
 0x9c4   : > { %v2269_v5 = vrot.slane %v2268_v55, 4 }
 0x9c6   : > { %v2270_v52 = vmax.f32 %v2268_v55, %v2269_v5 }
 0x9c8   : > { %v2271_v47 = vrot.slane %v2270_v52, 2 }
 0x9ca   : > { %v2272_v57 = vmax.f32 %v2270_v52, %v2271_v47 }
 0x9cc   : > { %v2273_v59 = vrot.slane %v2272_v57, 1 }
 0x9ce   : > { %v2274_v31 = vmax.f32 %v2272_v57, %v2273_v59 }
 0x9d0   : > { %v2275_v43 = vsub.f32 %v2258_v32, %v2274_v31  ;;  %v2276_v37 = vsub.f32 %v2259_v45, %v2274_v31  ;;  %v2277_v36 = vsub.f32 %v2260_v7, %v2274_v31  ;;  %v2278_v9 = vsub.f32 %v2261_v21, %v2274_v31  ;;  %v1924_v45 = vpop.permute.xlu1 %1923 }
 0x9d1   : > { %v1383_v21 = vsel %vm759_vm0, %v1370_v51, 0.0  ;;  %v1937_v62 = vsel %vm759_vm0, %v1924_v45, 0.0 }
 0x9d2   : > { %v2279_v39 = vmul.f32 1.442695, %v2275_v43  ;;  %v2281_v60 = vmul.f32 1.442695, %v2276_v37  ;;  %v2283_v20 = vmul.f32 1.442695, %v2277_v36 }
 0x9d3   : > { %v2285_v24 = vmul.f32 1.442695, %v2278_v9 }
 0x9d4   : > { %3289 = vpow2.f32 %v2279_v39  ;;  %v1926_v25 = vpop.permute.xlu1 %1925 }
 0x9d5   : > { %3291 = vpow2.f32 %v2281_v60 }
 0x9d6   : > { %3293 = vpow2.f32 %v2283_v20 }
 0x9d7   : > { %3295 = vpow2.f32 %v2285_v24 }
 0x9db   : > { %v1379_v7 = vpop.xlane.xlu0 %1378 }
 0x9e1   : > { %v3290_v28 = vpop.eup %3289 }
 0x9e2   : > { %v3292_v56 = vpop.eup %3291  ;;  %v2287_v40 = vsel %vm1153_vm3, %v3290_v28, 0.0 }
 0x9e3   : > { %v3294_v53 = vpop.eup %3293  ;;  %v2288_v48 = vsel %vm1153_vm3, %v3292_v56, 0.0 }
 0x9e4   : > { %v3296_v49 = vpop.eup %3295  ;;  %v2289_v1 = vadd.f32 %v2288_v48, %v2287_v40  ;;  %v2290_v63 = vsel %vm1153_vm3, %v3294_v53, 0.0 }
 0x9e5   : > { %v2292_v6 = vsel %vm1157_vm4, %v3296_v49, 0.0 }
 0x9e6   : > { %v2291_v4 = vadd.f32 %v2290_v63, %v2289_v1 }
 0x9e7   : > { %v1382_v27 = vpop.xlane.xlu1 %1381 }
 0x9e8   : > { %v2293_v8 = vadd.f32 %v2292_v6, %v2291_v4 }
 0x9ea   : > { %v2294_v12 = vrot.slane %v2293_v8, 4 }
 0x9eb   : > { %v1936_v38 = vpop.xlane.xlu0 %1935 }
 0x9ec   : > { %v2295_v14 = vadd.f32 %v2294_v12, %v2293_v8 }
 0x9ee   : > { %v2296_v16 = vrot.slane %v2295_v14, 2 }
 0x9ef   : > { %v1933_v29 = vpop.xlane.xlu0 %1932 }
 0x9f0   : > { %v2297_v19 = vadd.f32 %v2296_v16, %v2295_v14  ;;  %v1943_v20 = vadd.f32 %v1936_v38, %v1933_v29 }
 0x9f2   : > { %v2298_v0 = vrot.slane %v2297_v19, 1 }
 0x9f4   : > { %v2299_v22 = vadd.f32 %v2298_v0, %v2297_v19 }
 0x9f6   : > { %3297 = vrcp.f32 %v2299_v22 }
 0xa03   : > { %v3298_v26 = vpop.eup %3297 }
 0xa04   : > { %v2301_v17 = vmul.f32 %v3298_v26, %v3290_v28  ;;  %v2302_v11 = vmul.f32 %v3298_v26, %v3292_v56  ;;  %v2303_v23 = vmul.f32 %v3298_v26, %v3294_v53  ;;  %v2304_v13 = vmul.f32 %v3298_v26, %v3296_v49 }
 0xa06   : > { %3140 = vmatprep.mubr.msk.f32.mxu1 %vm1153_vm3, %v2301_v17 }
 0xa07   : > { %3141 = vmatmul.mubr.msk.f32.vlgmr.msra.gmra.mxu1 %vm1153_vm3, %v2302_v11 }
 0xa08   : > { %3143 = vmatprep.mubr.msk.f32.mxu1 %vm1153_vm3, %v2303_v23 }
 0xa0b   : > { %3144 = vmatmul.mubr.msk.f32.gmra.mxu1 %vm1153_vm3, %v2304_v13 }
 0xac7   : > { %v3142_v33 = vpop.f32.mrf.mxu1 }
 0xac8   : > { %2784 = vst.msk [vmem:[%s3888_s17 + $0x48] sm:$0xff] %vm759_vm0, %v3142_v33  ;;  %2425 = vrot.lane.b32.xlu1 %v3142_v33, %s3342_s21 }
 0xac9   : > { %v2400_v3 = vpop.f32.mrf.mxu1 }
 0xaca   : > { %2783 = vst.msk [vmem:[%s3888_s17 + $0x40] sm:$0xff] %vm759_vm0, %v2400_v3  ;;  %2423 = vrot.lane.b32.xlu0 %v2400_v3, %s3342_s21 }
 0xacb   : > { %v3145_v54 = vpop.f32.mrf.mxu1 }
 0xacc   : > { %2786 = vst.msk [vmem:[%s3888_s17 + $0x58] sm:$0xf] %vm769_vm1, %v3145_v54  ;;  %2429 = vrot.lane.b32.xlu1 %v3145_v54, %s3342_s21 }
 0xacd   : > { %v2410_v32 = vpop.f32.mrf.mxu1 }
 0xace   : > { %2785 = vst.msk [vmem:[%s3888_s17 + $0x50] sm:$0xff] %vm759_vm0, %v2410_v32  ;;  %2427 = vrot.lane.b32.xlu0 %v2410_v32, %s3342_s21 }
 0xaed   : > { %1384 = vadd.xlane.f32.xlu0 %v1383_v21 }
 0xaf0   : > { %1938 = vadd.xlane.f32.xlu1 %v1937_v62 }
 0xb3a   : > { %v2426_v61 = vpop.permute.xlu1 %2425 }
 0xb3b   : > { %v2436_v55 = vsub.f32 %v3660_v42, %v2426_v61  ;;  %v1386_v42 = vsel %vm769_vm1, %v1372_v2, 0.0 }
 0xb3c   : > { %v2424_v5 = vpop.permute.xlu0 %2423 }
 0xb3d   : > { %v2466_v52 = vmul.f32 %v2436_v55, %v2436_v55  ;;  %v2435_v47 = vsub.f32 %v3678_v44, %v2424_v5  ;;  %v1940_v44 = vsel %vm769_vm1, %v1926_v25, 0.0 }
 0xb3e   : > { %v2430_v57 = vpop.permute.xlu1 %2429 }
 0xb3f   : > { %v2465_v59 = vmul.f32 %v2435_v47, %v2435_v47  ;;  %v2438_v31 = vsub.f32 %v3670_v46, %v2430_v57  ;;  %2475 = vrot.lane.b32.xlu1 %v2466_v52, %s3342_s21  ;;  %v1389_v46 = vadd.f32 %v1382_v27, %v1379_v7 }
 0xb40   : > { %v2428_v43 = vpop.permute.xlu0 %2427 }
 0xb41   : > { %v2468_v37 = vmul.f32 %v2438_v31, %v2438_v31  ;;  %v2437_v36 = vsub.f32 %v3686_v58, %v2428_v43  ;;  %2473 = vrot.lane.b32.xlu0 %v2465_v59, %s3342_s21 }
 0xb43   : > { %v2467_v9 = vmul.f32 %v2437_v36, %v2437_v36  ;;  %2479 = vrot.lane.b32.xlu1 %v2468_v37, %s3342_s21 }
 0xb45   : > { %2477 = vrot.lane.b32.xlu0 %v2467_v9, %s3342_s21 }
 0xb64   : > { %1387 = vadd.xlane.f32.xlu0 %v1386_v42 }
 0xb67   : > { %1941 = vadd.xlane.f32.xlu1 %v1940_v44 }
 0xb76   : > { %v1385_v39 = vpop.xlane.xlu0 %1384 }
 0xb77   : > { %v1390_v60 = vadd.f32 %v1389_v46, %v1385_v39 }
 0xb78   : > { %1339 = vrot.lane.b32.xlu1 %v4151_v30, %s3342_s21 }
 0xb79   : > { %v1939_v58 = vpop.xlane.xlu1 %1938 }
 0xb7a   : > { %v1944_v24 = vadd.f32 %v1943_v20, %v1939_v58  ;;  %1337 = vrot.lane.b32.xlu0 %v4126_v15, %s3342_s21 }
 0xb7c   : > { %1341 = vrot.lane.b32.xlu1 %v4141_v34, %s3342_s21 }
 0xb7e   : > { %1889 = vrot.lane.b32.xlu0 %v4131_v35, %s3342_s21 }
 0xb80   : > { %1343 = vrot.lane.b32.xlu1 %v4154_v41, %s3342_s21 }
 0xb82   : > { %1893 = vrot.lane.b32.xlu0 %v4175_v10, %s3342_s21 }
 0xb84   : > { %1891 = vrot.lane.b32.xlu1 %v4166_v50, %s3342_s21 }
 0xb86   : > { %2443 = vrot.lane.b32.xlu0 %v2435_v47, %s3342_s21 }
 0xb88   : > { %1895 = vrot.lane.b32.xlu1 %v4183_v18, %s3342_s21 }
 0xb8c   : > { %2445 = vrot.lane.b32.xlu1 %v2436_v55, %s3342_s21 }
 0xbb1   : > { %v2476_v15 = vpop.permute.xlu1 %2475 }
 0xbb2   : > { %v2488_v35 = vsel %vm759_vm0, %v2476_v15, 0.0 }
 0xbb3   : > { %2489 = vadd.xlane.f32.xlu1 %v2488_v35  ;;  %v2474_v34 = vpop.permute.xlu0 %2473 }
 0xbb4   : > { %v2485_v30 = vsel %vm759_vm0, %v2474_v34, 0.0 }
 0xbb5   : > { %v2480_v41 = vpop.permute.xlu1 %2479  ;;  %2486 = vadd.xlane.f32.xlu0 %v2485_v30 }
 0xbb6   : > { %v2494_v10 = vsel %vm769_vm1, %v2480_v41, 0.0 }
 0xbb7   : > { %2495 = vadd.xlane.f32.xlu1 %v2494_v10  ;;  %v2478_v50 = vpop.permute.xlu0 %2477 }
 0xbb8   : > { %v2491_v28 = vsel %vm759_vm0, %v2478_v50, 0.0 }
 0xbb9   : > { %2492 = vadd.xlane.f32.xlu0 %v2491_v28 }
 0xbc8   : > { %2449 = vrot.lane.b32.xlu1 %v2438_v31, %s3342_s21 }
 0xbcf   : > { %2447 = vrot.lane.b32.xlu0 %v2437_v36, %s3342_s21 }
 0xbed   : > { %v1388_v18 = vpop.xlane.xlu0 %1387 }
 0xbee   : > { %v1391_v56 = vsel %vm1225_vm2, %v1388_v18, 0.0 }
 0xbef   : > { %v1392_v40 = vadd.f32 %v1391_v56, %v1390_v60 }
 0xbf0   : > { %v1942_v53 = vpop.xlane.xlu1 %1941 }
 0xbf1   : > { %v1393_v48 = vrot.slane %v1392_v40, 4  ;;  %v1945_v49 = vsel %vm1225_vm2, %v1942_v53, 0.0  ;;  %v1338_v1 = vpop.permute.xlu0 %1337 }
 0xbf2   : > { %v1946_v63 = vadd.f32 %v1945_v49, %v1944_v24  ;;  %1349 = vst.msk [vmem:[%s4266_s15] sm:$0xff] %vm759_vm0, %v1338_v1 }
 0xbf3   : > { %v1394_v4 = vadd.f32 %v1393_v48, %v1392_v40 }
 0xbf4   : > { %v1947_v6 = vrot.slane %v1946_v63, 4  ;;  %v1340_v8 = vpop.permute.xlu1 %1339 }
 0xbf5   : > { %v1395_v12 = vrot.slane %v1394_v4, 2  ;;  %1350 = vst.msk [vmem:[%s4266_s15 + $0x8] sm:$0xff] %vm759_vm0, %v1340_v8  ;;  %v1890_v14 = vpop.permute.xlu0 %1889 }
 0xbf6   : > { %v1948_v16 = vadd.f32 %v1947_v6, %v1946_v63  ;;  %2742 = vst.msk [vmem:[%s4266_s15 + $0x20] sm:$0xff] %vm759_vm0, %v1890_v14 }
 0xbf7   : > { %v1396_v19 = vadd.f32 %v1395_v12, %v1394_v4 }
 0xbf8   : > { %v1949_v0 = vrot.slane %v1948_v16, 2  ;;  %v1342_v22 = vpop.permute.xlu1 %1341 }
 0xbf9   : > { %v1397_v26 = vrot.slane %v1396_v19, 1  ;;  %1351 = vst.msk [vmem:[%s4266_s15 + $0x10] sm:$0xff] %vm759_vm0, %v1342_v22  ;;  %v1894_v17 = vpop.permute.xlu0 %1893 }
 0xbfa   : > { %v1950_v11 = vadd.f32 %v1949_v0, %v1948_v16  ;;  %2744 = vst.msk [vmem:[%s4266_s15 + $0x30] sm:$0xff] %vm759_vm0, %v1894_v17 }
 0xbfb   : > { %v1398_v23 = vadd.f32 %v1397_v26, %v1396_v19 }
 0xbfc   : > { %v1951_v13 = vrot.slane %v1950_v11, 1  ;;  %v1344_v33 = vpop.permute.xlu1 %1343 }
 0xbfd   : > { %1352 = vst.msk [vmem:[%s4266_s15 + $0x18] sm:$0xf] %vm769_vm1, %v1344_v33  ;;  %v2444_v3 = vpop.permute.xlu0 %2443  ;;  %v1399_v32 = vmul.f32 -0.035714287, %v1398_v23 }
 0xbfe   : > { %v1952_v54 = vadd.f32 %v1951_v13, %v1950_v11  ;;  %2779 = vst.msk [vmem:[%s4266_s15 + $0x40] sm:$0xff] %vm759_vm0, %v2444_v3 }
 0xc00   : > { %v1953_v51 = vmul.f32 -0.035714287, %v1952_v54  ;;  %v1892_v45 = vpop.permute.xlu1 %1891 }
 0xc01   : > { %2743 = vst.msk [vmem:[%s4266_s15 + $0x28] sm:$0xff] %vm759_vm0, %v1892_v45 }
 0xc02   : > { %v2509_v21 = vsel %vm2508_vm5, %v1399_v32, %v1953_v51 }
 0xc04   : > { %v1896_v62 = vpop.permute.xlu1 %1895 }
 0xc05   : > { %2745 = vst.msk [vmem:[%s4266_s15 + $0x38] sm:$0xf] %vm769_vm1, %v1896_v62 }
 0xc08   : > { %v2446_v2 = vpop.permute.xlu1 %2445 }
 0xc09   : > { %2780 = vst.msk [vmem:[%s4266_s15 + $0x48] sm:$0xff] %vm759_vm0, %v2446_v2 }
 0xc3c   : > { %v2490_v7 = vpop.xlane.xlu1 %2489 }
 0xc3e   : > { %v2487_v25 = vpop.xlane.xlu0 %2486 }
 0xc3f   : > { %v2497_v27 = vadd.f32 %v2490_v7, %v2487_v25 }
 0xc40   : > { %v2496_v38 = vpop.xlane.xlu1 %2495 }
 0xc41   : > { %v2499_v55 = vsel %vm1225_vm2, %v2496_v38, 0.0 }
 0xc42   : > { %v2493_v29 = vpop.xlane.xlu0 %2492 }
 0xc43   : > { %v2498_v61 = vadd.f32 %v2497_v27, %v2493_v29 }
 0xc44   : > { %v2450_v5 = vpop.permute.xlu1 %2449 }
 0xc45   : > { %v2500_v52 = vadd.f32 %v2499_v55, %v2498_v61  ;;  %2782 = vst.msk [vmem:[%s4266_s15 + $0x58] sm:$0xf] %vm769_vm1, %v2450_v5 }
 0xc46   : > { %v2448_v47 = vpop.permute.xlu0 %2447 }
 0xc47   : > { %v2501_v57 = vrot.slane %v2500_v52, 4  ;;  %2781 = vst.msk [vmem:[%s4266_s15 + $0x50] sm:$0xff] %vm759_vm0, %v2448_v47 }
 0xc49   : > { %v2502_v59 = vadd.f32 %v2501_v57, %v2500_v52 }
 0xc4b   : > { %v2503_v31 = vrot.slane %v2502_v59, 2 }
 0xc4d   : > { %v2504_v43 = vadd.f32 %v2503_v31, %v2502_v59 }
 0xc4f   : > { %v2505_v37 = vrot.slane %v2504_v43, 1 }
 0xc51   : > { %v2506_v36 = vadd.f32 %v2505_v37, %v2504_v43 }
 0xc53   : > { %v2507_v9 = vmul.f32 -0.035714287, %v2506_v36 }
 0xc55   : > { %v2511_v42 = vsel %vm2510_vm6, %v2509_v21, %v2507_v9 }
 0xc56   : > { %2513 = vst.msk [vmem:[%s336_s16] sm:$0x1] %vm2512_vm7, %v2511_v42 }
 0xc57 PF: > { %s19_s27 = sadd.s32 1, %s3340_s27  }
 0xc58   : > { %p16_p4 = scmp.ge.s32.totalorder %s19_s27, 4  }
 0xc5a   :  { %18 = sbr.rel (!%p16_p4) target bundleno = 1 (0x1), region = 107 }

// kernel: trxos_forward.5
= control target key start
LH: loop header
LB: loop body
LE: loop exit
PB: predicated region body
PF: predicated region fallthrough
CT: control target
= control target key end

     0   :  { %v257_v35 = vlaneseq  ;;  %v2713_v36 = vmov 1966171168   ;;  %vm2715_vm0 = vmmov 0   ;;  %vm2006_vm1 = vcmask 523264   ;;  %s3545_s1 = inlined_call_operand.vmem [shape: bf16[1792,256], index: 1, kind: input, shape index: {}]   ;;  %s3546_s0 = inlined_call_operand.vmem [shape: bf16[2,1792], index: 0, kind: input, shape index: {}]   ;;  %s3547_s2 = inlined_call_operand.vmem [shape: f32[1,256], index: 2, kind: input, shape index: {}]   ;;  %s3548_s3 = inlined_call_operand.vmem [shape: bf16[256,64], index: 3, kind: input, shape index: {}]   ;;  %s3549_s5 = inlined_call_operand.vmem [shape: bf16[64,1], index: 5, kind: input, shape index: {}]   ;;  %s3550_s6 = inlined_call_operand.<no memory space> [shape: f32[1,1], index: 6, kind: input, shape index: {}]   ;;  %s3551_s4 = inlined_call_operand.vmem [shape: f32[1,64], index: 4, kind: input, shape index: {}]   ;;  %s3552_s7 = inlined_call_operand.vmem [shape: f32[2,1], index: 7, kind: output, shape index: {}]  }
   0x1   :  { %v2351_v0 = vld [vmem:[%s3545_s1 + $0x74] ss:$8 sps:$4 sm:$0xff]   ;;  %v2353_v1 = vld [vmem:[%s3545_s1 + $0x70] ss:$8 sps:$4 sm:$0xff]   ;;  %v2357_v4 = vld [vmem:[%s3545_s1 + $0x64] ss:$8 sps:$4 sm:$0xff]   ;;  %v271_v37 = vunpack.c.l.s4 %v2713_v36 }
   0x2   :  { %1499 = vmatprep.subr.bf16.mxu0 %v2351_v0  ;;  %v2354_v2 = vld [vmem:[%s3545_s1 + $0x174] ss:$8 sps:$4 sm:$0xff]   ;;  %v2356_v3 = vld [vmem:[%s3545_s1 + $0x170] ss:$8 sps:$4 sm:$0xff]   ;;  %v2359_v5 = vld [vmem:[%s3545_s1 + $0x60] ss:$8 sps:$4 sm:$0xff]  }
   0x3   :  { %1500 = vmatpush1.bf16.msra.mxu0 %v2353_v1  ;;  %1540 = vmatprep.subr.bf16.mxu1 %v2354_v2  ;;  %v2360_v6 = vld [vmem:[%s3545_s1 + $0x164] ss:$8 sps:$4 sm:$0xff]   ;;  %v2362_v7 = vld [vmem:[%s3545_s1 + $0x160] ss:$8 sps:$4 sm:$0xff]   ;;  %v2363_v8 = vld [vmem:[%s3545_s1 + $0x54] ss:$8 sps:$4 sm:$0xff]   ;;  %v272_v43 = vunpack.c.0.s8 %v271_v37 }
   0x4   :  { %1541 = vmatpush1.bf16.msra.mxu1 %v2356_v3  ;;  %1501 = vmatprep.subr.bf16.mxu0 %v2357_v4  ;;  %v2365_v9 = vld [vmem:[%s3545_s1 + $0x50] ss:$8 sps:$4 sm:$0xff]   ;;  %v2366_v10 = vld [vmem:[%s3545_s1 + $0x154] ss:$8 sps:$4 sm:$0xff]   ;;  %v2369_v11 = vld [vmem:[%s3545_s1 + $0x44] ss:$8 sps:$4 sm:$0xff]  }
   0x5   :  { %1542 = vmatprep.subr.bf16.mxu1 %v2360_v6  ;;  %v2368_v12 = vld [vmem:[%s3545_s1 + $0x150] ss:$8 sps:$4 sm:$0xff]   ;;  %v2372_v13 = vld [vmem:[%s3545_s1 + $0x144] ss:$8 sps:$4 sm:$0xff]   ;;  %v2371_v14 = vld [vmem:[%s3545_s1 + $0x40] ss:$8 sps:$4 sm:$0xff]  }
   0x6   :  { %v2375_v15 = vld [vmem:[%s3545_s1 + $0x34] ss:$8 sps:$4 sm:$0xff]   ;;  %v2374_v16 = vld [vmem:[%s3545_s1 + $0x140] ss:$8 sps:$4 sm:$0xff]   ;;  %v2377_v18 = vld [vmem:[%s3545_s1 + $0x30] ss:$8 sps:$4 sm:$0xff]  }
   0x7   :  { %1502 = vmatpush1.bf16.msra.mxu0 %v2359_v5  ;;  %v2378_v17 = vld [vmem:[%s3545_s1 + $0x134] ss:$8 sps:$4 sm:$0xff]   ;;  %v2381_v19 = vld [vmem:[%s3545_s1 + $0x24] ss:$8 sps:$4 sm:$0xff]   ;;  %v2380_v20 = vld [vmem:[%s3545_s1 + $0x130] ss:$8 sps:$4 sm:$0xff]  }
   0x8   :  { %1503 = vmatprep.subr.bf16.mxu0 %v2363_v8  ;;  %1543 = vmatpush1.bf16.msra.mxu1 %v2362_v7  ;;  %v2384_v21 = vld [vmem:[%s3545_s1 + $0x124] ss:$8 sps:$4 sm:$0xff]   ;;  %v2383_v22 = vld [vmem:[%s3545_s1 + $0x20] ss:$8 sps:$4 sm:$0xff]   ;;  %v2387_v23 = vld [vmem:[%s3545_s1 + $0x14] ss:$8 sps:$4 sm:$0xff]  }
   0x9   :  { %1544 = vmatprep.subr.bf16.mxu1 %v2366_v10  ;;  %v2386_v24 = vld [vmem:[%s3545_s1 + $0x120] ss:$8 sps:$4 sm:$0xff]   ;;  %v2390_v25 = vld [vmem:[%s3545_s1 + $0x114] ss:$8 sps:$4 sm:$0xff]   ;;  %v2389_v26 = vld [vmem:[%s3545_s1 + $0x10] ss:$8 sps:$4 sm:$0xff]  }
   0xa   :  { %v2393_v27 = vld [vmem:[%s3545_s1 + $0x4] ss:$8 sps:$4 sm:$0xff]   ;;  %v2392_v28 = vld [vmem:[%s3545_s1 + $0x110] ss:$8 sps:$4 sm:$0xff]   ;;  %v2395_v30 = vld [vmem:[%s3545_s1] ss:$8 sps:$4 sm:$0xff]  }
   0xb   :  { %1504 = vmatpush1.bf16.msra.mxu0 %v2365_v9  ;;  %v2396_v29 = vld [vmem:[%s3545_s1 + $0x104] ss:$8 sps:$4 sm:$0xff]   ;;  %v2399_v31 = vld [vmem:[%s3545_s1 + $0xf4] ss:$8 sps:$4 sm:$0xff]   ;;  %v2398_v32 = vld [vmem:[%s3545_s1 + $0x100] ss:$8 sps:$4 sm:$0xff]  }
   0xc   :  { %1505 = vmatprep.subr.bf16.mxu0 %v2369_v11  ;;  %1545 = vmatpush1.bf16.msra.mxu1 %v2368_v12  ;;  %v2402_v33 = vld [vmem:[%s3545_s1 + $0x1f4] ss:$8 sps:$4 sm:$0xff]   ;;  %v2401_v34 = vld [vmem:[%s3545_s1 + $0xf0] ss:$8 sps:$4 sm:$0xff]   ;;  %v2405_v38 = vld [vmem:[%s3545_s1 + $0xe4] ss:$8 sps:$4 sm:$0xff]  }
   0xd   :  { %1546 = vmatprep.subr.bf16.mxu1 %v2372_v13  ;;  %v2404_v39 = vld [vmem:[%s3545_s1 + $0x1f0] ss:$8 sps:$4 sm:$0xff]   ;;  %v2408_v40 = vld [vmem:[%s3545_s1 + $0x1e4] ss:$8 sps:$4 sm:$0xff]   ;;  %v2407_v41 = vld [vmem:[%s3545_s1 + $0xe0] ss:$8 sps:$4 sm:$0xff]  }
   0xe   :  { %v2873_v42 = vshrl.u32 %v257_v35, 7  ;;  %v2411_v44 = vld [vmem:[%s3545_s1 + $0xd4] ss:$8 sps:$4 sm:$0xff]   ;;  %v2410_v45 = vld [vmem:[%s3545_s1 + $0x1e0] ss:$8 sps:$4 sm:$0xff]   ;;  %vm2056_vm2 = vcmask 1024  }
   0xf   :  { %1506 = vmatpush1.bf16.msra.mxu0 %v2371_v14  ;;  %v2414_v46 = vld [vmem:[%s3545_s1 + $0x1d4] ss:$8 sps:$4 sm:$0xff]   ;;  %v2413_v47 = vld [vmem:[%s3545_s1 + $0xd0] ss:$8 sps:$4 sm:$0xff]   ;;  %v2417_v49 = vld [vmem:[%s3545_s1 + $0xc4] ss:$8 sps:$4 sm:$0xff]  }
  0x10   :  { %1507 = vmatprep.subr.bf16.mxu0 %v2375_v15  ;;  %1547 = vmatpush1.bf16.msra.mxu1 %v2374_v16  ;;  %v2888_v48 = vsub.s32 %v272_v43, %v2873_v42  ;;  %v2416_v50 = vld [vmem:[%s3545_s1 + $0x1d0] ss:$8 sps:$4 sm:$0xff]   ;;  %v2420_v51 = vld [vmem:[%s3545_s1 + $0x1c4] ss:$8 sps:$4 sm:$0xff]   ;;  %v2419_v53 = vld [vmem:[%s3545_s1 + $0xc0] ss:$8 sps:$4 sm:$0xff]  }
  0x11   :  { %1548 = vmatprep.subr.bf16.mxu1 %v2378_v17  ;;  %v29_v52 = vld [vmem:[%s3546_s0] sm:$0xff]  ;;  %v2423_v55 = vld [vmem:[%s3545_s1 + $0xb4] ss:$8 sps:$4 sm:$0xff]   ;;  %v2425_v59 = vld [vmem:[%s3545_s1 + $0xb0] ss:$8 sps:$4 sm:$0xff]  }
  0x12   :  { %v276_v54 = vrot.slane %v29_v52, %v2888_v48  ;;  %v2422_v56 = vld [vmem:[%s3545_s1 + $0x1c0] ss:$8 sps:$4 sm:$0xff]   ;;  %v2426_v58 = vld [vmem:[%s3545_s1 + $0x1b4] ss:$8 sps:$4 sm:$0xff]   ;;  %v2429_v61 = vld [vmem:[%s3545_s1 + $0xa4] ss:$8 sps:$4 sm:$0xff]   ;;  %v269_v63 = vcombine.high %v29_v52, %v29_v52 }
  0x13   :  { %1508 = vmatpush1.bf16.msra.mxu0 %v2377_v18  ;;  %v2428_v62 = vld [vmem:[%s3545_s1 + $0x1b0] ss:$8 sps:$4 sm:$0xff]   ;;  %v2432_v1 = vld [vmem:[%s3545_s1 + $0x1a4] ss:$8 sps:$4 sm:$0xff]   ;;  %v2431_v2 = vld [vmem:[%s3545_s1 + $0xa0] ss:$8 sps:$4 sm:$0xff]  }
  0x14   :  { %1509 = vmatprep.subr.bf16.mxu0 %v2381_v19  ;;  %1549 = vmatpush1.bf16.msra.mxu1 %v2380_v20  ;;  %v284_v57 = vcombine.high %v276_v54, %v276_v54  ;;  %v2435_v3 = vld [vmem:[%s3545_s1 + $0x94] ss:$8 sps:$4 sm:$0xff]   ;;  %v2434_v4 = vld [vmem:[%s3545_s1 + $0x1a0] ss:$8 sps:$4 sm:$0xff]   ;;  %v2938_v5 = vrot.slane %v269_v63, %v2888_v48  ;;  %v2437_v7 = vld [vmem:[%s3545_s1 + $0x90] ss:$8 sps:$4 sm:$0xff]   ;;  %v292_v13 = vrot.slane %v276_v54, %v2888_v48 }
  0x15   :  { %1550 = vmatprep.subr.bf16.mxu1 %v2384_v21  ;;  %v2438_v6 = vld [vmem:[%s3545_s1 + $0x194] ss:$8 sps:$4 sm:$0xff]   ;;  %v2441_v8 = vld [vmem:[%s3545_s1 + $0x84] ss:$8 sps:$4 sm:$0xff]   ;;  %v2440_v9 = vld [vmem:[%s3545_s1 + $0x190] ss:$8 sps:$4 sm:$0xff]  }
  0x16   :  { %v306_v60 = vrot.slane %v284_v57, %v2888_v48  ;;  %v285_v10 = vcombine.high %v2938_v5, %v2938_v5  ;;  %v2444_v11 = vld [vmem:[%s3545_s1 + $0x184] ss:$8 sps:$4 sm:$0xff]   ;;  %v2443_v12 = vld [vmem:[%s3545_s1 + $0x80] ss:$8 sps:$4 sm:$0xff]   ;;  %v2451_v14 = vld [vmem:[%s3545_s1 + $0x274] ss:$8 sps:$4 sm:$0xff]   ;;  %v314_v19 = vcombine.high %v292_v13, %v292_v13 }
  0x17   :  { %1510 = vmatpush1.bf16.msra.mxu0 %v2383_v22  ;;  %v2448_v15 = vld [vmem:[%s3545_s1 + $0x180] ss:$8 sps:$4 sm:$0xff]   ;;  %v2454_v17 = vld [vmem:[%s3545_s1 + $0x374] ss:$8 sps:$4 sm:$0xff]   ;;  %v2449_v18 = vld [vmem:[%s3545_s1 + $0x270] ss:$8 sps:$4 sm:$0xff]  }
  0x18   :  { %1511 = vmatprep.subr.bf16.mxu0 %v2387_v23  ;;  %1551 = vmatpush1.bf16.msra.mxu1 %v2386_v24  ;;  %v316_v0 = vcombine.high %v306_v60, %v306_v60  ;;  %v313_v16 = vrot.slane %v285_v10, %v2888_v48  ;;  %v2457_v20 = vld [vmem:[%s3545_s1 + $0x264] ss:$8 sps:$4 sm:$0xff]   ;;  %v2452_v21 = vld [vmem:[%s3545_s1 + $0x370] ss:$8 sps:$4 sm:$0xff]   ;;  %v2455_v24 = vld [vmem:[%s3545_s1 + $0x260] ss:$8 sps:$4 sm:$0xff]  }
  0x19   :  { %1552 = vmatprep.subr.bf16.mxu1 %v2390_v25  ;;  %1531 = vmatprep.mubr.bf16.mxu0 %v306_v60  ;;  %v2460_v23 = vld [vmem:[%s3545_s1 + $0x364] ss:$8 sps:$4 sm:$0xff]   ;;  %v2463_v25 = vld [vmem:[%s3545_s1 + $0x254] ss:$8 sps:$4 sm:$0xff]   ;;  %v2473_v36 = vld [vmem:[%s3545_s1 + $0x230] ss:$8 sps:$4 sm:$0xff]  }
  0x1a   :  { %1572 = vmatprep.mubr.bf16.mxu1 %v316_v0  ;;  %v317_v22 = vcombine.high %v313_v16, %v313_v16  ;;  %v2478_v35 = vld [vmem:[%s3545_s1 + $0x334] ss:$8 sps:$4 sm:$0xff]   ;;  %v2481_v37 = vld [vmem:[%s3545_s1 + $0x224] ss:$8 sps:$4 sm:$0xff]   ;;  %v2482_v43 = vld [vmem:[%s3545_s1 + $0x320] ss:$8 sps:$4 sm:$0xff]  }
  0x1b   :  { %1512 = vmatpush1.bf16.msra.mxu0 %v2389_v26  ;;  %v2458_v26 = vld [vmem:[%s3545_s1 + $0x360] ss:$8 sps:$4 sm:$0xff]   ;;  %v2497_v54 = vld [vmem:[%s3545_s1 + $0x2f0] ss:$8 sps:$4 sm:$0xff]   ;;  %v2508_v57 = vld [vmem:[%s3545_s1 + $0x3e4] ss:$8 sps:$4 sm:$0xff]  }
  0x1c   :  { %1513 = vmatprep.subr.bf16.mxu0 %v2393_v27  ;;  %1553 = vmatpush1.bf16.msra.mxu1 %v2392_v28  ;;  %v2466_v27 = vld [vmem:[%s3545_s1 + $0x354] ss:$8 sps:$4 sm:$0xff]   ;;  %v2461_v28 = vld [vmem:[%s3545_s1 + $0x250] ss:$8 sps:$4 sm:$0xff]   ;;  %v2494_v52 = vld [vmem:[%s3545_s1 + $0x300] ss:$8 sps:$4 sm:$0xff]  }
  0x1d   :  { %1554 = vmatprep.subr.bf16.mxu1 %v2396_v29  ;;  %v2469_v29 = vld [vmem:[%s3545_s1 + $0x244] ss:$8 sps:$4 sm:$0xff]   ;;  %v2506_v60 = vld [vmem:[%s3545_s1 + $0x3e0] ss:$8 sps:$4 sm:$0xff]   ;;  %v2512_v0 = vld [vmem:[%s3545_s1 + $0x3d0] ss:$8 sps:$4 sm:$0xff]  }
  0x1e   :  { %v2517_v63 = vld [vmem:[%s3545_s1 + $0x2c4] ss:$8 sps:$4 sm:$0xff]   ;;  %v2524_v10 = vld [vmem:[%s3545_s1 + $0x3b0] ss:$8 sps:$4 sm:$0xff]  }
  0x1f   :  { %1514 = vmatpush1.bf16.msra.mxu0 %v2395_v30  ;;  %v2464_v30 = vld [vmem:[%s3545_s1 + $0x350] ss:$8 sps:$4 sm:$0xff]  }
  0x20   :  { %1515 = vmatprep.subr.bf16.mxu0 %v2399_v31  ;;  %1555 = vmatpush1.bf16.msra.mxu1 %v2398_v32  ;;  %v2472_v31 = vld [vmem:[%s3545_s1 + $0x344] ss:$8 sps:$4 sm:$0xff]   ;;  %v2467_v32 = vld [vmem:[%s3545_s1 + $0x240] ss:$8 sps:$4 sm:$0xff]  }
  0x21   :  { %1556 = vmatprep.subr.bf16.mxu1 %v2402_v33  ;;  %v2475_v33 = vld [vmem:[%s3545_s1 + $0x234] ss:$8 sps:$4 sm:$0xff]  }
  0x23   :  { %1516 = vmatpush2.bf16.msra.mxu0 %v2401_v34  ;;  %v2470_v34 = vld [vmem:[%s3545_s1 + $0x340] ss:$8 sps:$4 sm:$0xff]  }
  0x24   :  { %1517 = vmatprep.subr.bf16.mxu0 %v2405_v38  ;;  %1557 = vmatpush2.bf16.msra.mxu1 %v2404_v39  ;;  %v2476_v38 = vld [vmem:[%s3545_s1 + $0x330] ss:$8 sps:$4 sm:$0xff]   ;;  %v2484_v39 = vld [vmem:[%s3545_s1 + $0x324] ss:$8 sps:$4 sm:$0xff]  }
  0x25   :  { %1558 = vmatprep.subr.bf16.mxu1 %v2408_v40  ;;  %v2479_v40 = vld [vmem:[%s3545_s1 + $0x220] ss:$8 sps:$4 sm:$0xff]  }
  0x27   :  { %1518 = vmatpush2.bf16.msra.mxu0 %v2407_v41  ;;  %v2487_v41 = vld [vmem:[%s3545_s1 + $0x214] ss:$8 sps:$4 sm:$0xff]  }
  0x28   :  { %1519 = vmatprep.subr.bf16.mxu0 %v2411_v44  ;;  %1559 = vmatpush2.bf16.msra.mxu1 %v2410_v45  ;;  %v2490_v44 = vld [vmem:[%s3545_s1 + $0x314] ss:$8 sps:$4 sm:$0xff]   ;;  %v2485_v45 = vld [vmem:[%s3545_s1 + $0x210] ss:$8 sps:$4 sm:$0xff]  }
  0x29   :  { %1560 = vmatprep.subr.bf16.mxu1 %v2414_v46  ;;  %v2493_v46 = vld [vmem:[%s3545_s1 + $0x204] ss:$8 sps:$4 sm:$0xff]  }
  0x2b   :  { %1520 = vmatpush2.bf16.msra.mxu0 %v2413_v47  ;;  %v2488_v47 = vld [vmem:[%s3545_s1 + $0x310] ss:$8 sps:$4 sm:$0xff]  }
  0x2c   :  { %1521 = vmatprep.subr.bf16.mxu0 %v2417_v49  ;;  %1561 = vmatpush2.bf16.msra.mxu1 %v2416_v50  ;;  %v2496_v49 = vld [vmem:[%s3545_s1 + $0x304] ss:$8 sps:$4 sm:$0xff]   ;;  %v2491_v50 = vld [vmem:[%s3545_s1 + $0x200] ss:$8 sps:$4 sm:$0xff]  }
  0x2d   :  { %1562 = vmatprep.subr.bf16.mxu1 %v2420_v51  ;;  %v2499_v51 = vld [vmem:[%s3545_s1 + $0x2f4] ss:$8 sps:$4 sm:$0xff]  }
  0x2f   :  { %1522 = vmatpush2.bf16.msra.mxu0 %v2419_v53  ;;  %v2502_v53 = vld [vmem:[%s3545_s1 + $0x3f4] ss:$8 sps:$4 sm:$0xff]  }
  0x30   :  { %1523 = vmatprep.subr.bf16.mxu0 %v2423_v55  ;;  %1563 = vmatpush2.bf16.msra.mxu1 %v2422_v56  ;;  %v2505_v55 = vld [vmem:[%s3545_s1 + $0x2e4] ss:$8 sps:$4 sm:$0xff]   ;;  %v2500_v56 = vld [vmem:[%s3545_s1 + $0x3f0] ss:$8 sps:$4 sm:$0xff]  }
  0x31   :  { %1564 = vmatprep.subr.bf16.mxu1 %v2426_v58  ;;  %v2503_v58 = vld [vmem:[%s3545_s1 + $0x2e0] ss:$8 sps:$4 sm:$0xff]  }
  0x33   :  { %1524 = vmatpush2.bf16.msra.mxu0 %v2425_v59  ;;  %v2511_v59 = vld [vmem:[%s3545_s1 + $0x2d4] ss:$8 sps:$4 sm:$0xff]  }
  0x34   :  { %1525 = vmatprep.subr.bf16.mxu0 %v2429_v61  ;;  %1565 = vmatpush2.bf16.msra.mxu1 %v2428_v62  ;;  %v2514_v61 = vld [vmem:[%s3545_s1 + $0x3d4] ss:$8 sps:$4 sm:$0xff]   ;;  %v2509_v62 = vld [vmem:[%s3545_s1 + $0x2d0] ss:$8 sps:$4 sm:$0xff]  }
  0x35   :  { %1566 = vmatprep.subr.bf16.mxu1 %v2432_v1  ;;  %v2520_v1 = vld [vmem:[%s3545_s1 + $0x3c4] ss:$8 sps:$4 sm:$0xff]  }
  0x37   :  { %1526 = vmatpush2.bf16.msra.mxu0 %v2431_v2  ;;  %v2515_v2 = vld [vmem:[%s3545_s1 + $0x2c0] ss:$8 sps:$4 sm:$0xff]  }
  0x38   :  { %1527 = vmatprep.subr.bf16.mxu0 %v2435_v3  ;;  %1567 = vmatpush2.bf16.msra.mxu1 %v2434_v4  ;;  %v2523_v3 = vld [vmem:[%s3545_s1 + $0x2b4] ss:$8 sps:$4 sm:$0xff]   ;;  %v2518_v4 = vld [vmem:[%s3545_s1 + $0x3c0] ss:$8 sps:$4 sm:$0xff]  }
  0x39   :  { %1568 = vmatprep.subr.bf16.mxu1 %v2438_v6  ;;  %v2526_v6 = vld [vmem:[%s3545_s1 + $0x3b4] ss:$8 sps:$4 sm:$0xff]  }
  0x3b   :  { %1528 = vmatpush2.bf16.msra.mxu0 %v2437_v7  ;;  %v2521_v7 = vld [vmem:[%s3545_s1 + $0x2b0] ss:$8 sps:$4 sm:$0xff]  }
  0x3c   :  { %1529 = vmatprep.subr.bf16.mxu0 %v2441_v8  ;;  %1569 = vmatpush2.bf16.msra.mxu1 %v2440_v9  ;;  %v2529_v8 = vld [vmem:[%s3545_s1 + $0x2a4] ss:$8 sps:$4 sm:$0xff]  }
  0x3d   :  { %1570 = vmatprep.subr.bf16.mxu1 %v2444_v11  ;;  %v3124_v9 = vld [vmem:[%s3546_s0 + $0x8] sm:$0x3f] }
  0x3e   :  { %v2532_v11 = vld [vmem:[%s3545_s1 + $0x3a4] ss:$8 sps:$4 sm:$0xff]  }
  0x3f   :  { %1530 = vmatpush2.bf16.msra.mxu0 %v2443_v12  ;;  %v2527_v12 = vld [vmem:[%s3545_s1 + $0x2a0] ss:$8 sps:$4 sm:$0xff]  }
  0x40   :  { %1581 = vmatprep.subr.bf16.mxu0 %v2451_v14  ;;  %1571 = vmatpush2.bf16.msra.mxu1 %v2448_v15  ;;  %v2530_v14 = vld [vmem:[%s3545_s1 + $0x3a0] ss:$8 sps:$4 sm:$0xff]   ;;  %v3143_v15 = vrot.slane %v3124_v9, %v2888_v48 }
  0x41   :  { %1622 = vmatprep.subr.bf16.mxu1 %v2454_v17  ;;  %v2533_v17 = vld [vmem:[%s3545_s1 + $0x290] ss:$8 sps:$4 sm:$0xff]  }
  0x42   :  { %1532 = vmatmul.mubr.bf16.vlgmr.msra.gmra.mxu0 %v292_v13  ;;  %v2535_v13 = vld [vmem:[%s3545_s1 + $0x294] ss:$8 sps:$4 sm:$0xff]  }
  0x43   :  { %1582 = vmatpush1.bf16.msra.mxu0 %v2449_v18  ;;  %1613 = vmatprep.mubr.bf16.mxu0 %v313_v16  ;;  %v2538_v16 = vld [vmem:[%s3545_s1 + $0x394] ss:$8 sps:$4 sm:$0xff]   ;;  %v2541_v18 = vld [vmem:[%s3545_s1 + $0x284] ss:$8 sps:$4 sm:$0xff]  }
  0x44   :  { %1573 = vmatmul.mubr.bf16.vlgmr.msra.gmra.mxu1 %v314_v19  ;;  %1583 = vmatprep.subr.bf16.mxu0 %v2457_v20  ;;  %v2536_v19 = vld [vmem:[%s3545_s1 + $0x390] ss:$8 sps:$4 sm:$0xff]   ;;  %v333_v20 = vcombine.high %v3143_v15, %v3143_v15 }
  0x45   :  { %1623 = vmatpush1.bf16.msra.mxu1 %v2452_v21  ;;  %1654 = vmatprep.mubr.bf16.mxu1 %v317_v22  ;;  %v2544_v21 = vld [vmem:[%s3545_s1 + $0x384] ss:$8 sps:$4 sm:$0xff]   ;;  %v2539_v22 = vld [vmem:[%s3545_s1 + $0x280] ss:$8 sps:$4 sm:$0xff]  }
  0x46   :  { %1624 = vmatprep.subr.bf16.mxu1 %v2460_v23  ;;  %v299_v23 = vrot.slane %v2938_v5, %v2888_v48  ;;  %v2545_v5 = vld [vmem:[%s3545_s1 + $0x470] ss:$8 sps:$4 sm:$0xff]  }
  0x47   :  { %1584 = vmatpush1.bf16.msra.mxu0 %v2455_v24  ;;  %v2547_v24 = vld [vmem:[%s3545_s1 + $0x474] ss:$8 sps:$4 sm:$0xff]  }
  0x48   :  { %1585 = vmatprep.subr.bf16.mxu0 %v2463_v25  ;;  %v2542_v25 = vld [vmem:[%s3545_s1 + $0x380] ss:$8 sps:$4 sm:$0xff]  }
  0x49   :  { %1625 = vmatpush1.bf16.msra.mxu1 %v2458_v26  ;;  %v355_v26 = vrot.slane %v333_v20, %v2888_v48  ;;  %v2620_v20 = vld [vmem:[%s3545_s1 + $0x5b0] ss:$8 sps:$4 sm:$0xff]  }
  0x4a   :  { %1626 = vmatprep.subr.bf16.mxu1 %v2466_v27  ;;  %v2550_v27 = vld [vmem:[%s3545_s1 + $0x574] ss:$8 sps:$4 sm:$0xff]  }
  0x4b   :  { %1586 = vmatpush1.bf16.msra.mxu0 %v2461_v28  ;;  %v315_v28 = vcombine.high %v299_v23, %v299_v23 }
  0x4c   :  { %1587 = vmatprep.subr.bf16.mxu0 %v2469_v29  ;;  %v2553_v29 = vld [vmem:[%s3545_s1 + $0x464] ss:$8 sps:$4 sm:$0xff]  }
  0x4d   :  { %1627 = vmatpush1.bf16.msra.mxu1 %v2464_v30  ;;  %v2548_v30 = vld [vmem:[%s3545_s1 + $0x570] ss:$8 sps:$4 sm:$0xff]  }
  0x4e   :  { %1628 = vmatprep.subr.bf16.mxu1 %v2472_v31  ;;  %v364_v31 = vcombine.high %v355_v26, %v355_v26 }
  0x4f   :  { %1588 = vmatpush1.bf16.msra.mxu0 %v2467_v32  ;;  %v2556_v32 = vld [vmem:[%s3545_s1 + $0x564] ss:$8 sps:$4 sm:$0xff]  }
  0x50   :  { %1589 = vmatprep.subr.bf16.mxu0 %v2475_v33  ;;  %v2551_v33 = vld [vmem:[%s3545_s1 + $0x460] ss:$8 sps:$4 sm:$0xff]  }
  0x51   :  { %1629 = vmatpush1.bf16.msra.mxu1 %v2470_v34  ;;  %v2559_v34 = vld [vmem:[%s3545_s1 + $0x454] ss:$8 sps:$4 sm:$0xff]  }
  0x52   :  { %1630 = vmatprep.subr.bf16.mxu1 %v2478_v35  ;;  %v2554_v35 = vld [vmem:[%s3545_s1 + $0x560] ss:$8 sps:$4 sm:$0xff]  }
  0x53   :  { %1590 = vmatpush1.bf16.msra.mxu0 %v2473_v36  ;;  %v2562_v36 = vld [vmem:[%s3545_s1 + $0x554] ss:$8 sps:$4 sm:$0xff]  }
  0x54   :  { %1591 = vmatprep.subr.bf16.mxu0 %v2481_v37  ;;  %v2557_v37 = vld [vmem:[%s3545_s1 + $0x450] ss:$8 sps:$4 sm:$0xff]  }
  0x55   :  { %1631 = vmatpush1.bf16.msra.mxu1 %v2476_v38  ;;  %v2565_v38 = vld [vmem:[%s3545_s1 + $0x444] ss:$8 sps:$4 sm:$0xff]  }
  0x56   :  { %1632 = vmatprep.subr.bf16.mxu1 %v2484_v39  ;;  %v2560_v39 = vld [vmem:[%s3545_s1 + $0x550] ss:$8 sps:$4 sm:$0xff]  }
  0x57   :  { %1592 = vmatpush1.bf16.msra.mxu0 %v2479_v40  ;;  %v2568_v40 = vld [vmem:[%s3545_s1 + $0x544] ss:$8 sps:$4 sm:$0xff]  }
  0x58   :  { %1593 = vmatprep.subr.bf16.mxu0 %v2487_v41  ;;  %v2563_v41 = vld [vmem:[%s3545_s1 + $0x440] ss:$8 sps:$4 sm:$0xff]  }
  0x59   :  { %1633 = vmatpush1.bf16.msra.mxu1 %v2482_v43  ;;  %v2571_v43 = vld [vmem:[%s3545_s1 + $0x434] ss:$8 sps:$4 sm:$0xff]  }
  0x5a   :  { %1634 = vmatprep.subr.bf16.mxu1 %v2490_v44  ;;  %v2566_v44 = vld [vmem:[%s3545_s1 + $0x540] ss:$8 sps:$4 sm:$0xff]  }
  0x5b   :  { %1594 = vmatpush1.bf16.msra.mxu0 %v2485_v45  ;;  %v2574_v45 = vld [vmem:[%s3545_s1 + $0x534] ss:$8 sps:$4 sm:$0xff]  }
  0x5c   :  { %1595 = vmatprep.subr.bf16.mxu0 %v2493_v46  ;;  %v2569_v46 = vld [vmem:[%s3545_s1 + $0x430] ss:$8 sps:$4 sm:$0xff]  }
  0x5d   :  { %1635 = vmatpush1.bf16.msra.mxu1 %v2488_v47  ;;  %v2577_v47 = vld [vmem:[%s3545_s1 + $0x424] ss:$8 sps:$4 sm:$0xff]  }
  0x5e   :  { %1636 = vmatprep.subr.bf16.mxu1 %v2496_v49  ;;  %v2572_v49 = vld [vmem:[%s3545_s1 + $0x530] ss:$8 sps:$4 sm:$0xff]  }
  0x5f   :  { %1596 = vmatpush1.bf16.msra.mxu0 %v2491_v50  ;;  %v2580_v50 = vld [vmem:[%s3545_s1 + $0x524] ss:$8 sps:$4 sm:$0xff]  }
  0x60   :  { %1597 = vmatprep.subr.bf16.mxu0 %v2499_v51  ;;  %v2575_v51 = vld [vmem:[%s3545_s1 + $0x420] ss:$8 sps:$4 sm:$0xff]  }
  0x61   :  { %1637 = vmatpush1.bf16.msra.mxu1 %v2494_v52  ;;  %v2583_v52 = vld [vmem:[%s3545_s1 + $0x414] ss:$8 sps:$4 sm:$0xff]  }
  0x62   :  { %1638 = vmatprep.subr.bf16.mxu1 %v2502_v53  ;;  %v2578_v53 = vld [vmem:[%s3545_s1 + $0x520] ss:$8 sps:$4 sm:$0xff]  }
  0x63   :  { %1598 = vmatpush2.bf16.msra.mxu0 %v2497_v54  ;;  %v2586_v54 = vld [vmem:[%s3545_s1 + $0x514] ss:$8 sps:$4 sm:$0xff]  }
  0x64   :  { %1599 = vmatprep.subr.bf16.mxu0 %v2505_v55  ;;  %v2581_v55 = vld [vmem:[%s3545_s1 + $0x410] ss:$8 sps:$4 sm:$0xff]  }
  0x65   :  { %1639 = vmatpush2.bf16.msra.mxu1 %v2500_v56  ;;  %v2589_v56 = vld [vmem:[%s3545_s1 + $0x404] ss:$8 sps:$4 sm:$0xff]  }
  0x66   :  { %1640 = vmatprep.subr.bf16.mxu1 %v2508_v57  ;;  %v2584_v57 = vld [vmem:[%s3545_s1 + $0x510] ss:$8 sps:$4 sm:$0xff]  }
  0x67   :  { %1600 = vmatpush2.bf16.msra.mxu0 %v2503_v58  ;;  %v2592_v58 = vld [vmem:[%s3545_s1 + $0x504] ss:$8 sps:$4 sm:$0xff]  }
  0x68   :  { %1601 = vmatprep.subr.bf16.mxu0 %v2511_v59  ;;  %v2587_v59 = vld [vmem:[%s3545_s1 + $0x400] ss:$8 sps:$4 sm:$0xff]  }
  0x69   :  { %1641 = vmatpush2.bf16.msra.mxu1 %v2506_v60  ;;  %v2595_v60 = vld [vmem:[%s3545_s1 + $0x4f4] ss:$8 sps:$4 sm:$0xff]  }
  0x6a   :  { %1642 = vmatprep.subr.bf16.mxu1 %v2514_v61  ;;  %v2590_v61 = vld [vmem:[%s3545_s1 + $0x500] ss:$8 sps:$4 sm:$0xff]  }
  0x6b   :  { %1602 = vmatpush2.bf16.msra.mxu0 %v2509_v62  ;;  %v2598_v62 = vld [vmem:[%s3545_s1 + $0x5f4] ss:$8 sps:$4 sm:$0xff]  }
  0x6c   :  { %1603 = vmatprep.subr.bf16.mxu0 %v2517_v63  ;;  %v2593_v63 = vld [vmem:[%s3545_s1 + $0x4f0] ss:$8 sps:$4 sm:$0xff]  }
  0x6d   :  { %1643 = vmatpush2.bf16.msra.mxu1 %v2512_v0  ;;  %v2601_v0 = vld [vmem:[%s3545_s1 + $0x4e4] ss:$8 sps:$4 sm:$0xff]  }
  0x6e   :  { %1644 = vmatprep.subr.bf16.mxu1 %v2520_v1  ;;  %v2596_v1 = vld [vmem:[%s3545_s1 + $0x5f0] ss:$8 sps:$4 sm:$0xff]  }
  0x6f   :  { %1604 = vmatpush2.bf16.msra.mxu0 %v2515_v2  ;;  %v2604_v2 = vld [vmem:[%s3545_s1 + $0x5e4] ss:$8 sps:$4 sm:$0xff]  }
  0x70   :  { %1605 = vmatprep.subr.bf16.mxu0 %v2523_v3  ;;  %v2599_v3 = vld [vmem:[%s3545_s1 + $0x4e0] ss:$8 sps:$4 sm:$0xff]  }
  0x71   :  { %1645 = vmatpush2.bf16.msra.mxu1 %v2518_v4  ;;  %v2607_v4 = vld [vmem:[%s3545_s1 + $0x4d4] ss:$8 sps:$4 sm:$0xff]  }
  0x72   :  { %1646 = vmatprep.subr.bf16.mxu1 %v2526_v6  ;;  %v2602_v6 = vld [vmem:[%s3545_s1 + $0x5e0] ss:$8 sps:$4 sm:$0xff]  }
  0x73   :  { %1606 = vmatpush2.bf16.msra.mxu0 %v2521_v7  ;;  %v2610_v7 = vld [vmem:[%s3545_s1 + $0x5d4] ss:$8 sps:$4 sm:$0xff]  }
  0x74   :  { %1607 = vmatprep.subr.bf16.mxu0 %v2529_v8  ;;  %v2605_v8 = vld [vmem:[%s3545_s1 + $0x4d0] ss:$8 sps:$4 sm:$0xff]  }
  0x75   :  { %1647 = vmatpush2.bf16.msra.mxu1 %v2524_v10  ;;  %v2613_v10 = vld [vmem:[%s3545_s1 + $0x4c4] ss:$8 sps:$4 sm:$0xff]  }
  0x76   :  { %1648 = vmatprep.subr.bf16.mxu1 %v2532_v11  ;;  %v2608_v11 = vld [vmem:[%s3545_s1 + $0x5d0] ss:$8 sps:$4 sm:$0xff]  }
  0x77   :  { %1608 = vmatpush2.bf16.msra.mxu0 %v2527_v12  ;;  %v2616_v12 = vld [vmem:[%s3545_s1 + $0x5c4] ss:$8 sps:$4 sm:$0xff]  }
  0x78   :  { %1609 = vmatprep.subr.bf16.mxu0 %v2535_v13  ;;  %v2611_v13 = vld [vmem:[%s3545_s1 + $0x4c0] ss:$8 sps:$4 sm:$0xff]  }
  0x79   :  { %1649 = vmatpush2.bf16.msra.mxu1 %v2530_v14  ;;  %v2619_v14 = vld [vmem:[%s3545_s1 + $0x4b4] ss:$8 sps:$4 sm:$0xff]  }
  0x7a   :  { %1650 = vmatprep.subr.bf16.mxu1 %v2538_v16  ;;  %v2614_v16 = vld [vmem:[%s3545_s1 + $0x5c0] ss:$8 sps:$4 sm:$0xff]  }
  0x7b   :  { %1610 = vmatpush2.bf16.msra.mxu0 %v2533_v17  ;;  %v2622_v17 = vld [vmem:[%s3545_s1 + $0x5b4] ss:$8 sps:$4 sm:$0xff]  }
  0x7c   :  { %1611 = vmatprep.subr.bf16.mxu0 %v2541_v18  ;;  %v2617_v18 = vld [vmem:[%s3545_s1 + $0x4b0] ss:$8 sps:$4 sm:$0xff]  }
  0x7d   :  { %1651 = vmatpush2.bf16.msra.mxu1 %v2536_v19  ;;  %v2625_v19 = vld [vmem:[%s3545_s1 + $0x4a4] ss:$8 sps:$4 sm:$0xff]  }
  0x7e   :  { %1652 = vmatprep.subr.bf16.mxu1 %v2544_v21  ;;  %v2628_v21 = vld [vmem:[%s3545_s1 + $0x5a4] ss:$8 sps:$4 sm:$0xff]  }
  0x7f   :  { %1612 = vmatpush2.bf16.msra.mxu0 %v2539_v22  ;;  %v318_v22 = vcombine.high %v3124_v9, %v3124_v9  ;;  %v2634_v9 = vld [vmem:[%s3545_s1 + $0x594] ss:$8 sps:$4 sm:$0xff]  }
  0x80   :  { %1663 = vmatprep.subr.bf16.mxu0 %v2547_v24  ;;  %v2631_v24 = vld [vmem:[%s3545_s1 + $0x494] ss:$8 sps:$4 sm:$0xff]  }
  0x81   :  { %1653 = vmatpush2.bf16.msra.mxu1 %v2542_v25  ;;  %v2626_v25 = vld [vmem:[%s3545_s1 + $0x5a0] ss:$8 sps:$4 sm:$0xff]  }
  0x82   :  { %1614 = vmatmul.mubr.bf16.vlgmr.msra.gmra.mxu0 %v299_v23  ;;  %1704 = vmatprep.subr.bf16.mxu1 %v2550_v27  ;;  %v2623_v23 = vld [vmem:[%s3545_s1 + $0x4a0] ss:$8 sps:$4 sm:$0xff]   ;;  %v3351_v27 = vrot.slane %v318_v22, %v2888_v48 }
  0x83   :  { %1664 = vmatpush1.bf16.msra.mxu0 %v2545_v5  ;;  %1695 = vmatprep.mubr.bf16.mxu0 %v355_v26  ;;  %v2629_v26 = vld [vmem:[%s3545_s1 + $0x490] ss:$8 sps:$4 sm:$0xff]   ;;  %v2637_v5 = vld [vmem:[%s3545_s1 + $0x484] ss:$8 sps:$4 sm:$0xff]  }
  0x84   :  { %1655 = vmatmul.mubr.bf16.vlgmr.msra.gmra.mxu1 %v315_v28  ;;  %1665 = vmatprep.subr.bf16.mxu0 %v2553_v29  ;;  %v2632_v28 = vld [vmem:[%s3545_s1 + $0x590] ss:$8 sps:$4 sm:$0xff]   ;;  %v2640_v29 = vld [vmem:[%s3545_s1 + $0x584] ss:$8 sps:$4 sm:$0xff]  }
  0x85   :  { %1705 = vmatpush1.bf16.msra.mxu1 %v2548_v30  ;;  %1736 = vmatprep.mubr.bf16.mxu1 %v364_v31  ;;  %v2635_v30 = vld [vmem:[%s3545_s1 + $0x480] ss:$8 sps:$4 sm:$0xff]   ;;  %v334_v31 = vcombine.high %v3351_v27, %v3351_v27 }
  0x86   :  { %1706 = vmatprep.subr.bf16.mxu1 %v2556_v32  ;;  %v341_v32 = vrot.slane %v3143_v15, %v2888_v48  ;;  %v2646_v15 = vld [vmem:[%s3545_s1 + $0x664] ss:$8 sps:$4 sm:$0xff]  }
  0x87   :  { %1666 = vmatpush1.bf16.msra.mxu0 %v2551_v33  ;;  %v2643_v33 = vld [vmem:[%s3545_s1 + $0x674] ss:$8 sps:$4 sm:$0xff]  }
  0x88   :  { %1667 = vmatprep.subr.bf16.mxu0 %v2559_v34  ;;  %v2638_v34 = vld [vmem:[%s3545_s1 + $0x580] ss:$8 sps:$4 sm:$0xff]  }
  0x89   :  { %1707 = vmatpush1.bf16.msra.mxu1 %v2554_v35  ;;  %v2641_v35 = vld [vmem:[%s3545_s1 + $0x670] ss:$8 sps:$4 sm:$0xff]  }
  0x8a   :  { %1708 = vmatprep.subr.bf16.mxu1 %v2562_v36  ;;  %v362_v36 = vrot.slane %v334_v31, %v2888_v48  ;;  %v2698_v31 = vld [vmem:[%s3548_s3 + $0x18] sm:$0xff]  }
  0x8b   :  { %1668 = vmatpush1.bf16.msra.mxu0 %v2557_v37  ;;  %v363_v37 = vcombine.high %v341_v32, %v341_v32 }
  0x8c   :  { %1669 = vmatprep.subr.bf16.mxu0 %v2565_v38  ;;  %v2644_v38 = vld [vmem:[%s3545_s1 + $0x660] ss:$8 sps:$4 sm:$0xff]  }
  0x8d   :  { %1709 = vmatpush1.bf16.msra.mxu1 %v2560_v39  ;;  %v2649_v39 = vld [vmem:[%s3545_s1 + $0x654] ss:$8 sps:$4 sm:$0xff]  }
  0x8e   :  { %1710 = vmatprep.subr.bf16.mxu1 %v2568_v40  ;;  %v2647_v40 = vld [vmem:[%s3545_s1 + $0x650] ss:$8 sps:$4 sm:$0xff]  }
  0x8f   :  { %1670 = vmatpush1.bf16.msra.mxu0 %v2563_v41  ;;  %v2652_v41 = vld [vmem:[%s3545_s1 + $0x644] ss:$8 sps:$4 sm:$0xff]  }
  0x90   :  { %1671 = vmatprep.subr.bf16.mxu0 %v2571_v43  ;;  %v2650_v43 = vld [vmem:[%s3545_s1 + $0x640] ss:$8 sps:$4 sm:$0xff]  }
  0x91   :  { %1711 = vmatpush1.bf16.msra.mxu1 %v2566_v44  ;;  %v2655_v44 = vld [vmem:[%s3545_s1 + $0x634] ss:$8 sps:$4 sm:$0xff]  }
  0x92   :  { %1712 = vmatprep.subr.bf16.mxu1 %v2574_v45  ;;  %v2653_v45 = vld [vmem:[%s3545_s1 + $0x630] ss:$8 sps:$4 sm:$0xff]  }
  0x93   :  { %1672 = vmatpush1.bf16.msra.mxu0 %v2569_v46  ;;  %v2658_v46 = vld [vmem:[%s3545_s1 + $0x624] ss:$8 sps:$4 sm:$0xff]  }
  0x94   :  { %1673 = vmatprep.subr.bf16.mxu0 %v2577_v47  ;;  %v2656_v47 = vld [vmem:[%s3545_s1 + $0x620] ss:$8 sps:$4 sm:$0xff]  }
  0x95   :  { %1713 = vmatpush1.bf16.msra.mxu1 %v2572_v49  ;;  %v2661_v49 = vld [vmem:[%s3545_s1 + $0x614] ss:$8 sps:$4 sm:$0xff]  }
  0x96   :  { %1714 = vmatprep.subr.bf16.mxu1 %v2580_v50  ;;  %v2659_v50 = vld [vmem:[%s3545_s1 + $0x610] ss:$8 sps:$4 sm:$0xff]  }
  0x97   :  { %1674 = vmatpush1.bf16.msra.mxu0 %v2575_v51  ;;  %v2664_v51 = vld [vmem:[%s3545_s1 + $0x604] ss:$8 sps:$4 sm:$0xff]  }
  0x98   :  { %1675 = vmatprep.subr.bf16.mxu0 %v2583_v52  ;;  %v2662_v52 = vld [vmem:[%s3545_s1 + $0x600] ss:$8 sps:$4 sm:$0xff]  }
  0x99   :  { %1715 = vmatpush1.bf16.msra.mxu1 %v2578_v53  ;;  %v2667_v53 = vld [vmem:[%s3545_s1 + $0x6f4] ss:$8 sps:$4 sm:$0xff]  }
  0x9a   :  { %1716 = vmatprep.subr.bf16.mxu1 %v2586_v54  ;;  %v2665_v54 = vld [vmem:[%s3545_s1 + $0x6f0] ss:$8 sps:$4 sm:$0xff]  }
  0x9b   :  { %1676 = vmatpush1.bf16.msra.mxu0 %v2581_v55  ;;  %v2670_v55 = vld [vmem:[%s3545_s1 + $0x6e4] ss:$8 sps:$4 sm:$0xff]  }
  0x9c   :  { %1677 = vmatprep.subr.bf16.mxu0 %v2589_v56  ;;  %v2668_v56 = vld [vmem:[%s3545_s1 + $0x6e0] ss:$8 sps:$4 sm:$0xff]  }
  0x9d   :  { %1717 = vmatpush1.bf16.msra.mxu1 %v2584_v57  ;;  %v2673_v57 = vld [vmem:[%s3545_s1 + $0x6d4] ss:$8 sps:$4 sm:$0xff]  }
  0x9e   :  { %1718 = vmatprep.subr.bf16.mxu1 %v2592_v58  ;;  %v2671_v58 = vld [vmem:[%s3545_s1 + $0x6d0] ss:$8 sps:$4 sm:$0xff]  }
  0x9f   :  { %1678 = vmatpush1.bf16.msra.mxu0 %v2587_v59  ;;  %v2676_v59 = vld [vmem:[%s3545_s1 + $0x6c4] ss:$8 sps:$4 sm:$0xff]  }
  0xa0   :  { %1679 = vmatprep.subr.bf16.mxu0 %v2595_v60  ;;  %v2674_v60 = vld [vmem:[%s3545_s1 + $0x6c0] ss:$8 sps:$4 sm:$0xff]  }
  0xa1   :  { %1719 = vmatpush1.bf16.msra.mxu1 %v2590_v61  ;;  %v2679_v61 = vld [vmem:[%s3545_s1 + $0x6b4] ss:$8 sps:$4 sm:$0xff]  }
  0xa2   :  { %1720 = vmatprep.subr.bf16.mxu1 %v2598_v62  ;;  %v2677_v62 = vld [vmem:[%s3545_s1 + $0x6b0] ss:$8 sps:$4 sm:$0xff]  }
  0xa3   :  { %1680 = vmatpush2.bf16.msra.mxu0 %v2593_v63  ;;  %v2682_v63 = vld [vmem:[%s3545_s1 + $0x6a4] ss:$8 sps:$4 sm:$0xff]  }
  0xa4   :  { %1681 = vmatprep.subr.bf16.mxu0 %v2601_v0  ;;  %v2680_v0 = vld [vmem:[%s3545_s1 + $0x6a0] ss:$8 sps:$4 sm:$0xff]  }
  0xa5   :  { %1721 = vmatpush2.bf16.msra.mxu1 %v2596_v1  ;;  %v2685_v1 = vld [vmem:[%s3545_s1 + $0x694] ss:$8 sps:$4 sm:$0xff]  }
  0xa6   :  { %1722 = vmatprep.subr.bf16.mxu1 %v2604_v2  ;;  %v2683_v2 = vld [vmem:[%s3545_s1 + $0x690] ss:$8 sps:$4 sm:$0xff]  }
  0xa7   :  { %1682 = vmatpush2.bf16.msra.mxu0 %v2599_v3  ;;  %v2688_v3 = vld [vmem:[%s3545_s1 + $0x684] ss:$8 sps:$4 sm:$0xff]  }
  0xa8   :  { %1683 = vmatprep.subr.bf16.mxu0 %v2607_v4  ;;  %v2686_v4 = vld [vmem:[%s3545_s1 + $0x680] ss:$8 sps:$4 sm:$0xff]  }
  0xa9   :  { %1723 = vmatpush2.bf16.msra.mxu1 %v2602_v6  ;;  %v259_v6 = vsub.s32 0, %v2873_v42 }
  0xaa   :  { %1724 = vmatprep.subr.bf16.mxu1 %v2610_v7  ;;  %v255_v7 = vld [vmem:[%s3547_s2] sm:$0x3] }
  0xab   :  { %1684 = vmatpush2.bf16.msra.mxu0 %v2605_v8  ;;  %v263_v8 = vsub.s32 1, %v2873_v42  ;;  %v2689_v42 = vld [vmem:[%s3548_s3 + $0x78] sm:$0xff]  }
  0xac   :  { %1685 = vmatprep.subr.bf16.mxu0 %v2613_v10  ;;  %v348_v10 = vrot.slane %v3351_v27, %v2888_v48  ;;  %v2693_v27 = vld [vmem:[%s3548_s3 + $0x68] sm:$0xff]  }
  0xad   :  { %1725 = vmatpush2.bf16.msra.mxu1 %v2608_v11  ;;  %v260_v11 = vrot.slane %v255_v7, %v259_v6 }
  0xae   :  { %1726 = vmatprep.subr.bf16.mxu1 %v2616_v12  ;;  %v264_v12 = vrot.slane %v255_v7, %v263_v8 }
  0xaf   :  { %1686 = vmatpush2.bf16.msra.mxu0 %v2611_v13 }
  0xb0   :  { %1687 = vmatprep.subr.bf16.mxu0 %v2619_v14 }
  0xb1   :  { %1727 = vmatpush2.bf16.msra.mxu1 %v2614_v16 }
  0xb2   :  { %1728 = vmatprep.subr.bf16.mxu1 %v2622_v17 }
  0xb3   :  { %1688 = vmatpush2.bf16.msra.mxu0 %v2617_v18 }
  0xb4   :  { %1689 = vmatprep.subr.bf16.mxu0 %v2625_v19 }
  0xb5   :  { %1729 = vmatpush2.bf16.msra.mxu1 %v2620_v20 }
  0xb6   :  { %1730 = vmatprep.subr.bf16.mxu1 %v2628_v21 }
  0xb7   :  { %1690 = vmatpush2.bf16.msra.mxu0 %v2623_v23 }
  0xb8   :  { %1691 = vmatprep.subr.bf16.mxu0 %v2631_v24 }
  0xb9   :  { %1731 = vmatpush2.bf16.msra.mxu1 %v2626_v25  ;;  %v2690_v25 = vld [vmem:[%s3548_s3 + $0x38] sm:$0xff]  }
  0xba   :  { %1732 = vmatprep.subr.bf16.mxu1 %v2634_v9  ;;  %v2691_v9 = vld [vmem:[%s3548_s3 + $0x70] sm:$0xff]  }
  0xbb   :  { %1692 = vmatpush2.bf16.msra.mxu0 %v2629_v26  ;;  %v2692_v26 = vld [vmem:[%s3548_s3 + $0x30] sm:$0xff]  }
  0xbc   :  { %1693 = vmatprep.subr.bf16.mxu0 %v2637_v5  ;;  %v2694_v5 = vld [vmem:[%s3548_s3 + $0x28] sm:$0xff]  }
  0xbd   :  { %1733 = vmatpush2.bf16.msra.mxu1 %v2632_v28  ;;  %v2695_v28 = vld [vmem:[%s3548_s3 + $0x60] sm:$0xff]  }
  0xbe   :  { %1734 = vmatprep.subr.bf16.mxu1 %v2640_v29  ;;  %v2696_v29 = vld [vmem:[%s3548_s3 + $0x20] sm:$0xff]  }
  0xbf   :  { %1694 = vmatpush2.bf16.msra.mxu0 %v2635_v30  ;;  %v2697_v30 = vld [vmem:[%s3548_s3 + $0x58] sm:$0xff]  }
  0xc0   :  { %1745 = vmatprep.subr.bf16.mxu0 %v2643_v33  ;;  %v2700_v33 = vld [vmem:[%s3548_s3 + $0x10] sm:$0xff]  }
  0xc1   :  { %1735 = vmatpush2.bf16.msra.mxu1 %v2638_v34 }
  0xc2   :  { %1696 = vmatmul.mubr.bf16.vlgmr.msra.gmra.mxu0 %v341_v32  ;;  %2309 = vmatprep.subr.bf16.mxu1 %v2689_v42  ;;  %v2699_v32 = vld [vmem:[%s3548_s3 + $0x50] sm:$0xff]  }
  0xc3   :  { %1746 = vmatpush1.bf16.msra.mxu0 %v2641_v35  ;;  %1777 = vmatprep.mubr.bf16.mxu0 %v362_v36  ;;  %v2701_v35 = vld [vmem:[%s3548_s3 + $0x48] sm:$0xff]  }
  0xc4   :  { %1737 = vmatmul.mubr.bf16.vlgmr.msra.gmra.mxu1 %v363_v37  ;;  %1747 = vmatprep.subr.bf16.mxu0 %v2646_v15  ;;  %v2702_v37 = vld [vmem:[%s3548_s3 + $0x8] sm:$0xff]  }
  0xc5   :  { %2310 = vmatpush3.bf16.msra.mxu1 %v2690_v25 }
  0xc6   :  { %2311 = vmatprep.subr.bf16.mxu1 %v2691_v9 }
  0xc7   :  { %1748 = vmatpush1.bf16.msra.mxu0 %v2644_v38 }
  0xc8   :  { %1749 = vmatprep.subr.bf16.mxu0 %v2649_v39 }
  0xc9   :  { %2312 = vmatpush3.bf16.msra.mxu1 %v2692_v26 }
  0xca   :  { %2313 = vmatprep.subr.bf16.mxu1 %v2693_v27 }
  0xcb   :  { %1750 = vmatpush1.bf16.msra.mxu0 %v2647_v40 }
  0xcc   :  { %1751 = vmatprep.subr.bf16.mxu0 %v2652_v41 }
  0xcd   :  { %2314 = vmatpush3.bf16.msra.mxu1 %v2694_v5 }
  0xce   :  { %2315 = vmatprep.subr.bf16.mxu1 %v2695_v28 }
  0xcf   :  { %1752 = vmatpush1.bf16.msra.mxu0 %v2650_v43 }
  0xd0   :  { %1753 = vmatprep.subr.bf16.mxu0 %v2655_v44  ;;  %v2703_v44 = vld [vmem:[%s3548_s3 + $0x40] sm:$0xff]  }
  0xd1   :  { %2316 = vmatpush3.bf16.msra.mxu1 %v2696_v29 }
  0xd2   :  { %2317 = vmatprep.subr.bf16.mxu1 %v2697_v30 }
  0xd3   :  { %1754 = vmatpush1.bf16.msra.mxu0 %v2653_v45 }
  0xd4   :  { %1755 = vmatprep.subr.bf16.mxu0 %v2658_v46  ;;  %v2704_v46 = vld [vmem:[%s3548_s3] sm:$0xff]  }
  0xd5   :  { %2318 = vmatpush3.bf16.msra.mxu1 %v2698_v31 }
  0xd6   :  { %2319 = vmatprep.subr.bf16.mxu1 %v2699_v32 }
  0xd7   :  { %1756 = vmatpush1.bf16.msra.mxu0 %v2656_v47 }
  0xd8   :  { %1757 = vmatprep.subr.bf16.mxu0 %v2661_v49 }
  0xd9   :  { %2320 = vmatpush3.bf16.msra.mxu1 %v2700_v33 }
  0xda   :  { %2321 = vmatprep.subr.bf16.mxu1 %v2701_v35 }
  0xdb   :  { %1758 = vmatpush1.bf16.msra.mxu0 %v2659_v50 }
  0xdc   :  { %1759 = vmatprep.subr.bf16.mxu0 %v2664_v51  ;;  %v2714_v51 = vmov 0.0  }
  0xdd   :  { %2322 = vmatpush3.bf16.msra.mxu1 %v2702_v37 }
  0xde   :  { %2323 = vmatprep.subr.bf16.mxu1 %v2703_v44 }
  0xdf   :  { %1760 = vmatpush1.bf16.msra.mxu0 %v2662_v52 }
  0xe0   :  { %1761 = vmatprep.subr.bf16.mxu0 %v2667_v53 }
  0xe1   :  { %2324 = vmatpush3.bf16.msra.mxu1 %v2704_v46 }
  0xe2   :  { %2336 = vmatprep.subr.bf16.mxu1 %v2714_v51 }
  0xe3   :  { %1762 = vmatpush2.bf16.msra.mxu0 %v2665_v54 }
  0xe4   :  { %1763 = vmatprep.subr.bf16.mxu0 %v2670_v55 }
  0xe7   :  { %1764 = vmatpush2.bf16.msra.mxu0 %v2668_v56 }
  0xe8   :  { %1765 = vmatprep.subr.bf16.mxu0 %v2673_v57 }
  0xeb   :  { %1766 = vmatpush2.bf16.msra.mxu0 %v2671_v58 }
  0xec   :  { %1767 = vmatprep.subr.bf16.mxu0 %v2676_v59 }
  0xef   :  { %1768 = vmatpush2.bf16.msra.mxu0 %v2674_v60 }
  0xf0   :  { %1769 = vmatprep.subr.bf16.mxu0 %v2679_v61 }
  0xf3   :  { %1770 = vmatpush2.bf16.msra.mxu0 %v2677_v62 }
  0xf4   :  { %1771 = vmatprep.subr.bf16.mxu0 %v2682_v63 }
  0xf7   :  { %1772 = vmatpush2.bf16.msra.mxu0 %v2680_v0 }
  0xf8   :  { %1773 = vmatprep.subr.bf16.mxu0 %v2685_v1 }
  0xfb   :  { %1774 = vmatpush2.bf16.msra.mxu0 %v2683_v2 }
  0xfc   :  { %1775 = vmatprep.subr.bf16.mxu0 %v2688_v3 }
  0xff   :  { %1776 = vmatpush2.bf16.msra.mxu0 %v2686_v4 }
 0x102   :  { %v1533_v13 = vpop.f32.mrf.mxu0  ;;  %1778 = vmatmul.mubr.bf16.vlgmr.msra.gmra.mxu0 %v348_v10 }
 0x103   :  { %v1534_v14 = vadd.f32 %v1533_v13, %v260_v11  ;;  %v2705_v11 = vld [vmem:[%s3549_s5 + $0x18] sm:$0xff]   ;;  %v2706_v13 = vld [vmem:[%s3549_s5 + $0x10] sm:$0xff]  }
 0x104   :  { %v1535_v16 = vpop.f32.mrf.mxu0  ;;  %v1574_v17 = vpop.f32.mrf.mxu1 }
 0x105   :  { %v1536_v18 = vadd.f32 %v1535_v16, %v264_v12  ;;  %v1575_v19 = vadd.f32 %v1574_v17, %v1534_v14  ;;  %v2707_v14 = vld [vmem:[%s3549_s5 + $0x8] sm:$0xff]   ;;  %v2708_v16 = vld [vmem:[%s3549_s5] sm:$0xff]   ;;  %v12_v17 = vstv %s3550_s6 }
 0x106   :  { %v1537_v20 = vpop.f32.mrf.mxu0  ;;  %v1576_v21 = vpop.f32.mrf.mxu1  ;;  %13 = vst [vmem:[#allocation2] sm:$0x1] %v12_v17 }
 0x107   :  { %v1577_v22 = vadd.f32 %v1576_v21, %v1536_v18 }
 0x108   :  { %v1538_v23 = vpop.f32.mrf.mxu0  ;;  %v1578_v24 = vpop.f32.mrf.mxu1 }
 0x10a   :  { %v1579_v48 = vpop.f32.mrf.mxu1 }
 0x10d   :  { %v2303_v25 = vld [vmem:[#allocation2] ss:$0 sm:$0xff] }
 0x142   :  { %v1615_v34 = vpop.f32.mrf.mxu0 }
 0x143   :  { %v1616_v36 = vadd.f32 %v1615_v34, %v1575_v19  ;;  %v2286_v19 = vld [vmem:[%s3551_s4] ss:$0 sm:$0xff] }
 0x144   :  { %v1617_v15 = vpop.f32.mrf.mxu0  ;;  %v1656_v38 = vpop.f32.mrf.mxu1 }
 0x145   :  { %v1618_v39 = vadd.f32 %v1617_v15, %v1577_v22  ;;  %v1657_v40 = vadd.f32 %v1656_v38, %v1616_v36 }
 0x146   :  { %v1619_v41 = vpop.f32.mrf.mxu0  ;;  %v1658_v43 = vpop.f32.mrf.mxu1 }
 0x147   :  { %v1659_v45 = vadd.f32 %v1658_v43, %v1618_v39 }
 0x148   :  { %v1620_v47 = vpop.f32.mrf.mxu0  ;;  %v1660_v49 = vpop.f32.mrf.mxu1 }
 0x14a   :  { %v1661_v50 = vpop.f32.mrf.mxu1 }
 0x182   :  { %v1697_v52 = vpop.f32.mrf.mxu0 }
 0x183   :  { %v1698_v60 = vadd.f32 %v1697_v52, %v1657_v40 }
 0x184   :  { %v1699_v53 = vpop.f32.mrf.mxu0  ;;  %v1738_v54 = vpop.f32.mrf.mxu1 }
 0x185   :  { %v1700_v61 = vadd.f32 %v1699_v53, %v1659_v45  ;;  %v1739_v62 = vadd.f32 %v1738_v54, %v1698_v60 }
 0x186   :  { %v1701_v55 = vpop.f32.mrf.mxu0  ;;  %v1740_v56 = vpop.f32.mrf.mxu1 }
 0x187   :  { %v1741_v0 = vadd.f32 %v1740_v56, %v1700_v61 }
 0x188   :  { %v1702_v57 = vpop.f32.mrf.mxu0  ;;  %v1742_v58 = vpop.f32.mrf.mxu1 }
 0x18a   :  { %v1743_v59 = vpop.f32.mrf.mxu1 }
 0x1c2   :  { %v1779_v63 = vpop.f32.mrf.mxu0 }
 0x1c3   :  { %v1780_v1 = vadd.f32 %v1779_v63, %v1739_v62 }
 0x1c4   :  { %v1781_v2 = vpop.f32.mrf.mxu0 }
 0x1c5   :  { %v1782_v3 = vadd.f32 %v1781_v2, %v1741_v0  ;;  %v1786_v4 = vmax.f32 %v1780_v1, 0.0 }
 0x1c6   :  { %v1783_v6 = vpop.f32.mrf.mxu0 }
 0x1c7   :  { %v1787_v7 = vmax.f32 %v1782_v3, 0.0  ;;  %v1788_v12 = vpack.c.bf16 %v1786_v4, %v1786_v4 }
 0x1c8   :  { %v1784_v8 = vpop.f32.mrf.mxu0 }
 0x1c9   :  { %v1789_v10 = vpack.c.bf16 %v1787_v7, %v1787_v7 }
 0x1cb   :  { %1957 = vmatprep.mubr.bf16.mxu1 %v1789_v10 }
 0x1cc   :  { %1958 = vmatmul.mubr.bf16.vlgmr.msra.gmra.mxu1 %v1788_v12 }
 0x1cd   :  { %2337 = vmatpush3.bf16.msra.mxu1 %v2705_v11  ;;  %2344 = vmatprep.mubr.msk.bf16.mxu1 %vm2715_vm0, %v2714_v51 }
 0x1ce   :  { %2338 = vmatprep.subr.bf16.mxu1 %v2714_v51 }
 0x1d1   :  { %2339 = vmatpush3.bf16.msra.mxu1 %v2706_v13 }
 0x1d2   :  { %2340 = vmatprep.subr.bf16.mxu1 %v2714_v51 }
 0x1d5   :  { %2341 = vmatpush3.bf16.msra.mxu1 %v2707_v14 }
 0x1d6   :  { %2342 = vmatprep.subr.bf16.mxu1 %v2714_v51 }
 0x1d9   :  { %2343 = vmatpush3.bf16.msra.mxu1 %v2708_v16 }
 0x28c   :  { %v2325_v18 = vpop.f32.mrf.mxu1 }
 0x28e   :  { %v2326_v20 = vpop.f32.mrf.mxu1 }
 0x28f   :  { %v2327_v21 = vadd.f32 %v2326_v20, %v2325_v18 }
 0x290   :  { %v2328_v22 = vpop.f32.mrf.mxu1 }
 0x291   :  { %v1960_v23 = vadd.f32 %v2327_v21, %v2286_v19 }
 0x292   :  { %v2329_v24 = vpop.f32.mrf.mxu1 }
 0x293   :  { %v1965_v42 = vmax.f32 %v1960_v23, 0.0 }
 0x295   :  { %v1966_v48 = vpack.c.bf16 %v1965_v42, %v1965_v42 }
 0x297   :  { %2345 = vmatmul.mubr.msk.bf16.vlgmr.msra.gmra.mxu1 %vm2006_vm1, %v1966_v48 }
 0x357   :  { %v2044_v9 = vpop.f32.mrf.mxu1 }
 0x358   :  { %v2045_v26 = vadd.f32 %v2303_v25, %v2044_v9 }
 0x359   :  { %v2346_v27 = vpop.f32.mrf.mxu1 }
 0x35a   :  { %v2050_v5 = vsub.f32 0.0, %v2045_v26 }
 0x35b   :  { %v2047_v28 = vpop.f32.mrf.mxu1 }
 0x35c   :  { %v2051_v29 = vmul.f32 1.442695, %v2050_v5 }
 0x35d   :  { %v2347_v30 = vpop.f32.mrf.mxu1 }
 0x35e   :  { %2709 = vpow2.f32 %v2051_v29 }
 0x36b   :  { %v2710_v31 = vpop.eup %2709 }
 0x36c   :  { %v2053_v32 = vadd.f32 1.0, %v2710_v31 }
 0x36e   :  { %2711 = vrcp.f32 %v2053_v32 }
 0x37b   :  { %v2712_v33 = vpop.eup %2711 }
 0x37c   :  { %2057 = vst.msk [vmem:[%s3552_s7] sm:$0x3] %vm2056_vm2, %v2712_v33 }

</bundles_post_ra>
